<compile_context>
chip_gen: v5e
topology: v5e:2x2
jax: 0.10.0
libtpu: 0.0.40
codegen_flags: <defaults>
</compile_context>

<pallas_src>
import math
from functools import partial

import jax
import jax.numpy as jnp
from jax import lax
from jax.experimental import pallas as pl
from jax.experimental.pallas import tpu as pltpu


LANE = 128                      # TPU lane width; channel dims padded to this
MXU_DTYPE = jnp.bfloat16        # MXU operand dtype (accumulation stays f32)


def _round_up(x, m):
    return (x + m - 1) // m * m


# ------------------------ shared causal-conv + GLU helper ---------------------

def _causal_conv_glu(x, w_tap, bias, K, EP, seg_len):
    """Causal 1-D conv (left zero-pad K-1) + GLU, batched over rows.

    x:      (N, C) f32, N rows = flattened (items, positions), positions are
            contiguous per item with period `seg_len` (N % seg_len == 0).
    w_tap:  t -> (C, 2*EP) bf16 weight slice for tap t (t = 0 .. K-1).
    bias:   (1, 2*EP) f32.
    Returns (N, EP) f32 GLU output.
    """
    N = x.shape[0]
    acc = jnp.dot(x.astype(MXU_DTYPE), w_tap(K - 1),
                  preferred_element_type=jnp.float32)
    if K > 1:
        g = lax.broadcasted_iota(jnp.int32, x.shape, 0)
        if seg_len != N:
            if (seg_len & (seg_len - 1)) == 0:
                g = jnp.bitwise_and(g, seg_len - 1)
            else:
                g = lax.rem(g, seg_len)
        for s in range(1, K):
            # row r of each item reads row r-s of the same item; rows r < s see
            # the causal zero padding (mask), so the global roll never leaks
            # data across item boundaries.
            xs = jnp.where(g >= s, pltpu.roll(x, shift=s, axis=0),
                           jnp.zeros_like(x))
            acc = acc + jnp.dot(xs.astype(MXU_DTYPE), w_tap(K - 1 - s),
                                preferred_element_type=jnp.float32)
    acc = acc + bias
    return acc[:, :EP] * jax.nn.sigmoid(acc[:, EP:])


# ---------------------- fused sentence-stage kernel ---------------------------
# project + pool + sCNN stack (conv/GLU/LN/attention/residual) + gen_topic + stop

def _sentence_kernel(img_ref, se_ref,
                     pw_ref, pb_ref,
                     rw_ref, rb_ref,
                     c0w_ref, c0b_ref,
                     crw_ref, crb_ref,
                     g1w_ref, g1b_ref, g2w_ref, g2b_ref,
                     sw_ref, sb_ref,
                     topics_ref, stop_ref,
                     *, sk, E, EP, PP, n_rest, Lp):
    # ---- project(img) + ReLU, max-pool over boxes ----
    img = img_ref[0].astype(MXU_DTYPE)                                  # (Nb, Fp)
    proj = jnp.dot(img, pw_ref[...],
                   preferred_element_type=jnp.float32) + pb_ref[...]
    proj = jnp.maximum(proj, 0.0)                                       # (Nb, PP)
    pool = jnp.max(proj, axis=0, keepdims=True) * (1.0 / math.sqrt(2.0))
    pf_bf = proj.astype(MXU_DTYPE)                                      # attention keys/values

    # ---- s_inputs = [pool (broadcast), sents_embed] along channels ----
    se = se_ref[0]                                                      # (Lp, EP)
    x = jnp.concatenate([jnp.broadcast_to(pool, (Lp, PP)), se], axis=1)  # (Lp, PP+EP)

    # layer-0 residual: s_res_proj(s_inputs)  (folded into this kernel)
    res = jnp.dot(x.astype(MXU_DTYPE), rw_ref[...],
                  preferred_element_type=jnp.float32) + rb_ref[...]     # (Lp, EP)

    lane = lax.broadcasted_iota(jnp.int32, (Lp, EP), 1)
    inv_e = 1.0 / E
    inv_sqrt_e = 1.0 / math.sqrt(E)

    for li in range(n_rest + 1):
        if li == 0:
            h = _causal_conv_glu(x, lambda t: c0w_ref[t], c0b_ref[...],
                                 sk, EP, Lp)
        else:
            h = _causal_conv_glu(x,
                                 lambda t, li=li: crw_ref[li - 1, t],
                                 crb_ref[li - 1], sk, EP, Lp)

        # TODO(synk): self.ln3 is used in forward() but never defined in the
        # PyTorch __init__; implemented as LayerNorm(emb_size), gamma=1, beta=0,
        # eps=1e-5 (two-pass variance for precision).
        mu = jnp.sum(h, axis=-1, keepdims=True) * inv_e                 # pad lanes are 0
        d = jnp.where(lane < E, h - mu, 0.0)
        var = jnp.sum(d * d, axis=-1, keepdims=True) * inv_e
        h = d * lax.rsqrt(var + 1e-5)                                   # (Lp, EP), pad lanes 0

        # attention over boxes: scores = h @ proj^T (contract last dims, no .T)
        h_bf = h.astype(MXU_DTYPE)
        scores = lax.dot_general(h_bf, pf_bf, (((1,), (1,)), ((), ())),
                                 preferred_element_type=jnp.float32) * inv_sqrt_e
        m = jnp.max(scores, axis=-1, keepdims=True)
        e = jnp.exp(scores - m)
        att = e / jnp.sum(e, axis=-1, keepdims=True)                    # softmax over boxes
        ctx = jnp.dot(att.astype(MXU_DTYPE), pf_bf,
                      preferred_element_type=jnp.float32)               # (Lp, PP)

        out = (h + ctx) * math.sqrt(0.5)
        x = (out + res) * math.sqrt(0.5)
        res = x                                                         # res for next layer

    # ---- gen_topic (Linear+ReLU x2) + stop classifier ----
    t1 = jnp.maximum(jnp.dot(x.astype(MXU_DTYPE), g1w_ref[...],
                             preferred_element_type=jnp.float32) + g1b_ref[...], 0.0)
    topics = jnp.maximum(jnp.dot(t1.astype(MXU_DTYPE), g2w_ref[...],
                                 preferred_element_type=jnp.float32) + g2b_ref[...], 0.0)
    stop = jnp.dot(topics.astype(MXU_DTYPE), sw_ref[...],
                   preferred_element_type=jnp.float32) + sb_ref[...]
    topics_ref[0] = topics
    stop_ref[0] = stop


def _sentence_stage(params, cfg, imgp, sents_embed):
    B, Nb, Fp = imgp.shape
    _, Lp, EP = sents_embed.shape
    PP = params["proj_w"].shape[1]
    sk = cfg["s_kernel_size"]
    n_rest = max(cfg["s_num_layers"] - 1, 0)
    nr = params["s_convr_w"].shape[0]            # >= 1 (dummy when n_rest == 0)
    C0 = PP + EP

    topics, stop = pl.pallas_call(
        partial(_sentence_kernel, sk=sk, E=cfg["emb_size"], EP=EP, PP=PP,
                n_rest=n_rest, Lp=Lp),
        grid=(B,),
        in_specs=[
            pl.BlockSpec((1, Nb, Fp), lambda i: (i, 0, 0)),      # img feats
            pl.BlockSpec((1, Lp, EP), lambda i: (i, 0, 0)),      # sents_embed
            pl.BlockSpec((Fp, PP), lambda i: (0, 0)),            # proj_w
            pl.BlockSpec((1, PP), lambda i: (0, 0)),             # proj_b
            pl.BlockSpec((C0, EP), lambda i: (0, 0)),            # s_res_w
            pl.BlockSpec((1, EP), lambda i: (0, 0)),             # s_res_b
            pl.BlockSpec((sk, C0, 2 * EP), lambda i: (0, 0, 0)),  # conv0 w
            pl.BlockSpec((1, 2 * EP), lambda i: (0, 0)),         # conv0 b
            pl.BlockSpec((nr, sk, EP, 2 * EP), lambda i: (0, 0, 0, 0)),  # conv rest w
            pl.BlockSpec((nr, 1, 2 * EP), lambda i: (0, 0, 0)),          # conv rest b
            pl.BlockSpec((EP, EP), lambda i: (0, 0)),            # gt_w1
            pl.BlockSpec((1, EP), lambda i: (0, 0)),             # gt_b1
            pl.BlockSpec((EP, EP), lambda i: (0, 0)),            # gt_w2
            pl.BlockSpec((1, EP), lambda i: (0, 0)),             # gt_b2
            pl.BlockSpec((EP, LANE), lambda i: (0, 0)),          # stop_w
            pl.BlockSpec((1, LANE), lambda i: (0, 0)),           # stop_b
        ],
        out_specs=(pl.BlockSpec((1, Lp, EP), lambda i: (i, 0, 0)),
                   pl.BlockSpec((1, Lp, LANE), lambda i: (i, 0, 0))),
        out_shape=(jax.ShapeDtypeStruct((B, Lp, EP), jnp.float32),
                   jax.ShapeDtypeStruct((B, Lp, LANE), jnp.float32)),
        compiler_params=pltpu.CompilerParams(
            dimension_semantics=("parallel",)),
    )(imgp, sents_embed,
      params["proj_w"], params["proj_b"],
      params["s_res_w"], params["s_res_b"],
      params["s_conv0_w"], params["s_conv0_b"],
      params["s_convr_w"], params["s_convr_b"],
      params["gt_w1"], params["gt_b1"],
      params["gt_w2"], params["gt_b2"],
      params["stop_w"], params["stop_b"])
    return topics, stop


# --------------------- fused word-stage kernel (wCNN + classifier) ------------

def _word_kernel(x_ref, cw_ref, cb_ref, clsw_ref, clsb_ref, o_ref,
                 *, wk, EP, Lwp, n_layers):
    Sb = x_ref.shape[0]
    N = Sb * Lwp
    x = x_ref[...].reshape(N, EP)                                   # tile-aligned reshape
    for li in range(n_layers):
        h = _causal_conv_glu(x, lambda t, li=li: cw_ref[li, t],
                             cb_ref[li], wk, EP, Lwp)
        x = (h + x) * math.sqrt(0.5)
    logits = jnp.dot(x.astype(MXU_DTYPE), clsw_ref[...],
                     preferred_element_type=jnp.float32) + clsb_ref[...]
    o_ref[...] = logits.reshape(Sb, Lwp, logits.shape[-1])


def _word_stage(params, cfg, w_in):
    S, Lwp, EP = w_in.shape
    wk = cfg["w_kernel_size"]
    nl = cfg["w_num_layers"]
    Vp = params["cls_w"].shape[1]
    # Keep >= 2 parallel grid steps when possible (v7x second TensorCore).
    Sb = 1 if S <= 1 else min(8, max(1, S // 2))
    Sp = _round_up(S, Sb)
    if Sp != S:
        w_in = jnp.pad(w_in, ((0, Sp - S), (0, 0), (0, 0)))
    out = pl.pallas_call(
        partial(_word_kernel, wk=wk, EP=EP, Lwp=Lwp, n_layers=nl),
        grid=(Sp // Sb,),
        in_specs=[
            pl.BlockSpec((Sb, Lwp, EP), lambda i: (i, 0, 0)),
            pl.BlockSpec((nl, wk, EP, 2 * EP), lambda i: (0, 0, 0, 0)),
            pl.BlockSpec((nl, 1, 2 * EP), lambda i: (0, 0, 0)),
            pl.BlockSpec((EP, Vp), lambda i: (0, 0)),
            pl.BlockSpec((1, Vp), lambda i: (0, 0)),
        ],
        out_specs=pl.BlockSpec((Sb, Lwp, Vp), lambda i: (i, 0, 0)),
        out_shape=jax.ShapeDtypeStruct((Sp, Lwp, Vp), jnp.float32),
        compiler_params=pltpu.CompilerParams(
            dimension_semantics=("parallel",)),
    )(w_in, params["w_conv_w"], params["w_conv_b"],
      params["cls_w"], params["cls_b"])
    return out[:S] if Sp != S else out


# --------------------------- parameter construction ---------------------------

def init_params(key, cfg):
    E, P, F, V = cfg["emb_size"], cfg["proj_size"], cfg["feat_size"], cfg["vocab_len"]
    sk, wk = cfg["s_kernel_size"], cfg["w_kernel_size"]
    nsl, nwl = cfg["s_num_layers"], cfg["w_num_layers"]
    assert P == E, "attention (bmm(proj_feats, s_outputs)) requires proj_size == emb_size"
    EP, PP = _round_up(E, LANE), _round_up(P, LANE)
    Fp, Vp = _round_up(F, LANE), _round_up(V, LANE)
    keys = jax.random.split(key, 8 + nsl + nwl)

    def nrm(k, shape, std):
        return std * jax.random.normal(k, shape, jnp.float32)

    def pad_linear(w, in_segments, out_pad, out_valid):
        # (in, out_valid) f32 -> zero-padded (in_pad, out_pad) bf16
        in_pad = sum(sp for _, sp in in_segments)
        wp = jnp.zeros((in_pad, out_pad), jnp.float32)
        r0, pr0 = 0, 0
        for seg, seg_p in in_segments:
            wp = wp.at[pr0:pr0 + seg, :out_valid].set(w[r0:r0 + seg, :])
            r0 += seg
            pr0 += seg_p
        return wp.astype(MXU_DTYPE)

    def pad_conv(w_oik, in_segments):
        # torch Conv1d weight (2E, Cin, K) -> (K, Cin_pad, 2*EP); GLU value half
        # lands in cols [0:E], gate half in cols [EP:EP+E]; zeros elsewhere.
        w_kio = jnp.transpose(w_oik, (2, 1, 0))
        Kk = w_kio.shape[0]
        cin_p = sum(sp for _, sp in in_segments)
        wp = jnp.zeros((Kk, cin_p, 2 * EP), jnp.float32)
        r0, pr0 = 0, 0
        for seg, seg_p in in_segments:
            wp = wp.at[:, pr0:pr0 + seg, :E].set(w_kio[:, r0:r0 + seg, :E])
            wp = wp.at[:, pr0:pr0 + seg, EP:EP + E].set(w_kio[:, r0:r0 + seg, E:2 * E])
            r0 += seg
            pr0 += seg_p
        return wp

    p = {}
    # project: Linear(F -> P) (+ ReLU in-kernel)
    p["proj_w"] = pad_linear(nrm(keys[0], (F, P), math.sqrt(2.0 / (F + P))),
                             [(F, Fp)], PP, P)
    p["proj_b"] = jnp.zeros((1, PP), jnp.float32)
    # s_res_proj: Linear(P+E -> E), input channel order [proj, emb]
    p["s_res_w"] = pad_linear(nrm(keys[1], (P + E, E), math.sqrt(2.0 / (P + E + E))),
                              [(P, PP), (E, EP)], EP, E)
    p["s_res_b"] = jnp.zeros((1, EP), jnp.float32)
    # gen_topic: Linear(E,E)+ReLU twice
    p["gt_w1"] = pad_linear(nrm(keys[2], (E, E), math.sqrt(2.0 / (2 * E))),
                            [(E, EP)], EP, E)
    p["gt_b1"] = jnp.zeros((1, EP), jnp.float32)
    p["gt_w2"] = pad_linear(nrm(keys[3], (E, E), math.sqrt(2.0 / (2 * E))),
                            [(E, EP)], EP, E)
    p["gt_b2"] = jnp.zeros((1, EP), jnp.float32)
    # stop_classifier: Linear(E -> 2), output lane-padded
    p["stop_w"] = pad_linear(nrm(keys[4], (E, 2), math.sqrt(2.0 / (E + 2))),
                             [(E, EP)], LANE, 2)
    p["stop_b"] = jnp.zeros((1, LANE), jnp.float32)
    # classifier: Linear(E -> V), output lane-padded
    p["cls_w"] = pad_linear(nrm(keys[5], (E, V), math.sqrt(2.0 / (E + V))),
                            [(E, EP)], Vp, V)
    p["cls_b"] = jnp.zeros((1, Vp), jnp.float32)
    # embedding: normal(0, 0.1), padding row zeroed, lane-padded to EP
    emb = 0.1 * jax.random.normal(keys[6], (V, E), jnp.float32)
    emb = emb.at[cfg["pad_idx"]].set(0.0)
    p["embedding"] = jnp.zeros((V, EP), jnp.float32).at[:, :E].set(emb)

    # sCNN layer 0: Conv1d(P+E -> 2E, sk)
    w0 = nrm(keys[8], (2 * E, P + E, sk), math.sqrt(4.0 / (sk * (P + E))))
    p["s_conv0_w"] = pad_conv(w0, [(P, PP), (E, EP)]).astype(MXU_DTYPE)
    p["s_conv0_b"] = jnp.zeros((1, 2 * EP), jnp.float32)
    # sCNN layers 1..n-1: Conv1d(E -> 2E, sk), stacked
    n_rest = max(nsl - 1, 0)
    if n_rest > 0:
        ws = [pad_conv(nrm(keys[8 + 1 + i], (2 * E, E, sk), math.sqrt(4.0 / (sk * E))),
                       [(E, EP)]) for i in range(n_rest)]
        p["s_convr_w"] = jnp.stack(ws).astype(MXU_DTYPE)
        p["s_convr_b"] = jnp.zeros((n_rest, 1, 2 * EP), jnp.float32)
    else:
        p["s_convr_w"] = jnp.zeros((1, sk, EP, 2 * EP), MXU_DTYPE)   # dummy, never read
        p["s_convr_b"] = jnp.zeros((1, 1, 2 * EP), jnp.float32)

    # wCNN layers: Conv1d(E -> 2E, wk), stacked
    wws = [pad_conv(nrm(keys[8 + nsl + i], (2 * E, E, wk), math.sqrt(4.0 / (wk * E))),
                    [(E, EP)]) for i in range(nwl)]
    p["w_conv_w"] = jnp.stack(wws).astype(MXU_DTYPE)
    p["w_conv_b"] = jnp.zeros((nwl, 1, 2 * EP), jnp.float32)
    return p


# --------------------------------- forward ------------------------------------

def dual_cnn_forward(params, cfg, img_feats, para_words,
                     words_mask=None, fake_words=None, fake_words_mask=None):
    # words_mask / fake_words / fake_words_mask are unused, as in PyTorch forward().
    del words_mask, fake_words, fake_words_mask
    B = para_words.shape[0]
    E, F, V = cfg["emb_size"], cfg["feat_size"], cfg["vocab_len"]
    EP, Fp = _round_up(E, LANE), _round_up(F, LANE)
    s_max, w_max = cfg["s_max"], cfg["w_max"]
    Lp = _round_up(s_max, 8)          # sentence positions, sublane-padded
    Lw = w_max + 1
    Lwp = _round_up(Lw, 8)            # word positions (+topic), sublane-padded

    imgp = img_feats if Fp == F else jnp.pad(img_feats, ((0, 0), (0, 0), (0, Fp - F)))

    # embedding gather stays in plain JAX (data-dependent gather).
    emb_tbl = params["embedding"]
    lwe = jnp.take(emb_tbl, para_words, axis=0)                 # (B, s_max, w_max+1, EP)
    # TODO(synk): start token is embedding row 0 (the pad row, zero when
    # pad_idx == 0) — matches the reference's torch.zeros start_words for this config.
    start_embed = jnp.broadcast_to(emb_tbl[0][None, None, :], (B, 1, EP))
    sents_embed = jnp.max(lwe[:, :-1, 1:, :], axis=2)           # (B, s_max-1, EP)
    sents_embed = jnp.concatenate([start_embed, sents_embed], axis=1) * math.sqrt(2.0)
    if Lp != s_max:
        sents_embed = jnp.pad(sents_embed, ((0, 0), (0, Lp - s_max), (0, 0)))

    # fused sentence stage: project+pool + sCNN stack + gen_topic + stop
    topics_p, stop_p = _sentence_stage(params, cfg, imgp, sents_embed)
    sent_topics = topics_p[:, :s_max, :]                        # (B, s_max, EP)
    pred_stop = stop_p[:, :s_max, :2]                           # (B, s_max, 2)

    # fused word stage: all (batch, sentence) pairs batched together
    w_in = jnp.concatenate([sent_topics[:, :, None, :], lwe[:, :, :-1, :]], axis=2)
    w_in = w_in.reshape(B * s_max, Lw, EP)
    if Lwp != Lw:
        w_in = jnp.pad(w_in, ((0, 0), (0, Lwp - Lw), (0, 0)))
    logits = _word_stage(params, cfg, w_in)                     # (B*s_max, Lwp, Vp)
    pred_words = logits[:, 1:1 + w_max, :V].reshape(B, s_max, w_max, V)
    return pred_words, pred_stop


# ----------------------------------- main --------------------------------------

if __name__ == "__main__":
    cfg = dict(emb_size=32, proj_size=32, feat_size=32, vocab_len=16,
               s_max=4, w_max=8, s_kernel_size=3, w_kernel_size=3,
               s_num_layers=2, w_num_layers=2, num_boxes=8, pad_idx=0)

    key = jax.random.PRNGKey(0)
    kp, ki, kw = jax.random.split(key, 3)
    params = init_params(kp, cfg)

    B = 2
    img_feats = jax.random.normal(
        ki, (B, cfg["num_boxes"], cfg["feat_size"]), jnp.float32)
    # para_words: (B, s_max, w_max+1) token ids (leading start/pad slot).
    para_words = jax.random.randint(
        kw, (B, cfg["s_max"], cfg["w_max"] + 1), 0, cfg["vocab_len"], dtype=jnp.int32)

    fwd = jax.jit(lambda f, w: dual_cnn_forward(params, cfg, f, w))
    pred_words, pred_stop = fwd(img_feats, para_words)
    jax.block_until_ready((pred_words, pred_stop))

    assert pred_words.shape == (B, cfg["s_max"], cfg["w_max"], cfg["vocab_len"])
    assert pred_stop.shape == (B, cfg["s_max"], 2)
    assert bool(jnp.all(jnp.isfinite(pred_words))) and bool(jnp.all(jnp.isfinite(pred_stop)))
    print("KERNEL_OK")
</pallas_src>

<mosaic_0001>
module attributes {stable_mosaic.version = 11 : i64} {
  func.func @_sentence_kernel(%arg0: i32, %arg1: memref<1x8x128xf32, #tpu.memory_space<vmem>>, %arg2: memref<1x8x128xf32, #tpu.memory_space<vmem>>, %arg3: memref<128x128xbf16, #tpu.memory_space<vmem>>, %arg4: memref<1x128xf32, #tpu.memory_space<vmem>>, %arg5: memref<256x128xbf16, #tpu.memory_space<vmem>>, %arg6: memref<1x128xf32, #tpu.memory_space<vmem>>, %arg7: memref<3x256x256xbf16, #tpu.memory_space<vmem>>, %arg8: memref<1x256xf32, #tpu.memory_space<vmem>>, %arg9: memref<1x3x128x256xbf16, #tpu.memory_space<vmem>>, %arg10: memref<1x1x256xf32, #tpu.memory_space<vmem>>, %arg11: memref<128x128xbf16, #tpu.memory_space<vmem>>, %arg12: memref<1x128xf32, #tpu.memory_space<vmem>>, %arg13: memref<128x128xbf16, #tpu.memory_space<vmem>>, %arg14: memref<1x128xf32, #tpu.memory_space<vmem>>, %arg15: memref<128x128xbf16, #tpu.memory_space<vmem>>, %arg16: memref<1x128xf32, #tpu.memory_space<vmem>>, %arg17: memref<1x8x128xf32, #tpu.memory_space<vmem>>, %arg18: memref<1x8x128xf32, #tpu.memory_space<vmem>>) attributes {dimension_semantics = [#tpu.dimension_semantics<parallel>], iteration_bounds = array<i64: 2>, scalar_prefetch = 0 : i64, scratch_operands = 0 : i64, tpu.core_type = #tpu.core_type<tc>, window_params = [{transform_indices = @transform_0, window_bounds = array<i64: 1, 8, 128>}, {transform_indices = @transform_1, window_bounds = array<i64: 1, 8, 128>}, {pipeline_mode = #tpu.pipeline_mode<synchronous>, transform_indices = @transform_2, window_bounds = array<i64: 128, 128>}, {pipeline_mode = #tpu.pipeline_mode<synchronous>, transform_indices = @transform_3, window_bounds = array<i64: 1, 128>}, {pipeline_mode = #tpu.pipeline_mode<synchronous>, transform_indices = @transform_4, window_bounds = array<i64: 256, 128>}, {pipeline_mode = #tpu.pipeline_mode<synchronous>, transform_indices = @transform_5, window_bounds = array<i64: 1, 128>}, {pipeline_mode = #tpu.pipeline_mode<synchronous>, transform_indices = @transform_6, window_bounds = array<i64: 3, 256, 256>}, {pipeline_mode = #tpu.pipeline_mode<synchronous>, transform_indices = @transform_7, window_bounds = array<i64: 1, 256>}, {pipeline_mode = #tpu.pipeline_mode<synchronous>, transform_indices = @transform_8, window_bounds = array<i64: 1, 3, 128, 256>}, {pipeline_mode = #tpu.pipeline_mode<synchronous>, transform_indices = @transform_9, window_bounds = array<i64: 1, 1, 256>}, {pipeline_mode = #tpu.pipeline_mode<synchronous>, transform_indices = @transform_10, window_bounds = array<i64: 128, 128>}, {pipeline_mode = #tpu.pipeline_mode<synchronous>, transform_indices = @transform_11, window_bounds = array<i64: 1, 128>}, {pipeline_mode = #tpu.pipeline_mode<synchronous>, transform_indices = @transform_12, window_bounds = array<i64: 128, 128>}, {pipeline_mode = #tpu.pipeline_mode<synchronous>, transform_indices = @transform_13, window_bounds = array<i64: 1, 128>}, {pipeline_mode = #tpu.pipeline_mode<synchronous>, transform_indices = @transform_14, window_bounds = array<i64: 128, 128>}, {pipeline_mode = #tpu.pipeline_mode<synchronous>, transform_indices = @transform_15, window_bounds = array<i64: 1, 128>}, {transform_indices = @transform_16, window_bounds = array<i64: 1, 8, 128>}, {transform_indices = @transform_17, window_bounds = array<i64: 1, 8, 128>}]} {
    %c0 = arith.constant 0 : index
    %c0_0 = arith.constant 0 : index
    %c0_1 = arith.constant 0 : index
    %0 = vector.load %arg1[%c0, %c0_0, %c0_1] : memref<1x8x128xf32, #tpu.memory_space<vmem>>, vector<1x8x128xf32>
    %1 = vector.shape_cast %0 : vector<1x8x128xf32> to vector<8x128xf32>
    %2 = arith.truncf %1 : vector<8x128xf32> to vector<8x128xbf16>
    %c0_2 = arith.constant 0 : index
    %c0_3 = arith.constant 0 : index
    %3 = vector.load %arg3[%c0_2, %c0_3] : memref<128x128xbf16, #tpu.memory_space<vmem>>, vector<128x128xbf16>
    %cst = arith.constant dense<0.000000e+00> : vector<8x128xf32>
    %4 = tpu.matmul %2, %3, %cst {dimension_numbers = #tpu.dot_dimension_numbers<[1], [0], [0], [1], [0, 0, 1, 1], [], []>} : vector<8x128xbf16>, vector<128x128xbf16>, vector<8x128xf32> -> vector<8x128xf32>
    %c0_4 = arith.constant 0 : index
    %c0_5 = arith.constant 0 : index
    %5 = vector.load %arg4[%c0_4, %c0_5] : memref<1x128xf32, #tpu.memory_space<vmem>>, vector<1x128xf32>
    %6 = vector.broadcast %5 : vector<1x128xf32> to vector<8x128xf32>
    %7 = arith.addf %4, %6 : vector<8x128xf32>
    %cst_6 = arith.constant 0.000000e+00 : f32
    %8 = vector.broadcast %cst_6 : f32 to vector<8x128xf32>
    %9 = arith.maximumf %7, %8 : vector<8x128xf32>
    %cst_7 = arith.constant dense<0xFF800000> : vector<128xf32>
    %10 = vector.multi_reduction <maximumf>, %9, %cst_7 [0] : vector<8x128xf32> to vector<128xf32>
    %11 = vector.shape_cast %10 : vector<128xf32> to vector<1x128xf32>
    %cst_8 = arith.constant 0.707106769 : f32
    %12 = vector.broadcast %cst_8 : f32 to vector<1x128xf32>
    %13 = arith.mulf %11, %12 : vector<1x128xf32>
    %14 = arith.truncf %9 : vector<8x128xf32> to vector<8x128xbf16>
    %c0_9 = arith.constant 0 : index
    %c0_10 = arith.constant 0 : index
    %c0_11 = arith.constant 0 : index
    %15 = vector.load %arg2[%c0_9, %c0_10, %c0_11] : memref<1x8x128xf32, #tpu.memory_space<vmem>>, vector<1x8x128xf32>
    %16 = vector.shape_cast %15 : vector<1x8x128xf32> to vector<8x128xf32>
    %17 = vector.shape_cast %13 : vector<1x128xf32> to vector<1x128xf32>
    %18 = vector.broadcast %17 : vector<1x128xf32> to vector<8x128xf32>
    %19 = tpu.concatenate %18, %16 in 1 : vector<8x128xf32>, vector<8x128xf32> -> vector<8x256xf32>
    %20 = arith.truncf %19 : vector<8x256xf32> to vector<8x256xbf16>
    %c0_12 = arith.constant 0 : index
    %c0_13 = arith.constant 0 : index
    %21 = vector.load %arg5[%c0_12, %c0_13] : memref<256x128xbf16, #tpu.memory_space<vmem>>, vector<256x128xbf16>
    %cst_14 = arith.constant dense<0.000000e+00> : vector<8x128xf32>
    %22 = tpu.matmul %20, %21, %cst_14 {dimension_numbers = #tpu.dot_dimension_numbers<[1], [0], [0], [1], [0, 0, 1, 1], [], []>} : vector<8x256xbf16>, vector<256x128xbf16>, vector<8x128xf32> -> vector<8x128xf32>
    %c0_15 = arith.constant 0 : index
    %c0_16 = arith.constant 0 : index
    %23 = vector.load %arg6[%c0_15, %c0_16] : memref<1x128xf32, #tpu.memory_space<vmem>>, vector<1x128xf32>
    %24 = vector.broadcast %23 : vector<1x128xf32> to vector<8x128xf32>
    %25 = arith.addf %22, %24 : vector<8x128xf32>
    %26 = tpu.iota {dimensions = array<i32: 1>} : vector<8x128xi32>
    %c0_17 = arith.constant 0 : index
    %c0_18 = arith.constant 0 : index
    %27 = vector.load %arg8[%c0_17, %c0_18] : memref<1x256xf32, #tpu.memory_space<vmem>>, vector<1x256xf32>
    %28 = arith.truncf %19 : vector<8x256xf32> to vector<8x256xbf16>
    %c2 = arith.constant 2 : index
    %c0_19 = arith.constant 0 : index
    %c0_20 = arith.constant 0 : index
    %29 = vector.load %arg7[%c2, %c0_19, %c0_20] : memref<3x256x256xbf16, #tpu.memory_space<vmem>>, vector<1x256x256xbf16>
    %30 = vector.shape_cast %29 : vector<1x256x256xbf16> to vector<256x256xbf16>
    %cst_21 = arith.constant dense<0.000000e+00> : vector<8x256xf32>
    %31 = tpu.matmul %28, %30, %cst_21 {dimension_numbers = #tpu.dot_dimension_numbers<[1], [0], [0], [1], [0, 0, 1, 1], [], []>} : vector<8x256xbf16>, vector<256x256xbf16>, vector<8x256xf32> -> vector<8x256xf32>
    %32 = tpu.iota {dimensions = array<i32: 0>} : vector<8x256xi32>
    %c1_i32 = arith.constant 1 : i32
    %33 = vector.broadcast %c1_i32 : i32 to vector<8x256xi32>
    %34 = arith.cmpi sge, %32, %33 : vector<8x256xi32>
    %c1_i32_22 = arith.constant 1 : i32
    %35 = tpu.dynamic_rotate %19 by %c1_i32_22 dim 0 : vector<8x256xf32>, i32 -> vector<8x256xf32>
    %cst_23 = arith.constant 0.000000e+00 : f32
    %36 = vector.broadcast %cst_23 : f32 to vector<8x256xf32>
    %37 = arith.select %34, %35, %36 : vector<8x256xi1>, vector<8x256xf32>
    %38 = arith.truncf %37 : vector<8x256xf32> to vector<8x256xbf16>
    %c1 = arith.constant 1 : index
    %c0_24 = arith.constant 0 : index
    %c0_25 = arith.constant 0 : index
    %39 = vector.load %arg7[%c1, %c0_24, %c0_25] : memref<3x256x256xbf16, #tpu.memory_space<vmem>>, vector<1x256x256xbf16>
    %40 = vector.shape_cast %39 : vector<1x256x256xbf16> to vector<256x256xbf16>
    %cst_26 = arith.constant dense<0.000000e+00> : vector<8x256xf32>
    %41 = tpu.matmul %38, %40, %cst_26 {dimension_numbers = #tpu.dot_dimension_numbers<[1], [0], [0], [1], [0, 0, 1, 1], [], []>} : vector<8x256xbf16>, vector<256x256xbf16>, vector<8x256xf32> -> vector<8x256xf32>
    %42 = arith.addf %31, %41 : vector<8x256xf32>
    %c2_i32 = arith.constant 2 : i32
    %43 = vector.broadcast %c2_i32 : i32 to vector<8x256xi32>
    %44 = arith.cmpi sge, %32, %43 : vector<8x256xi32>
    %c2_i32_27 = arith.constant 2 : i32
    %45 = tpu.dynamic_rotate %19 by %c2_i32_27 dim 0 : vector<8x256xf32>, i32 -> vector<8x256xf32>
    %cst_28 = arith.constant 0.000000e+00 : f32
    %46 = vector.broadcast %cst_28 : f32 to vector<8x256xf32>
    %47 = arith.select %44, %45, %46 : vector<8x256xi1>, vector<8x256xf32>
    %48 = arith.truncf %47 : vector<8x256xf32> to vector<8x256xbf16>
    %c0_29 = arith.constant 0 : index
    %c0_30 = arith.constant 0 : index
    %c0_31 = arith.constant 0 : index
    %49 = vector.load %arg7[%c0_29, %c0_30, %c0_31] : memref<3x256x256xbf16, #tpu.memory_space<vmem>>, vector<1x256x256xbf16>
    %50 = vector.shape_cast %49 : vector<1x256x256xbf16> to vector<256x256xbf16>
    %cst_32 = arith.constant dense<0.000000e+00> : vector<8x256xf32>
    %51 = tpu.matmul %48, %50, %cst_32 {dimension_numbers = #tpu.dot_dimension_numbers<[1], [0], [0], [1], [0, 0, 1, 1], [], []>} : vector<8x256xbf16>, vector<256x256xbf16>, vector<8x256xf32> -> vector<8x256xf32>
    %52 = arith.addf %42, %51 : vector<8x256xf32>
    %53 = vector.broadcast %27 : vector<1x256xf32> to vector<8x256xf32>
    %54 = arith.addf %52, %53 : vector<8x256xf32>
    %55 = vector.extract_strided_slice %54 {offsets = [0, 0], sizes = [8, 128], strides = [1, 1]} : vector<8x256xf32> to vector<8x128xf32>
    %56 = vector.extract_strided_slice %54 {offsets = [0, 128], sizes = [8, 128], strides = [1, 1]} : vector<8x256xf32> to vector<8x128xf32>
    %57 = arith.negf %56 : vector<8x128xf32>
    %58 = math.exp %57 : vector<8x128xf32>
    %cst_33 = arith.constant 1.000000e+00 : f32
    %59 = vector.broadcast %cst_33 : f32 to vector<8x128xf32>
    %60 = arith.addf %59, %58 : vector<8x128xf32>
    %61 = arith.divf %59, %60 : vector<8x128xf32>
    %62 = arith.mulf %55, %61 : vector<8x128xf32>
    %cst_34 = arith.constant dense<0.000000e+00> : vector<8xf32>
    %63 = vector.multi_reduction <add>, %62, %cst_34 [1] : vector<8x128xf32> to vector<8xf32>
    %64 = vector.shape_cast %63 : vector<8xf32> to vector<8x1xf32>
    %cst_35 = arith.constant 3.125000e-02 : f32
    %65 = vector.broadcast %cst_35 : f32 to vector<8x1xf32>
    %66 = arith.mulf %64, %65 : vector<8x1xf32>
    %c32_i32 = arith.constant 32 : i32
    %67 = vector.broadcast %c32_i32 : i32 to vector<8x128xi32>
    %68 = arith.cmpi slt, %26, %67 : vector<8x128xi32>
    %69 = vector.broadcast %66 : vector<8x1xf32> to vector<8x128xf32>
    %70 = arith.subf %62, %69 : vector<8x128xf32>
    %cst_36 = arith.constant 0.000000e+00 : f32
    %71 = vector.broadcast %cst_36 : f32 to vector<8x128xf32>
    %72 = arith.select %68, %70, %71 : vector<8x128xi1>, vector<8x128xf32>
    %73 = arith.mulf %72, %72 : vector<8x128xf32>
    %cst_37 = arith.constant dense<0.000000e+00> : vector<8xf32>
    %74 = vector.multi_reduction <add>, %73, %cst_37 [1] : vector<8x128xf32> to vector<8xf32>
    %75 = vector.shape_cast %74 : vector<8xf32> to vector<8x1xf32>
    %cst_38 = arith.constant 3.125000e-02 : f32
    %76 = vector.broadcast %cst_38 : f32 to vector<8x1xf32>
    %77 = arith.mulf %75, %76 : vector<8x1xf32>
    %cst_39 = arith.constant 9.99999974E-6 : f32
    %78 = vector.broadcast %cst_39 : f32 to vector<8x1xf32>
    %79 = arith.addf %77, %78 : vector<8x1xf32>
    %80 = math.rsqrt %79 : vector<8x1xf32>
    %81 = vector.broadcast %80 : vector<8x1xf32> to vector<8x128xf32>
    %82 = arith.mulf %72, %81 : vector<8x128xf32>
    %83 = arith.truncf %82 : vector<8x128xf32> to vector<8x128xbf16>
    %cst_40 = arith.constant dense<0.000000e+00> : vector<8x8xf32>
    %84 = tpu.matmul %83, %14, %cst_40 {dimension_numbers = #tpu.dot_dimension_numbers<[1], [1], [0], [0], [0, 0, 1, 0], [], []>} : vector<8x128xbf16>, vector<8x128xbf16>, vector<8x8xf32> -> vector<8x8xf32>
    %cst_41 = arith.constant 0.176776692 : f32
    %85 = vector.broadcast %cst_41 : f32 to vector<8x8xf32>
    %86 = arith.mulf %84, %85 : vector<8x8xf32>
    %cst_42 = arith.constant dense<0xFF800000> : vector<8xf32>
    %87 = vector.multi_reduction <maximumf>, %86, %cst_42 [1] : vector<8x8xf32> to vector<8xf32>
    %88 = vector.shape_cast %87 : vector<8xf32> to vector<8x1xf32>
    %89 = vector.broadcast %88 : vector<8x1xf32> to vector<8x8xf32>
    %90 = arith.subf %86, %89 : vector<8x8xf32>
    %91 = math.exp %90 : vector<8x8xf32>
    %cst_43 = arith.constant dense<0.000000e+00> : vector<8xf32>
    %92 = vector.multi_reduction <add>, %91, %cst_43 [1] : vector<8x8xf32> to vector<8xf32>
    %93 = vector.shape_cast %92 : vector<8xf32> to vector<8x1xf32>
    %94 = vector.broadcast %93 : vector<8x1xf32> to vector<8x8xf32>
    %95 = arith.divf %91, %94 : vector<8x8xf32>
    %96 = arith.truncf %95 : vector<8x8xf32> to vector<8x8xbf16>
    %cst_44 = arith.constant dense<0.000000e+00> : vector<8x128xf32>
    %97 = tpu.matmul %96, %14, %cst_44 {dimension_numbers = #tpu.dot_dimension_numbers<[1], [0], [0], [1], [0, 0, 1, 1], [], []>} : vector<8x8xbf16>, vector<8x128xbf16>, vector<8x128xf32> -> vector<8x128xf32>
    %98 = arith.addf %82, %97 : vector<8x128xf32>
    %cst_45 = arith.constant 0.707106769 : f32
    %99 = vector.broadcast %cst_45 : f32 to vector<8x128xf32>
    %100 = arith.mulf %98, %99 : vector<8x128xf32>
    %101 = arith.addf %100, %25 : vector<8x128xf32>
    %cst_46 = arith.constant 0.707106769 : f32
    %102 = vector.broadcast %cst_46 : f32 to vector<8x128xf32>
    %103 = arith.mulf %101, %102 : vector<8x128xf32>
    %c0_47 = arith.constant 0 : index
    %c0_48 = arith.constant 0 : index
    %c0_49 = arith.constant 0 : index
    %104 = vector.load %arg10[%c0_47, %c0_48, %c0_49] : memref<1x1x256xf32, #tpu.memory_space<vmem>>, vector<1x1x256xf32>
    %105 = vector.shape_cast %104 : vector<1x1x256xf32> to vector<1x256xf32>
    %106 = arith.truncf %103 : vector<8x128xf32> to vector<8x128xbf16>
    %c0_50 = arith.constant 0 : index
    %c2_51 = arith.constant 2 : index
    %c0_52 = arith.constant 0 : index
    %c0_53 = arith.constant 0 : index
    %107 = vector.load %arg9[%c0_50, %c2_51, %c0_52, %c0_53] : memref<1x3x128x256xbf16, #tpu.memory_space<vmem>>, vector<1x1x128x256xbf16>
    %108 = vector.shape_cast %107 : vector<1x1x128x256xbf16> to vector<128x256xbf16>
    %cst_54 = arith.constant dense<0.000000e+00> : vector<8x256xf32>
    %109 = tpu.matmul %106, %108, %cst_54 {dimension_numbers = #tpu.dot_dimension_numbers<[1], [0], [0], [1], [0, 0, 1, 1], [], []>} : vector<8x128xbf16>, vector<128x256xbf16>, vector<8x256xf32> -> vector<8x256xf32>
    %110 = tpu.iota {dimensions = array<i32: 0>} : vector<8x128xi32>
    %c1_i32_55 = arith.constant 1 : i32
    %111 = vector.broadcast %c1_i32_55 : i32 to vector<8x128xi32>
    %112 = arith.cmpi sge, %110, %111 : vector<8x128xi32>
    %c1_i32_56 = arith.constant 1 : i32
    %113 = tpu.dynamic_rotate %103 by %c1_i32_56 dim 0 : vector<8x128xf32>, i32 -> vector<8x128xf32>
    %cst_57 = arith.constant 0.000000e+00 : f32
    %114 = vector.broadcast %cst_57 : f32 to vector<8x128xf32>
    %115 = arith.select %112, %113, %114 : vector<8x128xi1>, vector<8x128xf32>
    %116 = arith.truncf %115 : vector<8x128xf32> to vector<8x128xbf16>
    %c0_58 = arith.constant 0 : index
    %c1_59 = arith.constant 1 : index
    %c0_60 = arith.constant 0 : index
    %c0_61 = arith.constant 0 : index
    %117 = vector.load %arg9[%c0_58, %c1_59, %c0_60, %c0_61] : memref<1x3x128x256xbf16, #tpu.memory_space<vmem>>, vector<1x1x128x256xbf16>
    %118 = vector.shape_cast %117 : vector<1x1x128x256xbf16> to vector<128x256xbf16>
    %cst_62 = arith.constant dense<0.000000e+00> : vector<8x256xf32>
    %119 = tpu.matmul %116, %118, %cst_62 {dimension_numbers = #tpu.dot_dimension_numbers<[1], [0], [0], [1], [0, 0, 1, 1], [], []>} : vector<8x128xbf16>, vector<128x256xbf16>, vector<8x256xf32> -> vector<8x256xf32>
    %120 = arith.addf %109, %119 : vector<8x256xf32>
    %c2_i32_63 = arith.constant 2 : i32
    %121 = vector.broadcast %c2_i32_63 : i32 to vector<8x128xi32>
    %122 = arith.cmpi sge, %110, %121 : vector<8x128xi32>
    %c2_i32_64 = arith.constant 2 : i32
    %123 = tpu.dynamic_rotate %103 by %c2_i32_64 dim 0 : vector<8x128xf32>, i32 -> vector<8x128xf32>
    %cst_65 = arith.constant 0.000000e+00 : f32
    %124 = vector.broadcast %cst_65 : f32 to vector<8x128xf32>
    %125 = arith.select %122, %123, %124 : vector<8x128xi1>, vector<8x128xf32>
    %126 = arith.truncf %125 : vector<8x128xf32> to vector<8x128xbf16>
    %c0_66 = arith.constant 0 : index
    %c0_67 = arith.constant 0 : index
    %c0_68 = arith.constant 0 : index
    %c0_69 = arith.constant 0 : index
    %127 = vector.load %arg9[%c0_66, %c0_67, %c0_68, %c0_69] : memref<1x3x128x256xbf16, #tpu.memory_space<vmem>>, vector<1x1x128x256xbf16>
    %128 = vector.shape_cast %127 : vector<1x1x128x256xbf16> to vector<128x256xbf16>
    %cst_70 = arith.constant dense<0.000000e+00> : vector<8x256xf32>
    %129 = tpu.matmul %126, %128, %cst_70 {dimension_numbers = #tpu.dot_dimension_numbers<[1], [0], [0], [1], [0, 0, 1, 1], [], []>} : vector<8x128xbf16>, vector<128x256xbf16>, vector<8x256xf32> -> vector<8x256xf32>
    %130 = arith.addf %120, %129 : vector<8x256xf32>
    %131 = vector.broadcast %105 : vector<1x256xf32> to vector<8x256xf32>
    %132 = arith.addf %130, %131 : vector<8x256xf32>
    %133 = vector.extract_strided_slice %132 {offsets = [0, 0], sizes = [8, 128], strides = [1, 1]} : vector<8x256xf32> to vector<8x128xf32>
    %134 = vector.extract_strided_slice %132 {offsets = [0, 128], sizes = [8, 128], strides = [1, 1]} : vector<8x256xf32> to vector<8x128xf32>
    %135 = arith.negf %134 : vector<8x128xf32>
    %136 = math.exp %135 : vector<8x128xf32>
    %cst_71 = arith.constant 1.000000e+00 : f32
    %137 = vector.broadcast %cst_71 : f32 to vector<8x128xf32>
    %138 = arith.addf %137, %136 : vector<8x128xf32>
    %139 = arith.divf %137, %138 : vector<8x128xf32>
    %140 = arith.mulf %133, %139 : vector<8x128xf32>
    %cst_72 = arith.constant dense<0.000000e+00> : vector<8xf32>
    %141 = vector.multi_reduction <add>, %140, %cst_72 [1] : vector<8x128xf32> to vector<8xf32>
    %142 = vector.shape_cast %141 : vector<8xf32> to vector<8x1xf32>
    %cst_73 = arith.constant 3.125000e-02 : f32
    %143 = vector.broadcast %cst_73 : f32 to vector<8x1xf32>
    %144 = arith.mulf %142, %143 : vector<8x1xf32>
    %c32_i32_74 = arith.constant 32 : i32
    %145 = vector.broadcast %c32_i32_74 : i32 to vector<8x128xi32>
    %146 = arith.cmpi slt, %26, %145 : vector<8x128xi32>
    %147 = vector.broadcast %144 : vector<8x1xf32> to vector<8x128xf32>
    %148 = arith.subf %140, %147 : vector<8x128xf32>
    %cst_75 = arith.constant 0.000000e+00 : f32
    %149 = vector.broadcast %cst_75 : f32 to vector<8x128xf32>
    %150 = arith.select %146, %148, %149 : vector<8x128xi1>, vector<8x128xf32>
    %151 = arith.mulf %150, %150 : vector<8x128xf32>
    %cst_76 = arith.constant dense<0.000000e+00> : vector<8xf32>
    %152 = vector.multi_reduction <add>, %151, %cst_76 [1] : vector<8x128xf32> to vector<8xf32>
    %153 = vector.shape_cast %152 : vector<8xf32> to vector<8x1xf32>
    %cst_77 = arith.constant 3.125000e-02 : f32
    %154 = vector.broadcast %cst_77 : f32 to vector<8x1xf32>
    %155 = arith.mulf %153, %154 : vector<8x1xf32>
    %cst_78 = arith.constant 9.99999974E-6 : f32
    %156 = vector.broadcast %cst_78 : f32 to vector<8x1xf32>
    %157 = arith.addf %155, %156 : vector<8x1xf32>
    %158 = math.rsqrt %157 : vector<8x1xf32>
    %159 = vector.broadcast %158 : vector<8x1xf32> to vector<8x128xf32>
    %160 = arith.mulf %150, %159 : vector<8x128xf32>
    %161 = arith.truncf %160 : vector<8x128xf32> to vector<8x128xbf16>
    %cst_79 = arith.constant dense<0.000000e+00> : vector<8x8xf32>
    %162 = tpu.matmul %161, %14, %cst_79 {dimension_numbers = #tpu.dot_dimension_numbers<[1], [1], [0], [0], [0, 0, 1, 0], [], []>} : vector<8x128xbf16>, vector<8x128xbf16>, vector<8x8xf32> -> vector<8x8xf32>
    %cst_80 = arith.constant 0.176776692 : f32
    %163 = vector.broadcast %cst_80 : f32 to vector<8x8xf32>
    %164 = arith.mulf %162, %163 : vector<8x8xf32>
    %cst_81 = arith.constant dense<0xFF800000> : vector<8xf32>
    %165 = vector.multi_reduction <maximumf>, %164, %cst_81 [1] : vector<8x8xf32> to vector<8xf32>
    %166 = vector.shape_cast %165 : vector<8xf32> to vector<8x1xf32>
    %167 = vector.broadcast %166 : vector<8x1xf32> to vector<8x8xf32>
    %168 = arith.subf %164, %167 : vector<8x8xf32>
    %169 = math.exp %168 : vector<8x8xf32>
    %cst_82 = arith.constant dense<0.000000e+00> : vector<8xf32>
    %170 = vector.multi_reduction <add>, %169, %cst_82 [1] : vector<8x8xf32> to vector<8xf32>
    %171 = vector.shape_cast %170 : vector<8xf32> to vector<8x1xf32>
    %172 = vector.broadcast %171 : vector<8x1xf32> to vector<8x8xf32>
    %173 = arith.divf %169, %172 : vector<8x8xf32>
    %174 = arith.truncf %173 : vector<8x8xf32> to vector<8x8xbf16>
    %cst_83 = arith.constant dense<0.000000e+00> : vector<8x128xf32>
    %175 = tpu.matmul %174, %14, %cst_83 {dimension_numbers = #tpu.dot_dimension_numbers<[1], [0], [0], [1], [0, 0, 1, 1], [], []>} : vector<8x8xbf16>, vector<8x128xbf16>, vector<8x128xf32> -> vector<8x128xf32>
    %176 = arith.addf %160, %175 : vector<8x128xf32>
    %cst_84 = arith.constant 0.707106769 : f32
    %177 = vector.broadcast %cst_84 : f32 to vector<8x128xf32>
    %178 = arith.mulf %176, %177 : vector<8x128xf32>
    %179 = arith.addf %178, %103 : vector<8x128xf32>
    %cst_85 = arith.constant 0.707106769 : f32
    %180 = vector.broadcast %cst_85 : f32 to vector<8x128xf32>
    %181 = arith.mulf %179, %180 : vector<8x128xf32>
    %182 = arith.truncf %181 : vector<8x128xf32> to vector<8x128xbf16>
    %c0_86 = arith.constant 0 : index
    %c0_87 = arith.constant 0 : index
    %183 = vector.load %arg11[%c0_86, %c0_87] : memref<128x128xbf16, #tpu.memory_space<vmem>>, vector<128x128xbf16>
    %cst_88 = arith.constant dense<0.000000e+00> : vector<8x128xf32>
    %184 = tpu.matmul %182, %183, %cst_88 {dimension_numbers = #tpu.dot_dimension_numbers<[1], [0], [0], [1], [0, 0, 1, 1], [], []>} : vector<8x128xbf16>, vector<128x128xbf16>, vector<8x128xf32> -> vector<8x128xf32>
    %c0_89 = arith.constant 0 : index
    %c0_90 = arith.constant 0 : index
    %185 = vector.load %arg12[%c0_89, %c0_90] : memref<1x128xf32, #tpu.memory_space<vmem>>, vector<1x128xf32>
    %186 = vector.broadcast %185 : vector<1x128xf32> to vector<8x128xf32>
    %187 = arith.addf %184, %186 : vector<8x128xf32>
    %cst_91 = arith.constant 0.000000e+00 : f32
    %188 = vector.broadcast %cst_91 : f32 to vector<8x128xf32>
    %189 = arith.maximumf %187, %188 : vector<8x128xf32>
    %190 = arith.truncf %189 : vector<8x128xf32> to vector<8x128xbf16>
    %c0_92 = arith.constant 0 : index
    %c0_93 = arith.constant 0 : index
    %191 = vector.load %arg13[%c0_92, %c0_93] : memref<128x128xbf16, #tpu.memory_space<vmem>>, vector<128x128xbf16>
    %cst_94 = arith.constant dense<0.000000e+00> : vector<8x128xf32>
    %192 = tpu.matmul %190, %191, %cst_94 {dimension_numbers = #tpu.dot_dimension_numbers<[1], [0], [0], [1], [0, 0, 1, 1], [], []>} : vector<8x128xbf16>, vector<128x128xbf16>, vector<8x128xf32> -> vector<8x128xf32>
    %c0_95 = arith.constant 0 : index
    %c0_96 = arith.constant 0 : index
    %193 = vector.load %arg14[%c0_95, %c0_96] : memref<1x128xf32, #tpu.memory_space<vmem>>, vector<1x128xf32>
    %194 = vector.broadcast %193 : vector<1x128xf32> to vector<8x128xf32>
    %195 = arith.addf %192, %194 : vector<8x128xf32>
    %cst_97 = arith.constant 0.000000e+00 : f32
    %196 = vector.broadcast %cst_97 : f32 to vector<8x128xf32>
    %197 = arith.maximumf %195, %196 : vector<8x128xf32>
    %198 = arith.truncf %197 : vector<8x128xf32> to vector<8x128xbf16>
    %c0_98 = arith.constant 0 : index
    %c0_99 = arith.constant 0 : index
    %199 = vector.load %arg15[%c0_98, %c0_99] : memref<128x128xbf16, #tpu.memory_space<vmem>>, vector<128x128xbf16>
    %cst_100 = arith.constant dense<0.000000e+00> : vector<8x128xf32>
    %200 = tpu.matmul %198, %199, %cst_100 {dimension_numbers = #tpu.dot_dimension_numbers<[1], [0], [0], [1], [0, 0, 1, 1], [], []>} : vector<8x128xbf16>, vector<128x128xbf16>, vector<8x128xf32> -> vector<8x128xf32>
    %c0_101 = arith.constant 0 : index
    %c0_102 = arith.constant 0 : index
    %201 = vector.load %arg16[%c0_101, %c0_102] : memref<1x128xf32, #tpu.memory_space<vmem>>, vector<1x128xf32>
    %202 = vector.broadcast %201 : vector<1x128xf32> to vector<8x128xf32>
    %203 = arith.addf %200, %202 : vector<8x128xf32>
    %c0_103 = arith.constant 0 : index
    %c0_104 = arith.constant 0 : index
    %c0_105 = arith.constant 0 : index
    %204 = vector.load %arg17[%c0_103, %c0_104, %c0_105] : memref<1x8x128xf32, #tpu.memory_space<vmem>>, vector<1x8x128xf32>
    %205 = vector.shape_cast %204 : vector<1x8x128xf32> to vector<8x128xf32>
    %206 = vector.shape_cast %197 : vector<8x128xf32> to vector<1x8x128xf32>
    tpu.vector_store %arg17[%c0_103, %c0_104, %c0_105], %206 {strides = array<i32>} : memref<1x8x128xf32, #tpu.memory_space<vmem>>, vector<1x8x128xf32>,
    %c0_106 = arith.constant 0 : index
    %c0_107 = arith.constant 0 : index
    %c0_108 = arith.constant 0 : index
    %207 = vector.load %arg18[%c0_106, %c0_107, %c0_108] : memref<1x8x128xf32, #tpu.memory_space<vmem>>, vector<1x8x128xf32>
    %208 = vector.shape_cast %207 : vector<1x8x128xf32> to vector<8x128xf32>
    %209 = vector.shape_cast %203 : vector<8x128xf32> to vector<1x8x128xf32>
    tpu.vector_store %arg18[%c0_106, %c0_107, %c0_108], %209 {strides = array<i32>} : memref<1x8x128xf32, #tpu.memory_space<vmem>>, vector<1x8x128xf32>,
    return
  }
  func.func @transform_0(%arg0: i32) -> (i32, i32, i32) {
    %c0_i32 = arith.constant 0 : i32
    %c0_i32_0 = arith.constant 0 : i32
    %c0_i32_1 = arith.constant 0 : i32
    return %arg0, %c0_i32, %c0_i32_0 : i32, i32, i32
  }
  func.func @transform_1(%arg0: i32) -> (i32, i32, i32) {
    %c0_i32 = arith.constant 0 : i32
    %c0_i32_0 = arith.constant 0 : i32
    %c0_i32_1 = arith.constant 0 : i32
    return %arg0, %c0_i32, %c0_i32_0 : i32, i32, i32
  }
  func.func @transform_2(%arg0: i32) -> (i32, i32) {
    %c0_i32 = arith.constant 0 : i32
    %c0_i32_0 = arith.constant 0 : i32
    %c0_i32_1 = arith.constant 0 : i32
    return %c0_i32, %c0_i32_0 : i32, i32
  }
  func.func @transform_3(%arg0: i32) -> (i32, i32) {
    %c0_i32 = arith.constant 0 : i32
    %c0_i32_0 = arith.constant 0 : i32
    %c0_i32_1 = arith.constant 0 : i32
    return %c0_i32, %c0_i32_0 : i32, i32
  }
  func.func @transform_4(%arg0: i32) -> (i32, i32) {
    %c0_i32 = arith.constant 0 : i32
    %c0_i32_0 = arith.constant 0 : i32
    %c0_i32_1 = arith.constant 0 : i32
    return %c0_i32, %c0_i32_0 : i32, i32
  }
  func.func @transform_5(%arg0: i32) -> (i32, i32) {
    %c0_i32 = arith.constant 0 : i32
    %c0_i32_0 = arith.constant 0 : i32
    %c0_i32_1 = arith.constant 0 : i32
    return %c0_i32, %c0_i32_0 : i32, i32
  }
  func.func @transform_6(%arg0: i32) -> (i32, i32, i32) {
    %c0_i32 = arith.constant 0 : i32
    %c0_i32_0 = arith.constant 0 : i32
    %c0_i32_1 = arith.constant 0 : i32
    %c0_i32_2 = arith.constant 0 : i32
    return %c0_i32, %c0_i32_0, %c0_i32_1 : i32, i32, i32
  }
  func.func @transform_7(%arg0: i32) -> (i32, i32) {
    %c0_i32 = arith.constant 0 : i32
    %c0_i32_0 = arith.constant 0 : i32
    %c0_i32_1 = arith.constant 0 : i32
    return %c0_i32, %c0_i32_0 : i32, i32
  }
  func.func @transform_8(%arg0: i32) -> (i32, i32, i32, i32) {
    %c0_i32 = arith.constant 0 : i32
    %c0_i32_0 = arith.constant 0 : i32
    %c0_i32_1 = arith.constant 0 : i32
    %c0_i32_2 = arith.constant 0 : i32
    %c0_i32_3 = arith.constant 0 : i32
    return %c0_i32, %c0_i32_0, %c0_i32_1, %c0_i32_2 : i32, i32, i32, i32
  }
  func.func @transform_9(%arg0: i32) -> (i32, i32, i32) {
    %c0_i32 = arith.constant 0 : i32
    %c0_i32_0 = arith.constant 0 : i32
    %c0_i32_1 = arith.constant 0 : i32
    %c0_i32_2 = arith.constant 0 : i32
    return %c0_i32, %c0_i32_0, %c0_i32_1 : i32, i32, i32
  }
  func.func @transform_10(%arg0: i32) -> (i32, i32) {
    %c0_i32 = arith.constant 0 : i32
    %c0_i32_0 = arith.constant 0 : i32
    %c0_i32_1 = arith.constant 0 : i32
    return %c0_i32, %c0_i32_0 : i32, i32
  }
  func.func @transform_11(%arg0: i32) -> (i32, i32) {
    %c0_i32 = arith.constant 0 : i32
    %c0_i32_0 = arith.constant 0 : i32
    %c0_i32_1 = arith.constant 0 : i32
    return %c0_i32, %c0_i32_0 : i32, i32
  }
  func.func @transform_12(%arg0: i32) -> (i32, i32) {
    %c0_i32 = arith.constant 0 : i32
    %c0_i32_0 = arith.constant 0 : i32
    %c0_i32_1 = arith.constant 0 : i32
    return %c0_i32, %c0_i32_0 : i32, i32
  }
  func.func @transform_13(%arg0: i32) -> (i32, i32) {
    %c0_i32 = arith.constant 0 : i32
    %c0_i32_0 = arith.constant 0 : i32
    %c0_i32_1 = arith.constant 0 : i32
    return %c0_i32, %c0_i32_0 : i32, i32
  }
  func.func @transform_14(%arg0: i32) -> (i32, i32) {
    %c0_i32 = arith.constant 0 : i32
    %c0_i32_0 = arith.constant 0 : i32
    %c0_i32_1 = arith.constant 0 : i32
    return %c0_i32, %c0_i32_0 : i32, i32
  }
  func.func @transform_15(%arg0: i32) -> (i32, i32) {
    %c0_i32 = arith.constant 0 : i32
    %c0_i32_0 = arith.constant 0 : i32
    %c0_i32_1 = arith.constant 0 : i32
    return %c0_i32, %c0_i32_0 : i32, i32
  }
  func.func @transform_16(%arg0: i32) -> (i32, i32, i32) {
    %c0_i32 = arith.constant 0 : i32
    %c0_i32_0 = arith.constant 0 : i32
    %c0_i32_1 = arith.constant 0 : i32
    return %arg0, %c0_i32, %c0_i32_0 : i32, i32, i32
  }
  func.func @transform_17(%arg0: i32) -> (i32, i32, i32) {
    %c0_i32 = arith.constant 0 : i32
    %c0_i32_0 = arith.constant 0 : i32
    %c0_i32_1 = arith.constant 0 : i32
    return %arg0, %c0_i32, %c0_i32_0 : i32, i32, i32
  }
}

module attributes {stable_mosaic.version = 11 : i64} {
  func.func @_word_kernel(%arg0: i32, %arg1: memref<4x16x128xf32, #tpu.memory_space<vmem>>, %arg2: memref<2x3x128x256xbf16, #tpu.memory_space<vmem>>, %arg3: memref<2x1x256xf32, #tpu.memory_space<vmem>>, %arg4: memref<128x128xbf16, #tpu.memory_space<vmem>>, %arg5: memref<1x128xf32, #tpu.memory_space<vmem>>, %arg6: memref<4x16x128xf32, #tpu.memory_space<vmem>>) attributes {dimension_semantics = [#tpu.dimension_semantics<parallel>], iteration_bounds = array<i64: 2>, scalar_prefetch = 0 : i64, scratch_operands = 0 : i64, tpu.core_type = #tpu.core_type<tc>, window_params = [{transform_indices = @transform_0, window_bounds = array<i64: 4, 16, 128>}, {pipeline_mode = #tpu.pipeline_mode<synchronous>, transform_indices = @transform_1, window_bounds = array<i64: 2, 3, 128, 256>}, {pipeline_mode = #tpu.pipeline_mode<synchronous>, transform_indices = @transform_2, window_bounds = array<i64: 2, 1, 256>}, {pipeline_mode = #tpu.pipeline_mode<synchronous>, transform_indices = @transform_3, window_bounds = array<i64: 128, 128>}, {pipeline_mode = #tpu.pipeline_mode<synchronous>, transform_indices = @transform_4, window_bounds = array<i64: 1, 128>}, {transform_indices = @transform_5, window_bounds = array<i64: 4, 16, 128>}]} {
    %c0 = arith.constant 0 : index
    %c0_0 = arith.constant 0 : index
    %c0_1 = arith.constant 0 : index
    %0 = vector.load %arg1[%c0, %c0_0, %c0_1] : memref<4x16x128xf32, #tpu.memory_space<vmem>>, vector<4x16x128xf32>
    %1 = vector.shape_cast %0 : vector<4x16x128xf32> to vector<64x128xf32>
    %c0_2 = arith.constant 0 : index
    %c0_3 = arith.constant 0 : index
    %c0_4 = arith.constant 0 : index
    %2 = vector.load %arg3[%c0_2, %c0_3, %c0_4] : memref<2x1x256xf32, #tpu.memory_space<vmem>>, vector<1x1x256xf32>
    %3 = vector.shape_cast %2 : vector<1x1x256xf32> to vector<1x256xf32>
    %4 = arith.truncf %1 : vector<64x128xf32> to vector<64x128xbf16>
    %c0_5 = arith.constant 0 : index
    %c2 = arith.constant 2 : index
    %c0_6 = arith.constant 0 : index
    %c0_7 = arith.constant 0 : index
    %5 = vector.load %arg2[%c0_5, %c2, %c0_6, %c0_7] : memref<2x3x128x256xbf16, #tpu.memory_space<vmem>>, vector<1x1x128x256xbf16>
    %6 = vector.shape_cast %5 : vector<1x1x128x256xbf16> to vector<128x256xbf16>
    %cst = arith.constant dense<0.000000e+00> : vector<64x256xf32>
    %7 = tpu.matmul %4, %6, %cst {dimension_numbers = #tpu.dot_dimension_numbers<[1], [0], [0], [1], [0, 0, 1, 1], [], []>} : vector<64x128xbf16>, vector<128x256xbf16>, vector<64x256xf32> -> vector<64x256xf32>
    %8 = tpu.iota {dimensions = array<i32: 0>} : vector<64x128xi32>
    %c15_i32 = arith.constant 15 : i32
    %9 = vector.broadcast %c15_i32 : i32 to vector<64x128xi32>
    %10 = arith.andi %8, %9 : vector<64x128xi32>
    %c1_i32 = arith.constant 1 : i32
    %11 = vector.broadcast %c1_i32 : i32 to vector<64x128xi32>
    %12 = arith.cmpi sge, %10, %11 : vector<64x128xi32>
    %c1_i32_8 = arith.constant 1 : i32
    %13 = tpu.dynamic_rotate %1 by %c1_i32_8 dim 0 : vector<64x128xf32>, i32 -> vector<64x128xf32>
    %cst_9 = arith.constant 0.000000e+00 : f32
    %14 = vector.broadcast %cst_9 : f32 to vector<64x128xf32>
    %15 = arith.select %12, %13, %14 : vector<64x128xi1>, vector<64x128xf32>
    %16 = arith.truncf %15 : vector<64x128xf32> to vector<64x128xbf16>
    %c0_10 = arith.constant 0 : index
    %c1 = arith.constant 1 : index
    %c0_11 = arith.constant 0 : index
    %c0_12 = arith.constant 0 : index
    %17 = vector.load %arg2[%c0_10, %c1, %c0_11, %c0_12] : memref<2x3x128x256xbf16, #tpu.memory_space<vmem>>, vector<1x1x128x256xbf16>
    %18 = vector.shape_cast %17 : vector<1x1x128x256xbf16> to vector<128x256xbf16>
    %cst_13 = arith.constant dense<0.000000e+00> : vector<64x256xf32>
    %19 = tpu.matmul %16, %18, %cst_13 {dimension_numbers = #tpu.dot_dimension_numbers<[1], [0], [0], [1], [0, 0, 1, 1], [], []>} : vector<64x128xbf16>, vector<128x256xbf16>, vector<64x256xf32> -> vector<64x256xf32>
    %20 = arith.addf %7, %19 : vector<64x256xf32>
    %c2_i32 = arith.constant 2 : i32
    %21 = vector.broadcast %c2_i32 : i32 to vector<64x128xi32>
    %22 = arith.cmpi sge, %10, %21 : vector<64x128xi32>
    %c2_i32_14 = arith.constant 2 : i32
    %23 = tpu.dynamic_rotate %1 by %c2_i32_14 dim 0 : vector<64x128xf32>, i32 -> vector<64x128xf32>
    %cst_15 = arith.constant 0.000000e+00 : f32
    %24 = vector.broadcast %cst_15 : f32 to vector<64x128xf32>
    %25 = arith.select %22, %23, %24 : vector<64x128xi1>, vector<64x128xf32>
    %26 = arith.truncf %25 : vector<64x128xf32> to vector<64x128xbf16>
    %c0_16 = arith.constant 0 : index
    %c0_17 = arith.constant 0 : index
    %c0_18 = arith.constant 0 : index
    %c0_19 = arith.constant 0 : index
    %27 = vector.load %arg2[%c0_16, %c0_17, %c0_18, %c0_19] : memref<2x3x128x256xbf16, #tpu.memory_space<vmem>>, vector<1x1x128x256xbf16>
    %28 = vector.shape_cast %27 : vector<1x1x128x256xbf16> to vector<128x256xbf16>
    %cst_20 = arith.constant dense<0.000000e+00> : vector<64x256xf32>
    %29 = tpu.matmul %26, %28, %cst_20 {dimension_numbers = #tpu.dot_dimension_numbers<[1], [0], [0], [1], [0, 0, 1, 1], [], []>} : vector<64x128xbf16>, vector<128x256xbf16>, vector<64x256xf32> -> vector<64x256xf32>
    %30 = arith.addf %20, %29 : vector<64x256xf32>
    %31 = vector.broadcast %3 : vector<1x256xf32> to vector<64x256xf32>
    %32 = arith.addf %30, %31 : vector<64x256xf32>
    %33 = vector.extract_strided_slice %32 {offsets = [0, 0], sizes = [64, 128], strides = [1, 1]} : vector<64x256xf32> to vector<64x128xf32>
    %34 = vector.extract_strided_slice %32 {offsets = [0, 128], sizes = [64, 128], strides = [1, 1]} : vector<64x256xf32> to vector<64x128xf32>
    %35 = arith.negf %34 : vector<64x128xf32>
    %36 = math.exp %35 : vector<64x128xf32>
    %cst_21 = arith.constant 1.000000e+00 : f32
    %37 = vector.broadcast %cst_21 : f32 to vector<64x128xf32>
    %38 = arith.addf %37, %36 : vector<64x128xf32>
    %39 = arith.divf %37, %38 : vector<64x128xf32>
    %40 = arith.mulf %33, %39 : vector<64x128xf32>
    %41 = arith.addf %40, %1 : vector<64x128xf32>
    %cst_22 = arith.constant 0.707106769 : f32
    %42 = vector.broadcast %cst_22 : f32 to vector<64x128xf32>
    %43 = arith.mulf %41, %42 : vector<64x128xf32>
    %c1_23 = arith.constant 1 : index
    %c0_24 = arith.constant 0 : index
    %c0_25 = arith.constant 0 : index
    %44 = vector.load %arg3[%c1_23, %c0_24, %c0_25] : memref<2x1x256xf32, #tpu.memory_space<vmem>>, vector<1x1x256xf32>
    %45 = vector.shape_cast %44 : vector<1x1x256xf32> to vector<1x256xf32>
    %46 = arith.truncf %43 : vector<64x128xf32> to vector<64x128xbf16>
    %c1_26 = arith.constant 1 : index
    %c2_27 = arith.constant 2 : index
    %c0_28 = arith.constant 0 : index
    %c0_29 = arith.constant 0 : index
    %47 = vector.load %arg2[%c1_26, %c2_27, %c0_28, %c0_29] : memref<2x3x128x256xbf16, #tpu.memory_space<vmem>>, vector<1x1x128x256xbf16>
    %48 = vector.shape_cast %47 : vector<1x1x128x256xbf16> to vector<128x256xbf16>
    %cst_30 = arith.constant dense<0.000000e+00> : vector<64x256xf32>
    %49 = tpu.matmul %46, %48, %cst_30 {dimension_numbers = #tpu.dot_dimension_numbers<[1], [0], [0], [1], [0, 0, 1, 1], [], []>} : vector<64x128xbf16>, vector<128x256xbf16>, vector<64x256xf32> -> vector<64x256xf32>
    %50 = tpu.iota {dimensions = array<i32: 0>} : vector<64x128xi32>
    %c15_i32_31 = arith.constant 15 : i32
    %51 = vector.broadcast %c15_i32_31 : i32 to vector<64x128xi32>
    %52 = arith.andi %50, %51 : vector<64x128xi32>
    %c1_i32_32 = arith.constant 1 : i32
    %53 = vector.broadcast %c1_i32_32 : i32 to vector<64x128xi32>
    %54 = arith.cmpi sge, %52, %53 : vector<64x128xi32>
    %c1_i32_33 = arith.constant 1 : i32
    %55 = tpu.dynamic_rotate %43 by %c1_i32_33 dim 0 : vector<64x128xf32>, i32 -> vector<64x128xf32>
    %cst_34 = arith.constant 0.000000e+00 : f32
    %56 = vector.broadcast %cst_34 : f32 to vector<64x128xf32>
    %57 = arith.select %54, %55, %56 : vector<64x128xi1>, vector<64x128xf32>
    %58 = arith.truncf %57 : vector<64x128xf32> to vector<64x128xbf16>
    %c1_35 = arith.constant 1 : index
    %c1_36 = arith.constant 1 : index
    %c0_37 = arith.constant 0 : index
    %c0_38 = arith.constant 0 : index
    %59 = vector.load %arg2[%c1_35, %c1_36, %c0_37, %c0_38] : memref<2x3x128x256xbf16, #tpu.memory_space<vmem>>, vector<1x1x128x256xbf16>
    %60 = vector.shape_cast %59 : vector<1x1x128x256xbf16> to vector<128x256xbf16>
    %cst_39 = arith.constant dense<0.000000e+00> : vector<64x256xf32>
    %61 = tpu.matmul %58, %60, %cst_39 {dimension_numbers = #tpu.dot_dimension_numbers<[1], [0], [0], [1], [0, 0, 1, 1], [], []>} : vector<64x128xbf16>, vector<128x256xbf16>, vector<64x256xf32> -> vector<64x256xf32>
    %62 = arith.addf %49, %61 : vector<64x256xf32>
    %c2_i32_40 = arith.constant 2 : i32
    %63 = vector.broadcast %c2_i32_40 : i32 to vector<64x128xi32>
    %64 = arith.cmpi sge, %52, %63 : vector<64x128xi32>
    %c2_i32_41 = arith.constant 2 : i32
    %65 = tpu.dynamic_rotate %43 by %c2_i32_41 dim 0 : vector<64x128xf32>, i32 -> vector<64x128xf32>
    %cst_42 = arith.constant 0.000000e+00 : f32
    %66 = vector.broadcast %cst_42 : f32 to vector<64x128xf32>
    %67 = arith.select %64, %65, %66 : vector<64x128xi1>, vector<64x128xf32>
    %68 = arith.truncf %67 : vector<64x128xf32> to vector<64x128xbf16>
    %c1_43 = arith.constant 1 : index
    %c0_44 = arith.constant 0 : index
    %c0_45 = arith.constant 0 : index
    %c0_46 = arith.constant 0 : index
    %69 = vector.load %arg2[%c1_43, %c0_44, %c0_45, %c0_46] : memref<2x3x128x256xbf16, #tpu.memory_space<vmem>>, vector<1x1x128x256xbf16>
    %70 = vector.shape_cast %69 : vector<1x1x128x256xbf16> to vector<128x256xbf16>
    %cst_47 = arith.constant dense<0.000000e+00> : vector<64x256xf32>
    %71 = tpu.matmul %68, %70, %cst_47 {dimension_numbers = #tpu.dot_dimension_numbers<[1], [0], [0], [1], [0, 0, 1, 1], [], []>} : vector<64x128xbf16>, vector<128x256xbf16>, vector<64x256xf32> -> vector<64x256xf32>
    %72 = arith.addf %62, %71 : vector<64x256xf32>
    %73 = vector.broadcast %45 : vector<1x256xf32> to vector<64x256xf32>
    %74 = arith.addf %72, %73 : vector<64x256xf32>
    %75 = vector.extract_strided_slice %74 {offsets = [0, 0], sizes = [64, 128], strides = [1, 1]} : vector<64x256xf32> to vector<64x128xf32>
    %76 = vector.extract_strided_slice %74 {offsets = [0, 128], sizes = [64, 128], strides = [1, 1]} : vector<64x256xf32> to vector<64x128xf32>
    %77 = arith.negf %76 : vector<64x128xf32>
    %78 = math.exp %77 : vector<64x128xf32>
    %cst_48 = arith.constant 1.000000e+00 : f32
    %79 = vector.broadcast %cst_48 : f32 to vector<64x128xf32>
    %80 = arith.addf %79, %78 : vector<64x128xf32>
    %81 = arith.divf %79, %80 : vector<64x128xf32>
    %82 = arith.mulf %75, %81 : vector<64x128xf32>
    %83 = arith.addf %82, %43 : vector<64x128xf32>
    %cst_49 = arith.constant 0.707106769 : f32
    %84 = vector.broadcast %cst_49 : f32 to vector<64x128xf32>
    %85 = arith.mulf %83, %84 : vector<64x128xf32>
    %86 = arith.truncf %85 : vector<64x128xf32> to vector<64x128xbf16>
    %c0_50 = arith.constant 0 : index
    %c0_51 = arith.constant 0 : index
    %87 = vector.load %arg4[%c0_50, %c0_51] : memref<128x128xbf16, #tpu.memory_space<vmem>>, vector<128x128xbf16>
    %cst_52 = arith.constant dense<0.000000e+00> : vector<64x128xf32>
    %88 = tpu.matmul %86, %87, %cst_52 {dimension_numbers = #tpu.dot_dimension_numbers<[1], [0], [0], [1], [0, 0, 1, 1], [], []>} : vector<64x128xbf16>, vector<128x128xbf16>, vector<64x128xf32> -> vector<64x128xf32>
    %c0_53 = arith.constant 0 : index
    %c0_54 = arith.constant 0 : index
    %89 = vector.load %arg5[%c0_53, %c0_54] : memref<1x128xf32, #tpu.memory_space<vmem>>, vector<1x128xf32>
    %90 = vector.broadcast %89 : vector<1x128xf32> to vector<64x128xf32>
    %91 = arith.addf %88, %90 : vector<64x128xf32>
    %92 = vector.shape_cast %91 : vector<64x128xf32> to vector<4x16x128xf32>
    %c0_55 = arith.constant 0 : index
    %c0_56 = arith.constant 0 : index
    %c0_57 = arith.constant 0 : index
    %93 = vector.load %arg6[%c0_55, %c0_56, %c0_57] : memref<4x16x128xf32, #tpu.memory_space<vmem>>, vector<4x16x128xf32>
    tpu.vector_store %arg6[%c0_55, %c0_56, %c0_57], %92 {strides = array<i32>} : memref<4x16x128xf32, #tpu.memory_space<vmem>>, vector<4x16x128xf32>,
    return
  }
  func.func @transform_0(%arg0: i32) -> (i32, i32, i32) {
    %c0_i32 = arith.constant 0 : i32
    %c0_i32_0 = arith.constant 0 : i32
    %c0_i32_1 = arith.constant 0 : i32
    return %arg0, %c0_i32, %c0_i32_0 : i32, i32, i32
  }
  func.func @transform_1(%arg0: i32) -> (i32, i32, i32, i32) {
    %c0_i32 = arith.constant 0 : i32
    %c0_i32_0 = arith.constant 0 : i32
    %c0_i32_1 = arith.constant 0 : i32
    %c0_i32_2 = arith.constant 0 : i32
    %c0_i32_3 = arith.constant 0 : i32
    return %c0_i32, %c0_i32_0, %c0_i32_1, %c0_i32_2 : i32, i32, i32, i32
  }
  func.func @transform_2(%arg0: i32) -> (i32, i32, i32) {
    %c0_i32 = arith.constant 0 : i32
    %c0_i32_0 = arith.constant 0 : i32
    %c0_i32_1 = arith.constant 0 : i32
    %c0_i32_2 = arith.constant 0 : i32
    return %c0_i32, %c0_i32_0, %c0_i32_1 : i32, i32, i32
  }
  func.func @transform_3(%arg0: i32) -> (i32, i32) {
    %c0_i32 = arith.constant 0 : i32
    %c0_i32_0 = arith.constant 0 : i32
    %c0_i32_1 = arith.constant 0 : i32
    return %c0_i32, %c0_i32_0 : i32, i32
  }
  func.func @transform_4(%arg0: i32) -> (i32, i32) {
    %c0_i32 = arith.constant 0 : i32
    %c0_i32_0 = arith.constant 0 : i32
    %c0_i32_1 = arith.constant 0 : i32
    return %c0_i32, %c0_i32_0 : i32, i32
  }
  func.func @transform_5(%arg0: i32) -> (i32, i32, i32) {
    %c0_i32 = arith.constant 0 : i32
    %c0_i32_0 = arith.constant 0 : i32
    %c0_i32_1 = arith.constant 0 : i32
    return %arg0, %c0_i32, %c0_i32_0 : i32, i32, i32
  }
}

</mosaic_0001>

<bundles_post_ra>
// kernel: _lambda_.3
= control target key start
LH: loop header
LB: loop body
LE: loop exit
PB: predicated region body
PF: predicated region fallthrough
CT: control target
= control target key end

     0   :  { %s2783_s18 = smov 0   ;;  %s4046_s0 = inlined_call_operand.vmem [shape: f32[8,16,128], index: 0, kind: input, shape index: {}]   ;;  %s4047_s1 = inlined_call_operand.vmem [shape: bf16[2,3,128,256], index: 1, kind: input, shape index: {}]   ;;  %s4048_s2 = inlined_call_operand.vmem [shape: f32[2,1,256], index: 2, kind: input, shape index: {}]   ;;  %s4049_s3 = inlined_call_operand.vmem [shape: bf16[128,128], index: 3, kind: input, shape index: {}]   ;;  %s4050_s4 = inlined_call_operand.vmem [shape: f32[1,128], index: 4, kind: input, shape index: {}]   ;;  %s4051_s5 = inlined_call_operand.vmem [shape: f32[8,16,128], index: 5, kind: output, shape index: {}]  }
   0x1 LB: > { %s1921_s19 = sadd.s32 4294967295, %s2750_s18   ;;  %p1925_p0 = scmp.ge.s32.totalorder %s2750_s18, 1  ;;  %s2750_s18 = sphi %s2783_s18, %s15_s18  }
   0x2   : > { %p189_p1 = scmp.lt.s32.totalorder %s2750_s18, 3 }
   0x4   : > { %p190_p2 = pnand %p1925_p0, %p189_p1 }
   0x5   : > { %s1926_s16 = sshll.u32 (!%p190_p2), %s1921_s19, 2 }
   0x6   : > { %193 = sbr.rel (%p190_p2) target bundleno = 801 (0x321), region = 40  ;;  %p220_p3 = scmp.lt.s32.totalorder (!%p190_p2), %s1926_s16, 7 }
   0xb   : > { %v2022_v0 = vld [vmem:[%s4047_s1 + $0xf0] sm:$0xf]  ;;  %v2576_v1 = vld [vmem:[%s4047_s1 + $0xf4] sm:$0xf0]  ;;  %v2014_v5 = vld [vmem:[%s4047_s1 + $0xe0] sm:$0xf]  ;;  %v263_v32 = vlaneseq }
   0xc   : > { %v2110_v2 = vld [vmem:[%s4047_s1 + $0x170] sm:$0xf]  ;;  %v2023_v3 = vor.u32 %v2576_v1, %v2022_v0  ;;  %v2560_v4 = vld [vmem:[%s4047_s1 + $0x174] sm:$0xf0]  ;;  %v2574_v6 = vld [vmem:[%s4047_s1 + $0xe4] sm:$0xf0] }
   0xd   : > { %v2111_v7 = vor.u32 %v2560_v4, %v2110_v2  ;;  %v2102_v8 = vld [vmem:[%s4047_s1 + $0x160] sm:$0xf]  ;;  %v2558_v9 = vld [vmem:[%s4047_s1 + $0x164] sm:$0xf0]  ;;  %v2015_v10 = vor.u32 %v2574_v6, %v2014_v5  ;;  %v2006_v12 = vld [vmem:[%s4047_s1 + $0xd0] sm:$0xf] }
   0xe   : > { %414 = vmatpush.bf16.msra.mxu0 %v2023_v3  ;;  %2649 = vmatpush.bf16.msra.mxu1 %v2023_v3  ;;  %v2103_v11 = vor.u32 %v2558_v9, %v2102_v8  ;;  %v2572_v13 = vld [vmem:[%s4047_s1 + $0xd4] sm:$0xf0]  ;;  %v2094_v14 = vld [vmem:[%s4047_s1 + $0x150] sm:$0xf]  ;;  %v1998_v18 = vld [vmem:[%s4047_s1 + $0xc0] sm:$0xf] }
   0xf   : > { %552 = vmatpush.bf16.msra.mxu2 %v2111_v7  ;;  %v2556_v15 = vld [vmem:[%s4047_s1 + $0x154] sm:$0xf0]  ;;  %v2007_v16 = vor.u32 %v2572_v13, %v2006_v12  ;;  %v2570_v19 = vld [vmem:[%s4047_s1 + $0xc4] sm:$0xf0]  ;;  %v2086_v20 = vld [vmem:[%s4047_s1 + $0x140] sm:$0xf] }
  0x10   : > { %v2095_v17 = vor.u32 %v2556_v15, %v2094_v14  ;;  %v2554_v21 = vld [vmem:[%s4047_s1 + $0x144] sm:$0xf0]  ;;  %v2559_v22 = vld [vmem:[%s4047_s1 + $0x174] sm:$0xf]  ;;  %v2112_v23 = vld [vmem:[%s4047_s1 + $0x178] sm:$0xf0]  ;;  %v1999_v25 = vor.u32 %v2570_v19, %v1998_v18 }
  0x11   : > { %v2115_v24 = vor.u32 %v2559_v22, %v2112_v23  ;;  %v2557_v26 = vld [vmem:[%s4047_s1 + $0x164] sm:$0xf]  ;;  %v2104_v27 = vld [vmem:[%s4047_s1 + $0x168] sm:$0xf0]  ;;  %v2087_v28 = vor.u32 %v2554_v21, %v2086_v20  ;;  %v1990_v29 = vld [vmem:[%s4047_s1 + $0xb0] sm:$0xf] }
  0x12   : > { %415 = vmatpush.bf16.msra.mxu0 %v2015_v10  ;;  %2650 = vmatpush.bf16.msra.mxu1 %v2015_v10  ;;  %v2568_v30 = vld [vmem:[%s4047_s1 + $0xb4] sm:$0xf0]  ;;  %v2107_v31 = vor.u32 %v2557_v26, %v2104_v27  ;;  %v2078_v33 = vld [vmem:[%s4047_s1 + $0x130] sm:$0xf]  ;;  %s4079_s16 = smov (!%p220_p3, %s1926_s16), 7  ;;  %v2879_v41 = vshrl.u32 %v263_v32, 7 }
  0x13   : > { %553 = vmatpush.bf16.msra.mxu2 %v2103_v11  ;;  %581 = vmatpush.bf16.msra.mxu3 %v2115_v24  ;;  %v2552_v34 = vld [vmem:[%s4047_s1 + $0x134] sm:$0xf0]  ;;  %v1991_v35 = vor.u32 %v2568_v30, %v1990_v29  ;;  %v2555_v36 = vld [vmem:[%s4047_s1 + $0x154] sm:$0xf]  ;;  %v2096_v37 = vld [vmem:[%s4047_s1 + $0x158] sm:$0xf0] }
  0x14   : > { %v2079_v38 = vor.u32 %v2552_v34, %v2078_v33  ;;  %v1982_v39 = vld [vmem:[%s4047_s1 + $0xa0] sm:$0xf]  ;;  %v2566_v40 = vld [vmem:[%s4047_s1 + $0xa4] sm:$0xf0]  ;;  %v2099_v42 = vor.u32 %v2555_v36, %v2096_v37  ;;  %s2543_s9 = sshll.u32 %s4079_s16, 4  ;;  %v2929_v58 = vadd.s32 32, %v2879_v41 }
  0x15   : > { %v2070_v43 = vld [vmem:[%s4047_s1 + $0x120] sm:$0xf]  ;;  %v2550_v44 = vld [vmem:[%s4047_s1 + $0x124] sm:$0xf0]  ;;  %v1974_v45 = vld [vmem:[%s4047_s1 + $0x90] sm:$0xf]  ;;  %s2899_s17 = scalar_lea.vmem %s4046_s0, %s2543_s9  ;;  %v1983_v49 = vor.u32 %v2566_v40, %v1982_v39 }
  0x16   : > { %416 = vmatpush.bf16.msra.mxu0 %v2007_v16  ;;  %2651 = vmatpush.bf16.msra.mxu1 %v2007_v16  ;;  %v2564_v46 = vld [vmem:[%s4047_s1 + $0x94] sm:$0xf0]  ;;  %v2553_v47 = vld [vmem:[%s4047_s1 + $0x144] sm:$0xf]  ;;  %v2088_v48 = vld [vmem:[%s4047_s1 + $0x148] sm:$0xf0]  ;;  %v2071_v54 = vor.u32 %v2550_v44, %v2070_v43 }
  0x17   : > { %554 = vmatpush.bf16.msra.mxu2 %v2095_v17  ;;  %582 = vmatpush.bf16.msra.mxu3 %v2107_v31  ;;  %v2062_v50 = vld [vmem:[%s4047_s1 + $0x110] sm:$0xf]  ;;  %v2911_v51 = vld [vmem:[%s2899_s17] sm:$0xff]  ;;  %v2914_v52 = vld [vmem:[%s2899_s17 + $0x8] sm:$0xff]  ;;  %v2091_v59 = vor.u32 %v2553_v47, %v2088_v48  ;;  %v272_v62 = vand.u32 15, %v2879_v41  ;;  %vm296_vm0 = vcmp.lt.s32.totalorder %v2879_v41, 1  ;;  %v1975_v4 = vor.u32 %v2564_v46, %v1974_v45 }
  0x18   : > { %v2917_v53 = vld [vmem:[%s2899_s17 + $0x38] sm:$0xff]  ;;  %v2923_v56 = vld [vmem:[%s2899_s17 + $0x20] sm:$0xff]  ;;  %v2926_v57 = vld [vmem:[%s2899_s17 + $0x28] sm:$0xff]  ;;  %v288_v0 = vrot.slane %v2911_v51, 7  ;;  %v289_v1 = vrot.slane %v2914_v52, 7  ;;  %v276_v12 = vand.u32 15, %v2929_v58 }
  0x19   : > { %v2920_v55 = vld [vmem:[%s2899_s17 + $0x18] sm:$0xff]  ;;  %v1966_v61 = vld [vmem:[%s4047_s1 + $0x80] sm:$0xf]  ;;  %v2562_v63 = vld [vmem:[%s4047_s1 + $0x84] sm:$0xf0]  ;;  %v295_v2 = vrot.slane %v2917_v53, 7 }
  0x1a   : > { %417 = vmatpush.bf16.msra.mxu0 %v1999_v25  ;;  %2652 = vmatpush.bf16.msra.mxu1 %v1999_v25  ;;  %v2548_v60 = vld [vmem:[%s4047_s1 + $0x114] sm:$0xf0]  ;;  %v291_v3 = vrot.slane %v2920_v55, 7  ;;  %v2054_v5 = vld [vmem:[%s4047_s1 + $0x100] sm:$0xf]  ;;  %v292_v6 = vrot.slane %v2923_v56, 7  ;;  %v1967_v18 = vor.u32 %v2562_v63, %v1966_v61  ;;  %v303_v20 = vsel %vm296_vm0, %v288_v0, %v289_v1 }
  0x1b   : > { %555 = vmatpush.bf16.msra.mxu2 %v2087_v28  ;;  %583 = vmatpush.bf16.msra.mxu3 %v2099_v42  ;;  %v293_v7 = vrot.slane %v2926_v57, 7  ;;  %v2551_v8 = vld [vmem:[%s4047_s1 + $0x134] sm:$0xf]  ;;  %v2080_v9 = vld [vmem:[%s4047_s1 + $0x138] sm:$0xf0]  ;;  %v2063_v10 = vor.u32 %v2548_v60, %v2062_v50  ;;  %vm2975_vm1 = vcmp.ge.s32.totalorder %v272_v62, 1  ;;  %v304_v23 = vsel %vm296_vm0, %v295_v2, %v288_v0 }
  0x1c   : > { %v2546_v11 = vld [vmem:[%s4047_s1 + $0x104] sm:$0xf0]  ;;  %v2575_v13 = vld [vmem:[%s4047_s1 + $0xf4] sm:$0xf]  ;;  %v2024_v14 = vld [vmem:[%s4047_s1 + $0xf8] sm:$0xf0]  ;;  %v2083_v17 = vor.u32 %v2551_v8, %v2080_v9  ;;  %v300_v25 = vsel %vm296_vm0, %v291_v3, %v292_v6  ;;  %v242_v42 = vpack.c.bf16 %v2914_v52, %v2911_v51 }
  0x1d   : > { %v2174_v15 = vld [vmem:[%s4047_s1 + $0x70] sm:$0xf]  ;;  %v2592_v16 = vld [vmem:[%s4047_s1 + $0x74] sm:$0xf0]  ;;  %v2549_v21 = vld [vmem:[%s4047_s1 + $0x124] sm:$0xf]  ;;  %v299_v24 = vsel %vm296_vm0, %v292_v6, %v293_v7  ;;  %v2055_v26 = vor.u32 %v2546_v11, %v2054_v5  ;;  %v2027_v28 = vor.u32 %v2575_v13, %v2024_v14 }
  0x1e   : > { %418 = vmatpush.bf16.msra.mxu0 %v1991_v35  ;;  %2653 = vmatpush.bf16.msra.mxu1 %v1991_v35  ;;  %v2072_v22 = vld [vmem:[%s4047_s1 + $0x128] sm:$0xf0]  ;;  %vm3003_vm2 = vcmp.ge.s32.totalorder %v276_v12, 1  ;;  %v2573_v29 = vld [vmem:[%s4047_s1 + $0xe4] sm:$0xf]  ;;  %vm2752_vm3 = vmmov 1   ;;  %v2175_v31 = vor.u32 %v2592_v16, %v2174_v15  ;;  %v3023_v35 = vpack.c.bf16 %v303_v20, %v304_v23 }
  0x1f   : > { %556 = vmatpush.bf16.msra.mxu2 %v2079_v38  ;;  %584 = vmatpush.bf16.msra.mxu3 %v2091_v59  ;;  %vm3013_vm4 = vmpackc.low %vm2752_vm3, %vm2975_vm1  ;;  %v2016_v32 = vld [vmem:[%s4047_s1 + $0xe8] sm:$0xf0]  ;;  %v2166_v33 = vld [vmem:[%s4047_s1 + $0x60] sm:$0xf]  ;;  %v2075_v34 = vor.u32 %v2549_v21, %v2072_v22  ;;  %v3025_v36 = vpack.c.bf16 %v299_v24, %v300_v25  ;;  %v3049_v45 = vadd.s32 16, %v2879_v41  ;;  %v3079_v0 = vadd.s32 48, %v2879_v41 }
  0x20   : > { %v2590_v37 = vld [vmem:[%s4047_s1 + $0x64] sm:$0xf0]  ;;  %v2547_v38 = vld [vmem:[%s4047_s1 + $0x114] sm:$0xf]  ;;  %v2064_v39 = vld [vmem:[%s4047_s1 + $0x118] sm:$0xf0]  ;;  %v2019_v43 = vor.u32 %v2573_v29, %v2016_v32 }
  0x21   : > { %vm3039_vm5 = vmpackc.low %vm2752_vm3, %vm3003_vm2  ;;  %v2571_v44 = vld [vmem:[%s4047_s1 + $0xd4] sm:$0xf]  ;;  %v2167_v46 = vor.u32 %v2590_v37, %v2166_v33  ;;  %v2008_v47 = vld [vmem:[%s4047_s1 + $0xd8] sm:$0xf0]  ;;  %v2067_v50 = vor.u32 %v2547_v38, %v2064_v39  ;;  %v274_v11 = vand.u32 15, %v3049_v45  ;;  %v278_v16 = vand.u32 15, %v3079_v0 }
  0x22   : > { %419 = vmatpush.bf16.msra.mxu0 %v1983_v49  ;;  %2654 = vmatpush.bf16.msra.mxu1 %v1983_v49  ;;  %v2158_v48 = vld [vmem:[%s4047_s1 + $0x50] sm:$0xf]  ;;  %v2588_v49 = vld [vmem:[%s4047_s1 + $0x54] sm:$0xf0]  ;;  %v2056_v59 = vld [vmem:[%s4047_s1 + $0x108] sm:$0xf0]  ;;  %v2011_v60 = vor.u32 %v2571_v44, %v2008_v47 }
  0x23   : > { %557 = vmatpush.bf16.msra.mxu2 %v2071_v54  ;;  %585 = vmatpush.bf16.msra.mxu3 %v2083_v17  ;;  %v2545_v54 = vld [vmem:[%s4047_s1 + $0x104] sm:$0xf]  ;;  %v3073_v61 = vld [vmem:[%s2899_s17 + $0x10] sm:$0xff]  ;;  %v2000_v6 = vld [vmem:[%s4047_s1 + $0xc8] sm:$0xf0]  ;;  %vm3105_vm6 = vcmp.ge.s32.totalorder %v274_v11, 1 }
  0x24   : > { %v3076_v63 = vld [vmem:[%s2899_s17 + $0x30] sm:$0xff]  ;;  %v2569_v5 = vld [vmem:[%s4047_s1 + $0xc4] sm:$0xf]  ;;  %v2059_v8 = vor.u32 %v2545_v54, %v2056_v59  ;;  %v2150_v9 = vld [vmem:[%s4047_s1 + $0x40] sm:$0xf]  ;;  %v290_v13 = vrot.slane %v3073_v61, 7 }
  0x25   : > { %v294_v14 = vrot.slane %v3076_v63, 7  ;;  %v2003_v15 = vor.u32 %v2569_v5, %v2000_v6  ;;  %v1992_v19 = vld [vmem:[%s4047_s1 + $0xb8] sm:$0xf0]  ;;  %v2142_v21 = vld [vmem:[%s4047_s1 + $0x30] sm:$0xf]  ;;  %vm286_vm7 = vcmp.ge.s32.totalorder %v278_v16, 1  ;;  %vm3142_vm8 = vmpackc.low %vm2752_vm3, %vm3105_vm6 }
  0x26   : > { %420 = vmatpush.bf16.msra.mxu0 %v1975_v4  ;;  %2655 = vmatpush.bf16.msra.mxu1 %v1975_v4  ;;  %v2159_v4 = vor.u32 %v2588_v49, %v2158_v48  ;;  %v2584_v22 = vld [vmem:[%s4047_s1 + $0x34] sm:$0xf0]  ;;  %v301_v23 = vsel %vm296_vm0, %v290_v13, %v291_v3  ;;  %v302_v24 = vsel %vm296_vm0, %v289_v1, %v290_v13  ;;  %v2565_v1 = vld [vmem:[%s4047_s1 + $0xa4] sm:$0xf]  ;;  %v2582_v32 = vld [vmem:[%s4047_s1 + $0x24] sm:$0xf0] }
  0x27   : > { %558 = vmatpush.bf16.msra.mxu2 %v2063_v10  ;;  %586 = vmatpush.bf16.msra.mxu3 %v2075_v34  ;;  %v2586_v10 = vld [vmem:[%s4047_s1 + $0x44] sm:$0xf0]  ;;  %v297_v25 = vsel %vm296_vm0, %v294_v14, %v295_v2  ;;  %v2143_v27 = vor.u32 %v2584_v22, %v2142_v21  ;;  %v1984_v2 = vld [vmem:[%s4047_s1 + $0xa8] sm:$0xf0]  ;;  %vm3157_vm9 = vmpackc.low %vm2752_vm3, %vm286_vm7  ;;  %v243_v34 = vpack.c.bf16 %v2920_v55, %v3073_v61  ;;  %v619_v5 = vrot.slane %v2914_v52, 6 }
  0x28   : > { %v2151_v17 = vor.u32 %v2586_v10, %v2150_v9  ;;  %v1987_v37 = vor.u32 %v2565_v1, %v1984_v2  ;;  %v2563_v39 = vld [vmem:[%s4047_s1 + $0x94] sm:$0xf]  ;;  %v2580_v44 = vld [vmem:[%s4047_s1 + $0x14] sm:$0xf0]  ;;  %v2561_v48 = vld [vmem:[%s4047_s1 + $0x84] sm:$0xf]  ;;  %v244_v22 = vpack.c.bf16 %v2926_v57, %v2923_v56 }
  0x29   : > { %v1968_v49 = vld [vmem:[%s4047_s1 + $0x88] sm:$0xf0]  ;;  %v2578_v54 = vld [vmem:[%s4047_s1 + $0x4] sm:$0xf0]  ;;  %v2591_v59 = vld [vmem:[%s4047_s1 + $0x74] sm:$0xf] }
  0x2a   : > { %421 = vmatpush.bf16.msra.mxu0 %v1967_v18  ;;  %2656 = vmatpush.bf16.msra.mxu1 %v1967_v18  ;;  %v2567_v18 = vld [vmem:[%s4047_s1 + $0xb4] sm:$0xf]  ;;  %v625_v6 = vrot.slane %v2917_v53, 6  ;;  %vm626_vm10 = vcmp.lt.s32.totalorder %v2879_v41, 2  ;;  %v2589_v13 = vld [vmem:[%s4047_s1 + $0x64] sm:$0xf] }
  0x2b   : > { %559 = vmatpush.bf16.msra.mxu2 %v2055_v26  ;;  %587 = vmatpush.bf16.msra.mxu3 %v2067_v50  ;;  %v298_v26 = vsel %vm296_vm0, %v293_v7, %v294_v14  ;;  %v1995_v3 = vor.u32 %v2567_v18, %v1992_v19  ;;  %v2118_v50 = vld [vmem:[%s4047_s1] sm:$0xf]  ;;  %v2168_v14 = vld [vmem:[%s4047_s1 + $0x68] sm:$0xf0]  ;;  %vm610_vm11 = vcmp.ge.s32.totalorder %v272_v62, 2  ;;  %v621_v1 = vrot.slane %v2920_v55, 6 }
  0x2c   : > { %v3148_v29 = vpack.c.bf16 %v297_v25, %v298_v26  ;;  %v2119_v9 = vor.u32 %v2578_v54, %v2118_v50  ;;  %v2171_v18 = vor.u32 %v2589_v13, %v2168_v14  ;;  %v2587_v20 = vld [vmem:[%s4047_s1 + $0x54] sm:$0xf]  ;;  %v2160_v21 = vld [vmem:[%s4047_s1 + $0x58] sm:$0xf0]  ;;  %vm3226_vm12 = vmpackc.low %vm2752_vm3, %vm610_vm11  ;;  %vm612_vm13 = vcmp.ge.s32.totalorder %v274_v11, 2 }
  0x2d   : > { %2030 = vmatmul.msk.bf16.vlgmr.msra.gmra.mxu0 %vm3013_vm4, %v3023_v35  ;;  %2036 = vmatmul.msk.bf16.vlgmr.msra.gmra.mxu1 %vm3039_vm5, %v3025_v36  ;;  %v2163_v62 = vor.u32 %v2587_v20, %v2160_v21  ;;  %v2152_v25 = vld [vmem:[%s4047_s1 + $0x48] sm:$0xf0]  ;;  %vm3264_vm14 = vmpackc.low %vm2752_vm3, %vm612_vm13  ;;  %v2579_v45 = vld [vmem:[%s4047_s1 + $0x14] sm:$0xf]  ;;  %vm614_vm15 = vcmp.ge.s32.totalorder %v276_v12, 2  ;;  %vm616_vm2 = vcmp.ge.s32.totalorder %v278_v16, 2 }
  0x2e   : > { %443 = vmatpush.bf16.msrb.mxu1 %v2027_v28  ;;  %743 = vmatpush.bf16.msrb.mxu0 %v2175_v31  ;;  %v3146_v28 = vpack.c.bf16 %v301_v23, %v302_v24  ;;  %v2134_v31 = vld [vmem:[%s4047_s1 + $0x20] sm:$0xf]  ;;  %v2585_v24 = vld [vmem:[%s4047_s1 + $0x44] sm:$0xf]  ;;  %v2128_v11 = vld [vmem:[%s4047_s1 + $0x18] sm:$0xf0] }
  0x2f   : > { %560 = vmatmul.bf16.vlgmr.msra.gmra.mxu2 %v242_v42  ;;  %588 = vmatpush.bf16.msra.mxu3 %v2059_v8  ;;  %v2135_v38 = vor.u32 %v2582_v32, %v2134_v31  ;;  %v1971_v8 = vor.u32 %v2561_v48, %v1968_v49  ;;  %v2155_v26 = vor.u32 %v2585_v24, %v2152_v25  ;;  %v2581_v31 = vld [vmem:[%s4047_s1 + $0x24] sm:$0xf]  ;;  %v2136_v32 = vld [vmem:[%s4047_s1 + $0x28] sm:$0xf0]  ;;  %v623_v48 = vrot.slane %v2926_v57, 6  ;;  %vm3294_vm1 = vmpackc.low %vm2752_vm3, %vm614_vm15 }
  0x30   : > { %v2139_v55 = vor.u32 %v2581_v31, %v2136_v32  ;;  %vm3313_vm6 = vmpackc.low %vm2752_vm3, %vm616_vm2  ;;  %v2393_v20 = vld [vmem:[%s4047_s1 + $0x2f8] sm:$0xf0]  ;;  %v2605_v24 = vld [vmem:[%s4047_s1 + $0x2e4] sm:$0xf] }
  0x31   : > { %v2604_v31 = vld [vmem:[%s4047_s1 + $0x2d4] sm:$0xf0]  ;;  %v2603_v32 = vld [vmem:[%s4047_s1 + $0x2d4] sm:$0xf]  ;;  %v2629_v30 = vld [vmem:[%s4047_s1 + $0x1a4] sm:$0xf] }
  0x32   : > { %444 = vmatpush.bf16.msrb.mxu1 %v2019_v43  ;;  %744 = vmatpush.bf16.msrb.mxu0 %v2167_v46  ;;  %v2126_v43 = vld [vmem:[%s4047_s1 + $0x10] sm:$0xf]  ;;  %v2431_v7 = vld [vmem:[%s4047_s1 + $0x1a0] sm:$0xf] }
  0x33   : > { %589 = vmatmul.bf16.vlgmr.msra.gmra.mxu3 %v242_v42  ;;  %v1976_v42 = vld [vmem:[%s4047_s1 + $0x98] sm:$0xf0]  ;;  %v2127_v47 = vor.u32 %v2580_v44, %v2126_v43  ;;  %v2131_v43 = vor.u32 %v2579_v45, %v2128_v11  ;;  %v2577_v44 = vld [vmem:[%s4047_s1 + $0x4] sm:$0xf] }
  0x34   : > { %v1979_v46 = vor.u32 %v2563_v39, %v1976_v42  ;;  %v245_v39 = vpack.c.bf16 %v2917_v53, %v3076_v63  ;;  %v2601_v45 = vld [vmem:[%s4047_s1 + $0x2c4] sm:$0xf] }
  0x36   : > { %445 = vmatpush.bf16.msrb.mxu1 %v2011_v60  ;;  %745 = vmatpush.bf16.msrb.mxu0 %v2159_v4  ;;  %v2176_v60 = vld [vmem:[%s4047_s1 + $0x78] sm:$0xf0]  ;;  %v618_v4 = vrot.slane %v2911_v51, 6 }
  0x37   : > { %v2179_v10 = vor.u32 %v2591_v59, %v2176_v60 }
  0x3a   : > { %446 = vmatpush.bf16.msrb.mxu1 %v2003_v15  ;;  %746 = vmatpush.bf16.msrb.mxu0 %v2151_v17  ;;  %v633_v15 = vsel %vm626_vm10, %v618_v4, %v619_v5  ;;  %v634_v17 = vsel %vm626_vm10, %v625_v6, %v618_v4 }
  0x3b   : > { %v2181_v19 = vpack.c.bf16 %v633_v15, %v634_v17  ;;  %v2391_v15 = vld [vmem:[%s4047_s1 + $0x2f0] sm:$0xf]  ;;  %v2608_v17 = vld [vmem:[%s4047_s1 + $0x2f4] sm:$0xf0] }
  0x3d   : > { %2033 = vmatmul.msk.bf16.gmra.mxu0 %vm3142_vm8, %v3146_v28  ;;  %2039 = vmatmul.msk.bf16.gmra.mxu1 %vm3157_vm9, %v3148_v29 }
  0x3e   : > { %447 = vmatpush.bf16.msrb.mxu1 %v1995_v3  ;;  %747 = vmatpush.bf16.msrb.mxu0 %v2143_v27  ;;  %v2583_v3 = vld [vmem:[%s4047_s1 + $0x34] sm:$0xf]  ;;  %v620_v27 = vrot.slane %v3073_v61, 6 }
  0x3f   : > { %565 = vmatmul.bf16.gmra.mxu2 %v243_v34 }
  0x42   : > { %448 = vmatpush.bf16.msrb.mxu1 %v1987_v37  ;;  %748 = vmatpush.bf16.msrb.mxu0 %v2135_v38  ;;  %v632_v37 = vsel %vm626_vm10, %v619_v5, %v620_v27 }
  0x43   : > { %594 = vmatmul.bf16.gmra.mxu3 %v243_v34  ;;  %v631_v34 = vsel %vm626_vm10, %v620_v27, %v621_v1 }
  0x44   : > { %v2184_v38 = vpack.c.bf16 %v631_v34, %v632_v37  ;;  %v2377_v37 = vld [vmem:[%s4047_s1 + $0x2d8] sm:$0xf0] }
  0x46   : > { %449 = vmatpush.bf16.msrb.mxu1 %v1979_v46  ;;  %749 = vmatpush.bf16.msrb.mxu0 %v2127_v47  ;;  %v622_v47 = vrot.slane %v2923_v56, 6  ;;  %v624_v56 = vrot.slane %v3076_v63, 6 }
  0x48   : > { %v629_v49 = vsel %vm626_vm10, %v622_v47, %v623_v48  ;;  %v630_v50 = vsel %vm626_vm10, %v621_v1, %v622_v47  ;;  %v627_v57 = vsel %vm626_vm10, %v624_v56, %v625_v6  ;;  %v628_v58 = vsel %vm626_vm10, %v623_v48, %v624_v56  ;;  %v2599_v56 = vld [vmem:[%s4047_s1 + $0x2b4] sm:$0xf] }
  0x49   : > { %v2187_v54 = vpack.c.bf16 %v629_v49, %v630_v50  ;;  %v2190_v12 = vpack.c.bf16 %v627_v57, %v628_v58  ;;  %v2359_v50 = vld [vmem:[%s4047_s1 + $0x2b0] sm:$0xf] }
  0x4a   : > { %450 = vmatpush.bf16.msrb.mxu1 %v1971_v8  ;;  %750 = vmatpush.bf16.msrb.mxu0 %v2119_v9 }
  0x4d   : > { %2042 = vmatmul.msk.bf16.vlgmr.msrb.gmra.mxu1 %vm3013_vm4, %v3023_v35  ;;  %2182 = vmatmul.msk.bf16.vlgmr.msrb.gmra.mxu0 %vm3226_vm12, %v2181_v19  ;;  %v2144_v35 = vld [vmem:[%s4047_s1 + $0x38] sm:$0xf0] }
  0x4e   : > { %772 = vmatpush.bf16.msra.mxu1 %v2179_v10  ;;  %v2147_v2 = vor.u32 %v2583_v3, %v2144_v35  ;;  %v2385_v3 = vld [vmem:[%s4047_s1 + $0x2e8] sm:$0xf0] }
  0x4f   : > { %570 = vmatmul.bf16.gmra.mxu2 %v244_v22  ;;  %v2388_v35 = vor.u32 %v2605_v24, %v2385_v3 }
  0x52   : > { %773 = vmatpush.bf16.msra.mxu1 %v2171_v18  ;;  %v2607_v18 = vld [vmem:[%s4047_s1 + $0x2f4] sm:$0xf] }
  0x53   : > { %599 = vmatmul.bf16.gmra.mxu3 %v244_v22  ;;  %v2396_v21 = vor.u32 %v2607_v18, %v2393_v20  ;;  %v2383_v22 = vld [vmem:[%s4047_s1 + $0x2e0] sm:$0xf]  ;;  %v2598_v18 = vld [vmem:[%s4047_s1 + $0x2a4] sm:$0xf0] }
  0x56   : > { %774 = vmatpush.bf16.msra.mxu1 %v2163_v62  ;;  %v2606_v62 = vld [vmem:[%s4047_s1 + $0x2e4] sm:$0xf0] }
  0x5a   : > { %775 = vmatpush.bf16.msra.mxu1 %v2155_v26  ;;  %v2384_v26 = vor.u32 %v2606_v62, %v2383_v22  ;;  %v2353_v22 = vld [vmem:[%s4047_s1 + $0x2a8] sm:$0xf0] }
  0x5d   : > { %2045 = vmatmul.msk.bf16.gmra.mxu1 %vm3142_vm8, %v3146_v28  ;;  %2185 = vmatmul.msk.bf16.gmra.mxu0 %vm3264_vm14, %v2184_v38  ;;  %v2120_v28 = vld [vmem:[%s4047_s1 + $0x8] sm:$0xf0] }
  0x5e   : > { %776 = vmatpush.bf16.msra.mxu1 %v2147_v2  ;;  %v2123_v46 = vor.u32 %v2577_v44, %v2120_v28  ;;  %v2375_v2 = vld [vmem:[%s4047_s1 + $0x2d0] sm:$0xf]  ;;  %v3409_v44 = vld [vmem:[%s4048_s2] sm:$0x3] }
  0x5f   : > { %575 = vmatmul.bf16.gmra.mxu2 %v245_v39  ;;  %v2376_v34 = vor.u32 %v2604_v31, %v2375_v2  ;;  %v3414_v48 = vperm.slane %v3409_v44, 1  ;;  %v2596_v2 = vld [vmem:[%s4047_s1 + $0x294] sm:$0xf0]  ;;  %v2595_v31 = vld [vmem:[%s4047_s1 + $0x294] sm:$0xf] }
  0x62   : > { %777 = vmatpush.bf16.msra.mxu1 %v2139_v55  ;;  %v2380_v55 = vor.u32 %v2603_v32, %v2377_v37 }
  0x63   : > { %604 = vmatmul.bf16.gmra.mxu3 %v245_v39  ;;  %v2602_v39 = vld [vmem:[%s4047_s1 + $0x2c4] sm:$0xf0] }
  0x66   : > { %778 = vmatpush.bf16.msra.mxu1 %v2131_v43  ;;  %v2369_v43 = vld [vmem:[%s4047_s1 + $0x2c8] sm:$0xf0] }
  0x67   : > { %v2372_v28 = vor.u32 %v2601_v45, %v2369_v43  ;;  %v2594_v45 = vld [vmem:[%s4047_s1 + $0x284] sm:$0xf0] }
  0x6a   : > { %779 = vmatpush.bf16.msra.mxu1 %v2123_v46 }
  0x6d   : > { %2048 = vmatmul.msk.bf16.gmra.mxu1 %vm3039_vm5, %v3025_v36  ;;  %2188 = vmatmul.msk.bf16.gmra.mxu0 %vm3294_vm1, %v2187_v54 }
  0x6e   : > { %1329 = vmatpush.bf16.msrb.mxu1 %v2396_v21 }
  0x72   : > { %1330 = vmatpush.bf16.msrb.mxu1 %v2388_v35  ;;  %v2343_v35 = vld [vmem:[%s4047_s1 + $0x290] sm:$0xf] }
  0x73   : > { %v2344_v37 = vor.u32 %v2596_v2, %v2343_v35 }
  0x76   : > { %1331 = vmatpush.bf16.msrb.mxu1 %v2380_v55 }
  0x7a   : > { %1332 = vmatpush.bf16.msrb.mxu1 %v2372_v28 }
  0x7d   : > { %2051 = vmatmul.msk.bf16.gmra.mxu1 %vm3157_vm9, %v3148_v29  ;;  %2191 = vmatmul.msk.bf16.gmra.mxu0 %vm3313_vm6, %v2190_v12 }
  0x8d   : > { %2194 = vmatmul.msk.bf16.vlgmr.msra.gmra.mxu1 %vm3226_vm12, %v2181_v19  ;;  %v2392_v19 = vor.u32 %v2608_v17, %v2391_v15  ;;  %v2351_v17 = vld [vmem:[%s4047_s1 + $0x2a0] sm:$0xf] }
  0x8e   : > { %v2352_v21 = vor.u32 %v2598_v18, %v2351_v17 }
  0x8f   : > { %1300 = vmatpush.bf16.msra.mxu0 %v2392_v19  ;;  %v2597_v19 = vld [vmem:[%s4047_s1 + $0x2a4] sm:$0xf] }
  0x90   : > { %v2356_v62 = vor.u32 %v2597_v19, %v2353_v22 }
  0x93   : > { %1301 = vmatpush.bf16.msra.mxu0 %v2384_v26 }
  0x97   : > { %1302 = vmatpush.bf16.msra.mxu0 %v2376_v34 }
  0x9d   : > { %2197 = vmatmul.msk.bf16.gmra.mxu1 %vm3264_vm14, %v2184_v38  ;;  %v2367_v38 = vld [vmem:[%s4047_s1 + $0x2c0] sm:$0xf] }
  0x9e   : > { %v2368_v11 = vor.u32 %v2602_v39, %v2367_v38  ;;  %v2335_v39 = vld [vmem:[%s4047_s1 + $0x280] sm:$0xf] }
  0xa0   : > { %1303 = vmatpush.bf16.msra.mxu0 %v2368_v11  ;;  %v2593_v11 = vld [vmem:[%s4047_s1 + $0x284] sm:$0xf] }
  0xaa   : > { %v3326_v53 = vpop.f32.mrf.mxu1  ;;  %v3346_v8 = vpop.f32.mrf.mxu0 }
  0xad   : > { %2200 = vmatmul.msk.bf16.gmra.mxu1 %vm3294_vm1, %v2187_v54  ;;  %v2600_v54 = vld [vmem:[%s4047_s1 + $0x2b4] sm:$0xf0] }
  0xae   : > { %v2360_v58 = vor.u32 %v2600_v54, %v2359_v50 }
  0xb0   : > { %1304 = vmatpush.bf16.msra.mxu0 %v2360_v58 }
  0xb2   : > { %v3330_v63 = vpop.f32.mrf.mxu1  ;;  %v3350_v10 = vpop.f32.mrf.mxu0 }
  0xb3   : > { %v561_v24 = vpop.f32.mrf.mxu2 }
  0xb4   : > { %1305 = vmatpush.bf16.msra.mxu0 %v2352_v21 }
  0xb6   : > { %v590_v13 = vpop.f32.mrf.mxu3 }
  0xb8   : > { %1306 = vmatpush.bf16.msra.mxu0 %v2344_v37  ;;  %v2305_v37 = vld [vmem:[%s4047_s1 + $0x278] sm:$0xf0] }
  0xba   : > { %v3332_v0 = vpop.f32.mrf.mxu1  ;;  %v3375_v25 = vpop.f32.mrf.mxu0 }
  0xbb   : > { %v563_v58 = vpop.f32.mrf.mxu2 }
  0xbd   : > { %2203 = vmatmul.msk.bf16.gmra.mxu1 %vm3313_vm6, %v2190_v12  ;;  %v2361_v12 = vld [vmem:[%s4047_s1 + $0x2b8] sm:$0xf0] }
  0xbe   : > { %v592_v27 = vpop.f32.mrf.mxu3 }
  0xc2   : > { %v3336_v16 = vpop.f32.mrf.mxu1  ;;  %v3411_v46 = vpop.f32.mrf.mxu0 }
  0xc3   : > { %v3474_v35 = vpop.f32.mrf.mxu2 }
  0xca   : > { %v452_v29 = vpop.f32.mrf.mxu1  ;;  %v752_v32 = vpop.f32.mrf.mxu0 }
  0xcb   : > { %v591_v47 = vadd.f32 %v590_v13, %v452_v29  ;;  %v595_v29 = vpop.f32.mrf.mxu3  ;;  %v2364_v13 = vor.u32 %v2599_v56, %v2361_v12 }
  0xcd   : > { %1333 = vmatpush.bf16.msrb.mxu1 %v2364_v13 }
  0xd1   : > { %1334 = vmatpush.bf16.msrb.mxu1 %v2356_v62 }
  0xd2   : > { %v3338_v60 = vpop.f32.mrf.mxu1  ;;  %v754_v13 = vpop.f32.mrf.mxu0 }
  0xd3   : > { %v593_v26 = vadd.f32 %v592_v27, %v3338_v60  ;;  %v2345_v60 = vld [vmem:[%s4047_s1 + $0x298] sm:$0xf0]  ;;  %v597_v38 = vpop.f32.mrf.mxu3 }
  0xd4   : > { %v2348_v27 = vor.u32 %v2595_v31, %v2345_v60 }
  0xd6   : > { %1335 = vmatpush.bf16.msrb.mxu1 %v2348_v27 }
  0xda   : > { %v3340_v4 = vpop.f32.mrf.mxu1 }
  0xdb   : > { %v596_v56 = vadd.f32 %v595_v29, %v3340_v4 }
  0xe2   : > { %v3342_v5 = vpop.f32.mrf.mxu1 }
  0xe3   : > { %v598_v22 = vadd.f32 %v597_v38, %v3342_v5  ;;  %v2623_v5 = vld [vmem:[%s4047_s1 + $0x274] sm:$0xf]  ;;  %v3483_v38 = vpop.f32.mrf.mxu0 }
  0xe4   : > { %v2308_v27 = vor.u32 %v2623_v5, %v2305_v37 }
  0xe6   : > { %1191 = vmatpush.bf16.msrb.mxu3 %v2308_v27 }
  0xea   : > { %v3344_v6 = vpop.f32.mrf.mxu1 }
  0xf2   : > { %v3348_v9 = vpop.f32.mrf.mxu1 }
  0xfa   : > { %v3352_v14 = vpop.f32.mrf.mxu1 }
 0x102   : > { %v3380_v1 = vpop.f32.mrf.mxu1 }
 0x10a   : > { %v781_v49 = vpop.f32.mrf.mxu1 }
 0x10b   : > { %v802_v57 = vadd.f32 %v781_v49, %v591_v47  ;;  %v2336_v47 = vor.u32 %v2594_v45, %v2335_v39  ;;  %v2337_v49 = vld [vmem:[%s4047_s1 + $0x288] sm:$0xf0]  ;;  %v564_v45 = vadd.f32 %v563_v58, %v3350_v10 }
 0x10c   : > { %v2340_v54 = vor.u32 %v2593_v11, %v2337_v49 }
 0x10d   : > { %v823_v15 = vadd.f32 %v3414_v48, %v802_v57  ;;  %1307 = vmatpush.bf16.msra.mxu0 %v2336_v47 }
 0x10e   : > { %1336 = vmatpush.bf16.msrb.mxu1 %v2340_v54 }
 0x10f   : > { %v2204_v20 = vmul.f32 -1.442695, %v823_v15 }
 0x111   : > { %2675 = vpow2.f32 %v2204_v20  ;;  %v600_v20 = vpop.f32.mrf.mxu3 }
 0x112   : > { %v783_v3 = vpop.f32.mrf.mxu1 }
 0x113   : > { %v804_v34 = vadd.f32 %v783_v3, %v593_v26  ;;  %v562_v3 = vadd.f32 %v561_v24, %v3346_v8 }
 0x115   : > { %v825_v55 = vadd.f32 %v3414_v48, %v804_v34  ;;  %v801_v11 = vadd.f32 %v752_v32, %v562_v3 }
 0x117   : > { %v2676_v43 = vpop.eup %2675  ;;  %v2205_v28 = vmul.f32 -1.442695, %v825_v55 }
 0x118   : > { %v862_v50 = vadd.f32 1.0, %v2676_v43  ;;  %v601_v43 = vadd.f32 %v600_v20, %v3344_v6  ;;  %v2297_v20 = vld [vmem:[%s4047_s1 + $0x268] sm:$0xf0] }
 0x119   : > { %2677 = vpow2.f32 %v2205_v28 }
 0x11a   : > { %2679 = vrcp.f32 %v862_v50  ;;  %v786_v57 = vpop.f32.mrf.mxu1  ;;  %v881_v31 = vand.u32 2147483648, %v862_v50  ;;  %v879_v60 = vand.u32 2147483647, %v862_v50  ;;  %vm875_vm7 = vweird.f32 %v862_v50 }
 0x11b   : > { %v806_v12 = vadd.f32 %v786_v57, %v596_v56  ;;  %v3492_v56 = vperm.slane %v3409_v44, 0 }
 0x11c   : > { %v882_v49 = vor.u32 1.1754944e-38, %v881_v31  ;;  %vm880_vm13 = vcmp.eq.f32.partialorder %v879_v60, 8.507059e+37 }
 0x11d   : > { %v827_v15 = vadd.f32 %v3414_v48, %v806_v12  ;;  %v822_v58 = vadd.f32 %v3492_v56, %v801_v11  ;;  %v803_v12 = vadd.f32 %v754_v13, %v564_v45  ;;  %v2303_v13 = vld [vmem:[%s4047_s1 + $0x270] sm:$0xf]  ;;  %v2295_v11 = vld [vmem:[%s4047_s1 + $0x260] sm:$0xf] }
 0x11f   : > { %v2678_v17 = vpop.eup %2677  ;;  %v2206_v18 = vmul.f32 -1.442695, %v827_v15  ;;  %v824_v5 = vadd.f32 %v3492_v56, %v803_v12  ;;  %v2619_v12 = vld [vmem:[%s4047_s1 + $0x254] sm:$0xf] }
 0x120   : > { %v2680_v19 = vpop.eup %2679  ;;  %v3469_v21 = vadd.f32 1.0, %v2678_v17 }
 0x121   : > { %v871_v62 = vmul.f32 %v2680_v19, %v862_v50  ;;  %2681 = vpow2.f32 %v2206_v18  ;;  %vm876_vm3 = vweird.f32 %v2680_v19  ;;  %v602_v50 = vpop.f32.mrf.mxu3 }
 0x122   : > { %2683 = vrcp.f32 %v3469_v21  ;;  %v788_v4 = vpop.f32.mrf.mxu1  ;;  %vm877_vm11 = vmor %vm875_vm7, %vm876_vm3  ;;  %v894_v15 = vand.u32 2147483647, %v3469_v21  ;;  %v896_v17 = vand.u32 2147483648, %v3469_v21  ;;  %vm890_vm2 = vweird.f32 %v3469_v21 }
 0x123   : > { %v872_v29 = vsub.f32 1.0, %v871_v62  ;;  %v808_v26 = vadd.f32 %v788_v4, %v598_v22  ;;  %v2624_v4 = vld [vmem:[%s4047_s1 + $0x274] sm:$0xf0]  ;;  %v603_v37 = vadd.f32 %v602_v50, %v3348_v9 }
 0x124   : > { %v2304_v31 = vor.u32 %v2624_v4, %v2303_v13  ;;  %v897_v60 = vor.u32 1.1754944e-38, %v896_v17  ;;  %vm895_vm7 = vcmp.eq.f32.partialorder %v894_v15, 8.507059e+37 }
 0x125   : > { %v873_v2 = vmul.f32 %v2680_v19, %v872_v29  ;;  %v829_v34 = vadd.f32 %v3414_v48, %v808_v26  ;;  %v568_v26 = vpop.f32.mrf.mxu2 }
 0x126   : > { %1162 = vmatpush.bf16.msrb.mxu2 %v2304_v31 }
 0x127   : > { %v2682_v55 = vpop.eup %2681  ;;  %v874_v8 = vadd.f32 %v2680_v19, %v873_v2  ;;  %v2207_v24 = vmul.f32 -1.442695, %v829_v34 }
 0x128   : > { %v2684_v39 = vpop.eup %2683  ;;  %v3488_v28 = vadd.f32 1.0, %v2682_v55  ;;  %v759_v55 = vpop.f32.mrf.mxu0 }
 0x129   : > { %v878_v47 = vsel %vm877_vm11, %v2680_v19, %v874_v8  ;;  %v886_v54 = vmul.f32 %v2684_v39, %v3469_v21  ;;  %2685 = vpow2.f32 %v2207_v24  ;;  %vm891_vm15 = vweird.f32 %v2684_v39  ;;  %v2621_v19 = vld [vmem:[%s4047_s1 + $0x264] sm:$0xf]  ;;  %v605_v50 = vpop.f32.mrf.mxu3 }
 0x12a   : > { %2687 = vrcp.f32 %v3488_v28  ;;  %v791_v10 = vpop.f32.mrf.mxu1  ;;  %v883_v57 = vsel %vm880_vm13, %v882_v49, %v878_v47  ;;  %v2300_v22 = vor.u32 %v2621_v19, %v2297_v20  ;;  %vm892_vm3 = vmor %vm890_vm2, %vm891_vm15  ;;  %vm905_vm13 = vweird.f32 %v3488_v28 }
 0x12b   : > { %v887_v32 = vsub.f32 1.0, %v886_v54  ;;  %v810_v6 = vadd.f32 %v791_v10, %v601_v43  ;;  %v990_v62 = vmul.f32 %v883_v57, %v822_v58  ;;  %v567_v54 = vadd.f32 %v3474_v35, %v3375_v25  ;;  %v2289_v25 = vld [vmem:[%s4047_s1 + $0x258] sm:$0xf0] }
 0x12c   : > { %1192 = vmatpush.bf16.msrb.mxu3 %v2300_v22  ;;  %v911_v10 = vand.u32 2147483648, %v3488_v28  ;;  %v569_v35 = vadd.f32 %v568_v26, %v3411_v46  ;;  %v2292_v17 = vor.u32 %v2619_v12, %v2289_v25  ;;  %v606_v4 = vadd.f32 %v605_v50, %v3352_v14  ;;  %v2265_v12 = vld [vmem:[%s4047_s1 + $0x228] sm:$0xf0]  ;;  %v2257_v26 = vld [vmem:[%s4047_s1 + $0x218] sm:$0xf0] }
 0x12d   : > { %v888_v18 = vmul.f32 %v2684_v39, %v887_v32  ;;  %v831_v44 = vadd.f32 %v3414_v48, %v810_v6  ;;  %v998_v9 = vadd.f32 %v990_v62, %v2911_v51  ;;  %v909_v32 = vand.u32 2147483647, %v3488_v28 }
 0x12e   : > { %v805_v62 = vadd.f32 %v3483_v38, %v567_v54  ;;  %v2617_v38 = vld [vmem:[%s4047_s1 + $0x244] sm:$0xf] }
 0x12f   : > { %v2686_v29 = vpop.eup %2685  ;;  %v889_v3 = vadd.f32 %v2684_v39, %v888_v18  ;;  %v2208_v2 = vmul.f32 -1.442695, %v831_v44  ;;  %v3545_v15 = vmul.f32 0.70710677, %v998_v9  ;;  %v2620_v18 = vld [vmem:[%s4047_s1 + $0x254] sm:$0xf0] }
 0x130   : > { %v3512_v34 = vpop.eup %2687  ;;  %v3517_v27 = vadd.f32 1.0, %v2686_v29  ;;  %1193 = vmatpush.bf16.msrb.mxu3 %v2292_v17  ;;  %vm910_vm2 = vcmp.eq.f32.partialorder %v909_v32, 8.507059e+37  ;;  %v2613_v32 = vld [vmem:[%s4047_s1 + $0x224] sm:$0xf] }
 0x131   : > { %v893_v8 = vsel %vm892_vm3, %v2684_v39, %v889_v3  ;;  %v901_v21 = vmul.f32 %v3512_v34, %v3488_v28  ;;  %2689 = vpow2.f32 %v2208_v2  ;;  %v2622_v39 = vld [vmem:[%s4047_s1 + $0x264] sm:$0xf0]  ;;  %vm906_vm11 = vweird.f32 %v3512_v34  ;;  %v571_v2 = vpop.f32.mrf.mxu2  ;;  %v2281_v28 = vld [vmem:[%s4047_s1 + $0x248] sm:$0xf0] }
 0x132   : > { %2691 = vrcp.f32 %v3517_v27  ;;  %v793_v24 = vpop.f32.mrf.mxu1  ;;  %v898_v45 = vsel %vm895_vm7, %v897_v60, %v893_v8  ;;  %v2296_v51 = vor.u32 %v2622_v39, %v2295_v11  ;;  %vm3566_vm15 = vmor %vm905_vm13, %vm906_vm11  ;;  %v912_v3 = vor.u32 1.1754944e-38, %v911_v10  ;;  %v2279_v8 = vld [vmem:[%s4047_s1 + $0x240] sm:$0xf]  ;;  %v2273_v10 = vld [vmem:[%s4047_s1 + $0x238] sm:$0xf0] }
 0x133   : > { %v902_v43 = vsub.f32 1.0, %v901_v21  ;;  %v812_v47 = vadd.f32 %v793_v24, %v603_v37  ;;  %v991_v49 = vmul.f32 %v898_v45, %v824_v5  ;;  %v2284_v60 = vor.u32 %v2617_v38, %v2281_v28  ;;  %v2618_v21 = vld [vmem:[%s4047_s1 + $0x244] sm:$0xf0]  ;;  %v762_v45 = vpop.f32.mrf.mxu0 }
 0x134   : > { %1163 = vmatpush.bf16.msrb.mxu2 %v2296_v51  ;;  %v807_v24 = vadd.f32 %v759_v55, %v569_v35  ;;  %v826_v39 = vadd.f32 %v3492_v56, %v805_v62  ;;  %v2615_v55 = vld [vmem:[%s4047_s1 + $0x234] sm:$0xf]  ;;  %v572_v51 = vadd.f32 %v571_v2, %v3326_v53  ;;  %vm920_vm7 = vweird.f32 %v3517_v27 }
 0x135   : > { %v903_v6 = vmul.f32 %v3512_v34, %v902_v43  ;;  %v833_v57 = vadd.f32 %v3414_v48, %v812_v47  ;;  %v999_v58 = vadd.f32 %v991_v49, %v2914_v52  ;;  %v2287_v52 = vld [vmem:[%s4047_s1 + $0x250] sm:$0xf]  ;;  %v926_v43 = vand.u32 2147483648, %v3517_v27  ;;  %1194 = vmatpush.bf16.msrb.mxu3 %v2284_v60  ;;  %v2263_v60 = vld [vmem:[%s4047_s1 + $0x220] sm:$0xf] }
 0x136   : > { %v2288_v13 = vor.u32 %v2620_v18, %v2287_v52  ;;  %v924_v47 = vand.u32 2147483647, %v3517_v27  ;;  %v2280_v49 = vor.u32 %v2618_v21, %v2279_v8  ;;  %v828_v35 = vadd.f32 %v3492_v56, %v807_v24  ;;  %v2614_v8 = vld [vmem:[%s4047_s1 + $0x224] sm:$0xf0] }
 0x137   : > { %v2690_v44 = vpop.eup %2689  ;;  %v2209_v19 = vmul.f32 -1.442695, %v833_v57  ;;  %v3553_v20 = vmul.f32 0.70710677, %v999_v58  ;;  %v904_v46 = vadd.f32 %v3512_v34, %v903_v6  ;;  %v607_v6 = vpop.f32.mrf.mxu3  ;;  %v2276_v58 = vor.u32 %v2615_v55, %v2273_v10 }
 0x138   : > { %v3556_v22 = vpop.eup %2691  ;;  %v3560_v29 = vadd.f32 1.0, %v2690_v44  ;;  %1164 = vmatpush.bf16.msrb.mxu2 %v2288_v13  ;;  %vm925_vm13 = vcmp.eq.f32.partialorder %v924_v47, 8.507059e+37  ;;  %v608_v13 = vadd.f32 %v607_v6, %v3380_v1  ;;  %v2616_v1 = vld [vmem:[%s4047_s1 + $0x234] sm:$0xf0]  ;;  %v809_v2 = vadd.f32 %v762_v45, %v572_v51  ;;  %v2609_v47 = vld [vmem:[%s4047_s1 + $0x204] sm:$0xf] }
 0x139   : > { %v916_v31 = vmul.f32 %v3556_v22, %v3517_v27  ;;  %2693 = vpow2.f32 %v2209_v19  ;;  %v1016_v14 = vpack.c.bf16 %v3553_v20, %v3545_v15  ;;  %v908_v5 = vsel %vm3566_vm15, %v3512_v34, %v904_v46  ;;  %1195 = vmatpush.bf16.msrb.mxu3 %v2276_v58  ;;  %v2611_v27 = vld [vmem:[%s4047_s1 + $0x214] sm:$0xf]  ;;  %v573_v38 = vpop.f32.mrf.mxu2 }
 0x13a   : > { %2695 = vrcp.f32 %v3560_v29  ;;  %v796_v37 = vpop.f32.mrf.mxu1  ;;  %v913_v34 = vsel %vm910_vm2, %v912_v3, %v908_v5  ;;  %vm921_vm3 = vweird.f32 %v3556_v22  ;;  %v927_v19 = vor.u32 1.1754944e-38, %v926_v43  ;;  %v2271_v3 = vld [vmem:[%s4047_s1 + $0x230] sm:$0xf] }
 0x13b   : > { %v917_v9 = vsub.f32 1.0, %v916_v31  ;;  %v814_v11 = vadd.f32 %v796_v37, %v606_v4  ;;  %1308 = vmatmul.bf16.vlgmr.msra.gmra.mxu0 %v1016_v14  ;;  %1337 = vmatmul.bf16.vlgmr.msrb.gmra.mxu1 %v1016_v14  ;;  %v992_v57 = vmul.f32 %v913_v34, %v826_v39  ;;  %vm3618_vm11 = vmor %vm920_vm7, %vm921_vm3  ;;  %v2268_v46 = vor.u32 %v2613_v32, %v2265_v12  ;;  %v2739_v39 = vld [vmem:[%s2899_s17 + $0x18] sm:$0xff] }
 0x13c   : > { %1165 = vmatpush.bf16.msrb.mxu2 %v2280_v49  ;;  %v941_v21 = vand.u32 2147483648, %v3560_v29  ;;  %v939_v24 = vand.u32 2147483647, %v3560_v29  ;;  %v2260_v45 = vor.u32 %v2611_v27, %v2257_v26  ;;  %v2249_v49 = vld [vmem:[%s4047_s1 + $0x208] sm:$0xf0]  ;;  %v2264_v55 = vor.u32 %v2614_v8, %v2263_v60 }
 0x13d   : > { %v918_v54 = vmul.f32 %v3556_v22, %v917_v9  ;;  %v835_v50 = vadd.f32 %v3414_v48, %v814_v11  ;;  %1196 = vmatpush.bf16.msrb.mxu3 %v2268_v46  ;;  %v2272_v9 = vor.u32 %v2616_v1, %v2271_v3  ;;  %vm935_vm2 = vweird.f32 %v3560_v29  ;;  %v2465_v60 = vld [vmem:[%s4047_s1 + $0x1e8] sm:$0xf0] }
 0x13e   : > { %vm940_vm7 = vcmp.eq.f32.partialorder %v939_v24, 8.507059e+37  ;;  %v574_v53 = vadd.f32 %v573_v38, %v3330_v63 }
 0x13f   : > { %v2694_v25 = vpop.eup %2693  ;;  %v2210_v17 = vmul.f32 -1.442695, %v835_v50  ;;  %v919_v52 = vadd.f32 %v3556_v22, %v918_v54  ;;  %v830_v54 = vadd.f32 %v3492_v56, %v809_v2 }
 0x140   : > { %v3612_v18 = vpop.eup %2695  ;;  %v3614_v44 = vadd.f32 1.0, %v2694_v25  ;;  %1166 = vmatpush.bf16.msrb.mxu2 %v2272_v9  ;;  %v942_v25 = vor.u32 1.1754944e-38, %v941_v21 }
 0x141   : > { %v931_v62 = vmul.f32 %v3612_v18, %v3560_v29  ;;  %2697 = vpow2.f32 %v2210_v17  ;;  %v923_v4 = vsel %vm3618_vm11, %v3556_v22, %v919_v52  ;;  %v1000_v22 = vadd.f32 %v992_v57, %v3073_v61  ;;  %v764_v61 = vpop.f32.mrf.mxu0  ;;  %v2612_v57 = vld [vmem:[%s4047_s1 + $0x214] sm:$0xf0]  ;;  %1197 = vmatpush.bf16.msrb.mxu3 %v2260_v45  ;;  %v576_v26 = vpop.f32.mrf.mxu2 }
 0x142   : > { %2699 = vrcp.f32 %v3614_v44  ;;  %v798_v31 = vpop.f32.mrf.mxu1  ;;  %v928_v14 = vsel %vm925_vm13, %v927_v19, %v923_v4  ;;  %vm936_vm15 = vweird.f32 %v3612_v18  ;;  %v2610_v4 = vld [vmem:[%s4047_s1 + $0x204] sm:$0xf0]  ;;  %v956_v63 = vand.u32 2147483648, %v3614_v44 }
 0x143   : > { %v932_v28 = vsub.f32 1.0, %v931_v62  ;;  %v816_v5 = vadd.f32 %v798_v31, %v608_v13  ;;  %v993_v37 = vmul.f32 %v928_v14, %v828_v35  ;;  %v3661_v50 = vmul.f32 0.70710677, %v1000_v22  ;;  %vm937_vm3 = vmor %vm935_vm2, %vm936_vm15  ;;  %v2247_v62 = vld [vmem:[%s4047_s1 + $0x200] sm:$0xf] }
 0x144   : > { %v2252_v35 = vor.u32 %v2609_v47, %v2249_v49  ;;  %1167 = vmatpush.bf16.msrb.mxu2 %v2264_v55  ;;  %v954_v1 = vand.u32 2147483647, %v3614_v44  ;;  %v2248_v2 = vor.u32 %v2610_v4, %v2247_v62  ;;  %v2639_v31 = vld [vmem:[%s4047_s1 + $0x1f4] sm:$0xf]  ;;  %v2473_v14 = vld [vmem:[%s4047_s1 + $0x1f8] sm:$0xf0]  ;;  %vm950_vm13 = vweird.f32 %v3614_v44 }
 0x145   : > { %v933_v11 = vmul.f32 %v3612_v18, %v932_v28  ;;  %v837_v34 = vadd.f32 %v3414_v48, %v816_v5  ;;  %v1001_v43 = vadd.f32 %v2739_v39, %v993_v37  ;;  %v2255_v48 = vld [vmem:[%s4047_s1 + $0x210] sm:$0xf]  ;;  %v2637_v22 = vld [vmem:[%s4047_s1 + $0x1e4] sm:$0xf]  ;;  %v2476_v37 = vor.u32 %v2639_v31, %v2473_v14  ;;  %v2449_v14 = vld [vmem:[%s4047_s1 + $0x1c8] sm:$0xf0] }
 0x146   : > { %v2256_v46 = vor.u32 %v2612_v57, %v2255_v48  ;;  %1198 = vmatpush.bf16.msrb.mxu3 %v2252_v35  ;;  %v957_v45 = vor.u32 1.1754944e-38, %v956_v63  ;;  %vm955_vm2 = vcmp.eq.f32.partialorder %v954_v1, 8.507059e+37  ;;  %v2740_v47 = vld [vmem:[%s2899_s17 + $0x20] sm:$0xff] }
 0x147   : > { %v2698_v10 = vpop.eup %2697  ;;  %v2211_v32 = vmul.f32 -1.442695, %v837_v34  ;;  %v3667_v51 = vmul.f32 0.70710677, %v1001_v43  ;;  %v934_v6 = vadd.f32 %v3612_v18, %v933_v11  ;;  %v577_v11 = vadd.f32 %v576_v26, %v3332_v0  ;;  %v2633_v1 = vld [vmem:[%s4047_s1 + $0x1c4] sm:$0xf] }
 0x148   : > { %v2700_v58 = vpop.eup %2699  ;;  %v3673_v12 = vadd.f32 1.0, %v2698_v10  ;;  %1168 = vmatpush.bf16.msrb.mxu2 %v2256_v46  ;;  %v2741_v10 = vld [vmem:[%s2899_s17 + $0x28] sm:$0xff] }
 0x149   : > { %v946_v29 = vmul.f32 %v2700_v58, %v3614_v44  ;;  %2701 = vpow2.f32 %v2211_v32  ;;  %v1017_v17 = vpack.c.bf16 %v3667_v51, %v3661_v50  ;;  %v938_v52 = vsel %vm937_vm3, %v3612_v18, %v934_v6  ;;  %v767_v28 = vpop.f32.mrf.mxu0  ;;  %v578_v57 = vpop.f32.mrf.mxu2 }
 0x14a   : > { %2703 = vrcp.f32 %v3673_v12  ;;  %v943_v19 = vsel %vm940_vm7, %v942_v25, %v938_v52  ;;  %v811_v18 = vadd.f32 %v764_v61, %v574_v53  ;;  %vm951_vm11 = vweird.f32 %v2700_v58  ;;  %1512 = vmatpush.bf16.msra.mxu3 %v2476_v37 }
 0x14b   : > { %v947_v27 = vsub.f32 1.0, %v946_v29  ;;  %1313 = vmatmul.bf16.gmra.mxu0 %v1017_v17  ;;  %1342 = vmatmul.bf16.gmra.mxu1 %v1017_v17  ;;  %v994_v13 = vmul.f32 %v943_v19, %v830_v54  ;;  %vm952_vm15 = vmor %vm950_vm13, %vm951_vm11  ;;  %v2468_v44 = vor.u32 %v2637_v22, %v2465_v60  ;;  %v813_v54 = vadd.f32 %v767_v28, %v577_v11  ;;  %v2471_v22 = vld [vmem:[%s4047_s1 + $0x1f0] sm:$0xf] }
 0x14c   : > { %v832_v21 = vadd.f32 %v3492_v56, %v811_v18  ;;  %1169 = vmatpush.bf16.msrb.mxu2 %v2248_v2  ;;  %v971_v55 = vand.u32 2147483648, %v3673_v12  ;;  %v969_v6 = vand.u32 2147483647, %v3673_v12  ;;  %vm965_vm7 = vweird.f32 %v3673_v12 }
 0x14d   : > { %v948_v3 = vmul.f32 %v2700_v58, %v947_v27  ;;  %v1002_v49 = vadd.f32 %v2740_v47, %v994_v13  ;;  %v834_v29 = vadd.f32 %v3492_v56, %v813_v54  ;;  %v2452_v60 = vor.u32 %v2633_v1, %v2449_v14  ;;  %v2632_v1 = vld [vmem:[%s4047_s1 + $0x1b4] sm:$0xf0]  ;;  %v2625_v14 = vld [vmem:[%s4047_s1 + $0x184] sm:$0xf] }
 0x14e   : > { %1513 = vmatpush.bf16.msra.mxu3 %v2468_v44  ;;  %v972_v17 = vor.u32 1.1754944e-38, %v971_v55  ;;  %vm970_vm13 = vcmp.eq.f32.partialorder %v969_v6, 8.507059e+37  ;;  %v1361_v33 = vrot.slane %v3667_v51, 6 }
 0x14f   : > { %v2702_v38 = vpop.eup %2701  ;;  %v949_v5 = vadd.f32 %v2700_v58, %v948_v3  ;;  %v3716_v0 = vmul.f32 0.70710677, %v1002_v49  ;;  %v2635_v3 = vld [vmem:[%s4047_s1 + $0x1d4] sm:$0xf] }
 0x150   : > { %v2704_v8 = vpop.eup %2703  ;;  %v3705_v24 = vadd.f32 1.0, %v2702_v38 }
 0x151   : > { %v961_v9 = vmul.f32 %v2704_v8, %v3673_v12  ;;  %v953_v61 = vsel %vm952_vm15, %v2700_v58, %v949_v5  ;;  %vm966_vm3 = vweird.f32 %v2704_v8  ;;  %v769_v52 = vpop.f32.mrf.mxu0  ;;  %v579_v12 = vadd.f32 %v578_v57, %v3336_v16  ;;  %v2457_v16 = vld [vmem:[%s4047_s1 + $0x1d8] sm:$0xf0]  ;;  %v2640_v5 = vld [vmem:[%s4047_s1 + $0x1f4] sm:$0xf0]  ;;  %v2638_v57 = vld [vmem:[%s4047_s1 + $0x1e4] sm:$0xf0] }
 0x152   : > { %2705 = vrcp.f32 %v3705_v24  ;;  %v958_v34 = vsel %vm955_vm2, %v957_v45, %v953_v61  ;;  %vm967_vm11 = vmor %vm965_vm7, %vm966_vm3  ;;  %v986_v18 = vand.u32 2147483648, %v3705_v24  ;;  %v984_v26 = vand.u32 2147483647, %v3705_v24  ;;  %v2742_v45 = vld [vmem:[%s2899_s17 + $0x30] sm:$0xff]  ;;  %v2743_v61 = vld [vmem:[%s2899_s17 + $0x38] sm:$0xff]  ;;  %s231_s17 = scalar_lea.vmem %s4051_s5, %s2543_s9 }
 0x153   : > { %v962_v39 = vsub.f32 1.0, %v961_v9  ;;  %v995_v43 = vmul.f32 %v958_v34, %v832_v21  ;;  %v815_v4 = vadd.f32 %v769_v52, %v579_v12  ;;  %vm980_vm2 = vweird.f32 %v3705_v24 }
 0x154   : > { %v2460_v31 = vor.u32 %v2635_v3, %v2457_v16  ;;  %v987_v28 = vor.u32 1.1754944e-38, %v986_v18  ;;  %vm985_vm7 = vcmp.eq.f32.partialorder %v984_v26, 8.507059e+37  ;;  %v1038_v34 = vrot.slane %v3553_v20, 7  ;;  %v2425_v26 = vld [vmem:[%s4047_s1 + $0x198] sm:$0xf0] }
 0x155   : > { %v963_v48 = vmul.f32 %v2704_v8, %v962_v39  ;;  %v1003_v32 = vadd.f32 %v2741_v10, %v995_v43  ;;  %v836_v38 = vadd.f32 %v3492_v56, %v815_v4  ;;  %v1037_v43 = vrot.slane %v3545_v15, 7  ;;  %v2441_v10 = vld [vmem:[%s4047_s1 + $0x1b8] sm:$0xf0]  ;;  %v2439_v3 = vld [vmem:[%s4047_s1 + $0x1b0] sm:$0xf] }
 0x156   : > { %1514 = vmatpush.bf16.msra.mxu3 %v2460_v31  ;;  %v1040_v12 = vrot.slane %v3667_v51, 7  ;;  %v2440_v31 = vor.u32 %v2632_v1, %v2439_v3 }
 0x157   : > { %v3718_v58 = vmul.f32 0.70710677, %v1003_v32  ;;  %v964_v25 = vadd.f32 %v2704_v8, %v963_v48  ;;  %v1051_v49 = vsel %vm296_vm0, %v1037_v43, %v1038_v34  ;;  %v2631_v48 = vld [vmem:[%s4047_s1 + $0x1b4] sm:$0xf]  ;;  %v2463_v32 = vld [vmem:[%s4047_s1 + $0x1e0] sm:$0xf] }
 0x158   : > { %v2706_v35 = vpop.eup %2705  ;;  %v2444_v6 = vor.u32 %v2631_v48, %v2441_v10  ;;  %v1359_v48 = vrot.slane %v3553_v20, 6 }
 0x159   : > { %v976_v53 = vmul.f32 %v2706_v35, %v3705_v24  ;;  %v1018_v19 = vpack.c.bf16 %v3718_v58, %v3716_v0  ;;  %v968_v46 = vsel %vm967_vm11, %v2704_v8, %v964_v25  ;;  %vm981_vm15 = vweird.f32 %v2706_v35  ;;  %v2433_v25 = vld [vmem:[%s4047_s1 + $0x1a8] sm:$0xf0] }
 0x15a   : > { %v973_v27 = vsel %vm970_vm13, %v972_v17, %v968_v46  ;;  %vm982_vm3 = vmor %vm980_vm2, %vm981_vm15  ;;  %v2472_v8 = vor.u32 %v2640_v5, %v2471_v22  ;;  %1515 = vmatpush.bf16.msra.mxu3 %v2452_v60  ;;  %v2636_v17 = vld [vmem:[%s4047_s1 + $0x1d4] sm:$0xf0]  ;;  %v2436_v52 = vor.u32 %v2629_v30, %v2433_v25  ;;  %v2634_v46 = vld [vmem:[%s4047_s1 + $0x1c4] sm:$0xf0]  ;;  %v1042_v60 = vrot.slane %v3718_v58, 7 }
 0x15b   : > { %v977_v13 = vsub.f32 1.0, %v976_v53  ;;  %1318 = vmatmul.bf16.gmra.mxu0 %v1018_v19  ;;  %1347 = vmatmul.bf16.gmra.mxu1 %v1018_v19  ;;  %v996_v62 = vmul.f32 %v973_v27, %v834_v29  ;;  %v2455_v29 = vld [vmem:[%s4047_s1 + $0x1d0] sm:$0xf]  ;;  %v2447_v19 = vld [vmem:[%s4047_s1 + $0x1c0] sm:$0xf]  ;;  %v1363_v23 = vrot.slane %v3718_v58, 6 }
 0x15c   : > { %1483 = vmatpush.bf16.msra.mxu2 %v2472_v8  ;;  %v2456_v53 = vor.u32 %v2636_v17, %v2455_v29  ;;  %v2448_v27 = vor.u32 %v2634_v46, %v2447_v19  ;;  %v2417_v22 = vld [vmem:[%s4047_s1 + $0x188] sm:$0xf0]  ;;  %v2423_v5 = vld [vmem:[%s4047_s1 + $0x190] sm:$0xf] }
 0x15d   : > { %v978_v63 = vmul.f32 %v2706_v35, %v977_v13  ;;  %v1004_v9 = vadd.f32 %v2742_v45, %v996_v62  ;;  %v1039_v13 = vrot.slane %v3661_v50, 7  ;;  %v2626_v45 = vld [vmem:[%s4047_s1 + $0x184] sm:$0xf0] }
 0x15e   : > { %1516 = vmatpush.bf16.msra.mxu3 %v2444_v6  ;;  %v1360_v6 = vrot.slane %v3661_v50, 6 }
 0x15f   : > { %v979_v2 = vadd.f32 %v2706_v35, %v978_v63  ;;  %v3749_v56 = vmul.f32 0.70710677, %v1004_v9  ;;  %v1049_v62 = vsel %vm296_vm0, %v1039_v13, %v1040_v12  ;;  %v1050_v4 = vsel %vm296_vm0, %v1038_v34, %v1039_v13  ;;  %v2627_v63 = vld [vmem:[%s4047_s1 + $0x194] sm:$0xf] }
 0x160   : > { %v2313_v18 = vpack.c.bf16 %v1049_v62, %v1050_v4  ;;  %v2428_v16 = vor.u32 %v2627_v63, %v2425_v26  ;;  %v1371_v30 = vsel %vm626_vm10, %v1359_v48, %v1360_v6 }
 0x161   : > { %v983_v37 = vsel %vm982_vm3, %v2706_v35, %v979_v2  ;;  %v2464_v35 = vor.u32 %v2638_v57, %v2463_v32  ;;  %v2630_v2 = vld [vmem:[%s4047_s1 + $0x1a4] sm:$0xf0]  ;;  %v1370_v57 = vsel %vm626_vm10, %v1360_v6, %v1361_v33  ;;  %v1364_v42 = vrot.slane %v3749_v56, 6 }
 0x162   : > { %v988_v21 = vsel %vm985_vm7, %v987_v28, %v983_v37  ;;  %1517 = vmatpush.bf16.msra.mxu3 %v2436_v52  ;;  %v2432_v28 = vor.u32 %v2630_v2, %v2431_v7  ;;  %v2628_v37 = vld [vmem:[%s4047_s1 + $0x194] sm:$0xf0]  ;;  %v2481_v25 = vpack.c.bf16 %v1370_v57, %v1371_v30  ;;  %v2643_v57 = vld [vmem:[%s4049_s3 + $0x10] sm:$0xff] }
 0x163   : > { %v997_v24 = vmul.f32 %v988_v21, %v836_v38  ;;  %1484 = vmatpush.bf16.msra.mxu2 %v2464_v35  ;;  %v2420_v38 = vor.u32 %v2625_v14, %v2417_v22  ;;  %v2424_v8 = vor.u32 %v2628_v37, %v2423_v5  ;;  %v1041_v21 = vrot.slane %v3716_v0, 7  ;;  %v2648_v14 = vld [vmem:[%s4049_s3 + $0x38] sm:$0xff]  ;;  %v3933_v22 = vld [vmem:[%s4048_s2 + $0x2] sm:$0x3] }
 0x164   : > { %v1362_v35 = vrot.slane %v3716_v0, 6  ;;  %v1367_v19 = vsel %vm626_vm10, %v1363_v23, %v1364_v42  ;;  %1826 = vmatpush.bf16.msrb.mxu0 %v2648_v14 }
 0x165   : > { %v1005_v44 = vadd.f32 %v2743_v61, %v997_v24  ;;  %v2415_v24 = vld [vmem:[%s4047_s1 + $0x180] sm:$0xf]  ;;  %v1047_v9 = vsel %vm296_vm0, %v1041_v21, %v1042_v60  ;;  %v1048_v61 = vsel %vm296_vm0, %v1040_v12, %v1041_v21 }
 0x166   : > { %1518 = vmatpush.bf16.msra.mxu3 %v2428_v16  ;;  %v2316_v34 = vpack.c.bf16 %v1047_v9, %v1048_v61  ;;  %v1368_v29 = vsel %vm626_vm10, %v1362_v35, %v1363_v23  ;;  %v1369_v17 = vsel %vm626_vm10, %v1361_v33, %v1362_v35  ;;  %v2646_v9 = vld [vmem:[%s4049_s3 + $0x28] sm:$0xff] }
 0x167   : > { %v3751_v11 = vmul.f32 0.70710677, %v1005_v44  ;;  %1485 = vmatpush.bf16.msra.mxu2 %v2456_v53  ;;  %v2416_v44 = vor.u32 %v2626_v45, %v2415_v24  ;;  %v2484_v52 = vpack.c.bf16 %v1368_v29, %v1369_v17  ;;  %v2642_v17 = vld [vmem:[%s4049_s3 + $0x8] sm:$0xff] }
 0x169   : > { %v1019_v39 = vpack.c.bf16 %v3751_v11, %v3749_v56  ;;  %v1044_v47 = vrot.slane %v3751_v11, 7  ;;  %v1365_v40 = vrot.slane %v3751_v11, 6 }
 0x16a   : > { %1519 = vmatpush.bf16.msra.mxu3 %v2420_v38 }
 0x16b   : > { %1323 = vmatmul.bf16.gmra.mxu0 %v1019_v39  ;;  %1352 = vmatmul.bf16.gmra.mxu1 %v1019_v39  ;;  %v1052_v54 = vsel %vm296_vm0, %v1044_v47, %v1037_v43  ;;  %v1043_v39 = vrot.slane %v3749_v56, 7  ;;  %v1366_v53 = vsel %vm626_vm10, %v1364_v42, %v1365_v40 }
 0x16c   : > { %v2310_v55 = vpack.c.bf16 %v1051_v49, %v1052_v54  ;;  %1486 = vmatpush.bf16.msra.mxu2 %v2448_v27  ;;  %v2487_v46 = vpack.c.bf16 %v1366_v53, %v1367_v19 }
 0x16d   : > { %v1045_v43 = vsel %vm296_vm0, %v1043_v39, %v1044_v47  ;;  %v1046_v49 = vsel %vm296_vm0, %v1042_v60, %v1043_v39 }
 0x16e   : > { %2311 = vmatmul.msk.bf16.vlgmr.msrb.gmra.mxu2 %vm3013_vm4, %v2310_v55  ;;  %2323 = vmatmul.msk.bf16.vlgmr.msrb.gmra.mxu3 %vm3013_vm4, %v2310_v55  ;;  %v2319_v54 = vpack.c.bf16 %v1045_v43, %v1046_v49  ;;  %v1358_v55 = vrot.slane %v3545_v15, 6  ;;  %v2645_v43 = vld [vmem:[%s4049_s3 + $0x20] sm:$0xff] }
 0x170   : > { %1487 = vmatpush.bf16.msra.mxu2 %v2440_v31  ;;  %v1373_v10 = vsel %vm626_vm10, %v1365_v40, %v1358_v55  ;;  %v1372_v47 = vsel %vm626_vm10, %v1358_v55, %v1359_v48 }
 0x171   : > { %v2478_v32 = vpack.c.bf16 %v1372_v47, %v1373_v10  ;;  %v2644_v10 = vld [vmem:[%s4049_s3 + $0x18] sm:$0xff] }
 0x174   : > { %1488 = vmatpush.bf16.msra.mxu2 %v2432_v28  ;;  %v3936_v28 = vperm.slane %v3933_v22, 1 }
 0x178   : > { %1489 = vmatpush.bf16.msra.mxu2 %v2424_v8  ;;  %v2647_v8 = vld [vmem:[%s4049_s3 + $0x30] sm:$0xff] }
 0x179   : > { %1827 = vmatpush.bf16.msrb.mxu0 %v2647_v8 }
 0x17c   : > { %1490 = vmatpush.bf16.msra.mxu2 %v2416_v44 }
 0x17d   : > { %1828 = vmatpush.bf16.msrb.mxu0 %v2646_v9 }
 0x17e   : > { %2314 = vmatmul.msk.bf16.gmra.mxu2 %vm3142_vm8, %v2313_v18  ;;  %2326 = vmatmul.msk.bf16.gmra.mxu3 %vm3142_vm8, %v2313_v18 }
 0x180   : > { %2657 = vmatpush.bf16.msrb.mxu2 %v2648_v14 }
 0x181   : > { %1829 = vmatpush.bf16.msrb.mxu0 %v2645_v43 }
 0x184   : > { %2658 = vmatpush.bf16.msrb.mxu2 %v2647_v8 }
 0x185   : > { %1830 = vmatpush.bf16.msrb.mxu0 %v2644_v10 }
 0x188   : > { %2659 = vmatpush.bf16.msrb.mxu2 %v2646_v9 }
 0x189   : > { %1831 = vmatpush.bf16.msrb.mxu0 %v2643_v57 }
 0x18c   : > { %2660 = vmatpush.bf16.msrb.mxu2 %v2645_v43 }
 0x18d   : > { %1832 = vmatpush.bf16.msrb.mxu0 %v2642_v17 }
 0x18e   : > { %2317 = vmatmul.msk.bf16.gmra.mxu2 %vm3039_vm5, %v2316_v34  ;;  %2329 = vmatmul.msk.bf16.gmra.mxu3 %vm3039_vm5, %v2316_v34 }
 0x190   : > { %2661 = vmatpush.bf16.msrb.mxu2 %v2644_v10 }
 0x194   : > { %2662 = vmatpush.bf16.msrb.mxu2 %v2643_v57 }
 0x198   : > { %2663 = vmatpush.bf16.msrb.mxu2 %v2642_v17 }
 0x19e   : > { %2320 = vmatmul.msk.bf16.gmra.mxu2 %vm3157_vm9, %v2319_v54  ;;  %2332 = vmatmul.msk.bf16.gmra.mxu3 %vm3157_vm9, %v2319_v54 }
 0x1ae   : > { %2479 = vmatmul.msk.bf16.vlgmr.msra.gmra.mxu2 %vm3226_vm12, %v2478_v32  ;;  %2491 = vmatmul.msk.bf16.vlgmr.msra.gmra.mxu3 %vm3226_vm12, %v2478_v32 }
 0x1b8   : > { %v1338_v16 = vpop.f32.mrf.mxu1  ;;  %v1309_v34 = vpop.f32.mrf.mxu0 }
 0x1be   : > { %2482 = vmatmul.msk.bf16.gmra.mxu2 %vm3264_vm14, %v2481_v25  ;;  %2494 = vmatmul.msk.bf16.gmra.mxu3 %vm3264_vm14, %v2481_v25 }
 0x1c0   : > { %v1340_v31 = vpop.f32.mrf.mxu1  ;;  %v1311_v30 = vpop.f32.mrf.mxu0 }
 0x1c8   : > { %v1343_v21 = vpop.f32.mrf.mxu1 }
 0x1ce   : > { %2485 = vmatmul.msk.bf16.gmra.mxu2 %vm3294_vm1, %v2484_v52  ;;  %2497 = vmatmul.msk.bf16.gmra.mxu3 %vm3294_vm1, %v2484_v52 }
 0x1d0   : > { %v1345_v55 = vpop.f32.mrf.mxu1 }
 0x1d8   : > { %v1348_v53 = vpop.f32.mrf.mxu1 }
 0x1de   : > { %2488 = vmatmul.msk.bf16.gmra.mxu2 %vm3313_vm6, %v2487_v46  ;;  %2500 = vmatmul.msk.bf16.gmra.mxu3 %vm3313_vm6, %v2487_v46 }
 0x1f1   : > { %v3905_v12 = vpop.f32.mrf.mxu2  ;;  %v1200_v27 = vpop.f32.mrf.mxu3 }
 0x1f2   : > { %v1339_v38 = vadd.f32 %v1338_v16, %v1200_v27  ;;  %v1310_v27 = vadd.f32 %v1309_v34, %v3905_v12 }
 0x1f9   : > { %v3907_v59 = vpop.f32.mrf.mxu2  ;;  %v1202_v13 = vpop.f32.mrf.mxu3 }
 0x1fa   : > { %v1341_v61 = vadd.f32 %v1340_v31, %v1202_v13  ;;  %v2641_v31 = vld [vmem:[%s4049_s3] sm:$0xff] }
 0x1fb   : > { %1833 = vmatpush.bf16.msrb.mxu0 %v2641_v31  ;;  %2664 = vmatpush.bf16.msrb.mxu2 %v2641_v31 }
 0x201   : > { %v3909_v62 = vpop.f32.mrf.mxu2  ;;  %v1205_v4 = vpop.f32.mrf.mxu3 }
 0x202   : > { %v1344_v32 = vadd.f32 %v1343_v21, %v1205_v4  ;;  %v1314_v21 = vpop.f32.mrf.mxu0 }
 0x209   : > { %v3911_v18 = vpop.f32.mrf.mxu2  ;;  %v1207_v41 = vpop.f32.mrf.mxu3 }
 0x20a   : > { %v1346_v19 = vadd.f32 %v1345_v55, %v1207_v41 }
 0x211   : > { %v3913_v63 = vpop.f32.mrf.mxu3  ;;  %v3915_v26 = vpop.f32.mrf.mxu2 }
 0x219   : > { %v3917_v3 = vpop.f32.mrf.mxu3  ;;  %v3919_v36 = vpop.f32.mrf.mxu2 }
 0x221   : > { %v3921_v1 = vpop.f32.mrf.mxu3  ;;  %v3923_v7 = vpop.f32.mrf.mxu2 }
 0x229   : > { %v3925_v2 = vpop.f32.mrf.mxu3  ;;  %v3938_v5 = vpop.f32.mrf.mxu2 }
 0x231   : > { %v1521_v37 = vpop.f32.mrf.mxu3  ;;  %v1492_v49 = vpop.f32.mrf.mxu2 }
 0x232   : > { %v1542_v60 = vadd.f32 %v1521_v37, %v1339_v38  ;;  %v1541_v14 = vadd.f32 %v1492_v49, %v1310_v27  ;;  %v3969_v38 = vperm.slane %v3933_v22, 0 }
 0x234   : > { %v1563_v24 = vadd.f32 %v3936_v28, %v1542_v60 }
 0x236   : > { %v2501_v45 = vmul.f32 -1.442695, %v1563_v24 }
 0x238   : > { %2707 = vpow2.f32 %v2501_v45 }
 0x239   : > { %v1523_v44 = vpop.f32.mrf.mxu3  ;;  %v1494_v23 = vpop.f32.mrf.mxu2 }
 0x23a   : > { %v1544_v39 = vadd.f32 %v1523_v44, %v1341_v61  ;;  %v1349_v61 = vadd.f32 %v1348_v53, %v3913_v63  ;;  %v1562_v44 = vadd.f32 %v3969_v38, %v1541_v14 }
 0x23c   : > { %v1565_v54 = vadd.f32 %v3936_v28, %v1544_v39 }
 0x23e   : > { %v2708_v40 = vpop.eup %2707  ;;  %v2502_v48 = vmul.f32 -1.442695, %v1565_v54  ;;  %v1312_v54 = vadd.f32 %v1311_v30, %v3907_v59 }
 0x23f   : > { %v1602_v47 = vadd.f32 1.0, %v2708_v40 }
 0x240   : > { %2709 = vpow2.f32 %v2502_v48  ;;  %v1350_v48 = vpop.f32.mrf.mxu1 }
 0x241   : > { %2711 = vrcp.f32 %v1602_v47  ;;  %v1526_v33 = vpop.f32.mrf.mxu3  ;;  %v1621_v41 = vand.u32 2147483648, %v1602_v47  ;;  %v1619_v12 = vand.u32 2147483647, %v1602_v47  ;;  %vm1615_vm4 = vweird.f32 %v1602_v47  ;;  %v1497_v22 = vpop.f32.mrf.mxu2 }
 0x242   : > { %v1546_v6 = vadd.f32 %v1526_v33, %v1344_v32  ;;  %v1543_v32 = vadd.f32 %v1494_v23, %v1312_v54  ;;  %v1351_v17 = vadd.f32 %v1350_v48, %v3917_v3 }
 0x243   : > { %v1622_v39 = vor.u32 1.1754944e-38, %v1621_v41  ;;  %vm1620_vm8 = vcmp.eq.f32.partialorder %v1619_v12, 8.507059e+37 }
 0x244   : > { %v1567_v25 = vadd.f32 %v3936_v28, %v1546_v6 }
 0x246   : > { %v2710_v35 = vpop.eup %2709  ;;  %v2503_v29 = vmul.f32 -1.442695, %v1567_v25 }
 0x247   : > { %v2712_v52 = vpop.eup %2711  ;;  %v3961_v42 = vadd.f32 1.0, %v2710_v35 }
 0x248   : > { %v1611_v46 = vmul.f32 %v2712_v52, %v1602_v47  ;;  %2713 = vpow2.f32 %v2503_v29  ;;  %vm1616_vm0 = vweird.f32 %v2712_v52 }
 0x249   : > { %2715 = vrcp.f32 %v3961_v42  ;;  %v1528_v13 = vpop.f32.mrf.mxu3  ;;  %vm1617_vm5 = vmor %vm1615_vm4, %vm1616_vm0  ;;  %v1636_v33 = vand.u32 2147483648, %v3961_v42  ;;  %v1634_v25 = vand.u32 2147483647, %v3961_v42  ;;  %vm1630_vm10 = vweird.f32 %v3961_v42 }
 0x24a   : > { %v1612_v4 = vsub.f32 1.0, %v1611_v46  ;;  %v1548_v16 = vadd.f32 %v1528_v13, %v1346_v19  ;;  %v1316_v19 = vpop.f32.mrf.mxu0  ;;  %v1315_v13 = vadd.f32 %v1314_v21, %v3909_v62 }
 0x24b   : > { %v1637_v23 = vor.u32 1.1754944e-38, %v1636_v33  ;;  %vm1635_vm14 = vcmp.eq.f32.partialorder %v1634_v25, 8.507059e+37 }
 0x24c   : > { %v1613_v37 = vmul.f32 %v2712_v52, %v1612_v4  ;;  %v1569_v60 = vadd.f32 %v3936_v28, %v1548_v16 }
 0x24e   : > { %v2714_v8 = vpop.eup %2713  ;;  %v2504_v24 = vmul.f32 -1.442695, %v1569_v60  ;;  %v1614_v45 = vadd.f32 %v2712_v52, %v1613_v37  ;;  %v1545_v37 = vadd.f32 %v1497_v22, %v1315_v13 }
 0x24f   : > { %v2716_v9 = vpop.eup %2715  ;;  %v3974_v34 = vadd.f32 1.0, %v2714_v8  ;;  %v1353_v8 = vpop.f32.mrf.mxu1 }
 0x250   : > { %v1626_v43 = vmul.f32 %v2716_v9, %v3961_v42  ;;  %2717 = vpow2.f32 %v2504_v24  ;;  %v1618_v49 = vsel %vm1617_vm5, %v2712_v52, %v1614_v45  ;;  %vm1631_vm9 = vweird.f32 %v2716_v9  ;;  %v1499_v42 = vpop.f32.mrf.mxu2 }
 0x251   : > { %2719 = vrcp.f32 %v3974_v34  ;;  %v1531_v40 = vpop.f32.mrf.mxu3  ;;  %v1623_v55 = vsel %vm1620_vm8, %v1622_v39, %v1618_v49  ;;  %v1564_v52 = vadd.f32 %v3969_v38, %v1543_v32  ;;  %vm1632_vm12 = vmor %vm1630_vm10, %vm1631_vm9  ;;  %v1649_v60 = vand.u32 2147483647, %v3974_v34 }
 0x252   : > { %v1627_v63 = vsub.f32 1.0, %v1626_v43  ;;  %v1550_v10 = vadd.f32 %v1531_v40, %v1349_v61  ;;  %v1730_v47 = vmul.f32 %v1623_v55, %v1562_v44  ;;  %v1651_v12 = vand.u32 2147483648, %v3974_v34  ;;  %v1319_v32 = vpop.f32.mrf.mxu0 }
 0x253   : > { %v1354_v45 = vadd.f32 %v1353_v8, %v3921_v1  ;;  %vm1645_vm6 = vweird.f32 %v3974_v34  ;;  %v1566_v43 = vadd.f32 %v3969_v38, %v1545_v37  ;;  %vm1650_vm13 = vcmp.eq.f32.partialorder %v1649_v60, 8.507059e+37 }
 0x254   : > { %v1628_v6 = vmul.f32 %v2716_v9, %v1627_v63  ;;  %v1571_v57 = vadd.f32 %v3936_v28, %v1550_v10  ;;  %v1738_v14 = vadd.f32 %v1730_v47, %v3545_v15  ;;  %v1652_v54 = vor.u32 1.1754944e-38, %v1651_v12 }
 0x256   : > { %v2718_v35 = vpop.eup %2717  ;;  %v2505_v59 = vmul.f32 -1.442695, %v1571_v57  ;;  %v1629_v30 = vadd.f32 %v2716_v9, %v1628_v6  ;;  %v1746_v15 = vmul.f32 0.70710677, %v1738_v14  ;;  %v1320_v14 = vadd.f32 %v1319_v32, %v3915_v26 }
 0x257   : > { %v2720_v29 = vpop.eup %2719  ;;  %v3985_v53 = vadd.f32 1.0, %v2718_v35 }
 0x258   : > { %v1641_v46 = vmul.f32 %v2720_v29, %v3974_v34  ;;  %2721 = vpow2.f32 %v2505_v59  ;;  %v1633_v27 = vsel %vm1632_vm12, %v2716_v9, %v1629_v30  ;;  %vm1646_vm1 = vweird.f32 %v2720_v29  ;;  %v1502_v6 = vpop.f32.mrf.mxu2  ;;  %v1355_v30 = vpop.f32.mrf.mxu1 }
 0x259   : > { %2723 = vrcp.f32 %v3985_v53  ;;  %v1533_v4 = vpop.f32.mrf.mxu3  ;;  %v1638_v16 = vsel %vm1635_vm14, %v1637_v23, %v1633_v27  ;;  %vm1647_vm11 = vmor %vm1645_vm6, %vm1646_vm1  ;;  %v1317_v34 = vadd.f32 %v1316_v19, %v3911_v18  ;;  %v1666_v57 = vand.u32 2147483648, %v3985_v53 }
 0x25a   : > { %v1552_v3 = vadd.f32 %v1533_v4, %v1351_v17  ;;  %v1731_v31 = vmul.f32 %v1638_v16, %v1564_v52  ;;  %v1642_v41 = vsub.f32 1.0, %v1641_v46  ;;  %v1664_v59 = vand.u32 2147483647, %v3985_v53  ;;  %v1321_v8 = vpop.f32.mrf.mxu0 }
 0x25b   : > { %v1547_v33 = vadd.f32 %v1499_v42, %v1317_v34  ;;  %vm1660_vm2 = vweird.f32 %v3985_v53  ;;  %v1356_v23 = vadd.f32 %v1355_v30, %v3925_v2  ;;  %v1667_v27 = vor.u32 1.1754944e-38, %v1666_v57 }
 0x25c   : > { %v1573_v24 = vadd.f32 %v3936_v28, %v1552_v3  ;;  %v1739_v62 = vadd.f32 %v1731_v31, %v3553_v20  ;;  %v1643_v21 = vmul.f32 %v2720_v29, %v1642_v41  ;;  %vm1665_vm7 = vcmp.eq.f32.partialorder %v1664_v59, 8.507059e+37 }
 0x25d   : > { %v1568_v19 = vadd.f32 %v3969_v38, %v1547_v33 }
 0x25e   : > { %v2722_v9 = vpop.eup %2721  ;;  %v2506_v61 = vmul.f32 -1.442695, %v1573_v24  ;;  %v1747_v44 = vmul.f32 0.70710677, %v1739_v62  ;;  %v1644_v22 = vadd.f32 %v2720_v29, %v1643_v21  ;;  %v1549_v24 = vadd.f32 %v1502_v6, %v1320_v14 }
 0x25f   : > { %v2724_v39 = vpop.eup %2723  ;;  %v3998_v49 = vadd.f32 1.0, %v2722_v9 }
 0x260   : > { %v1656_v20 = vmul.f32 %v2724_v39, %v3985_v53  ;;  %2725 = vpow2.f32 %v2506_v61  ;;  %v1754_v40 = vpack.c.bf16 %v1747_v44, %v1746_v15  ;;  %v1648_v1 = vsel %vm1647_vm11, %v2720_v29, %v1644_v22  ;;  %v1504_v62 = vpop.f32.mrf.mxu2 }
 0x261   : > { %2727 = vrcp.f32 %v3998_v49  ;;  %v1536_v55 = vpop.f32.mrf.mxu3  ;;  %v1653_v48 = vsel %vm1650_vm13, %v1652_v54, %v1648_v1  ;;  %vm1661_vm15 = vweird.f32 %v2724_v39  ;;  %v1681_v41 = vand.u32 2147483648, %v3998_v49 }
 0x262   : > { %v1554_v63 = vadd.f32 %v1536_v55, %v1354_v45  ;;  %1834 = vmatmul.bf16.vlgmr.msrb.gmra.mxu0 %v1754_v40  ;;  %v1657_v10 = vsub.f32 1.0, %v1656_v20  ;;  %v1732_v47 = vmul.f32 %v1653_v48, %v1566_v43  ;;  %vm1662_vm3 = vmor %vm1660_vm2, %vm1661_vm15  ;;  %vm1675_vm4 = vweird.f32 %v3998_v49  ;;  %v1324_v32 = vpop.f32.mrf.mxu0 }
 0x263   : > { %v1679_v21 = vand.u32 2147483647, %v3998_v49  ;;  %v1570_v43 = vadd.f32 %v3969_v38, %v1549_v24  ;;  %v1322_v20 = vadd.f32 %v1321_v8, %v3919_v36  ;;  %v1325_v59 = vadd.f32 %v1324_v32, %v3923_v7 }
 0x264   : > { %v1575_v25 = vadd.f32 %v3936_v28, %v1554_v63  ;;  %v1658_v35 = vmul.f32 %v2724_v39, %v1657_v10  ;;  %v1740_v2 = vadd.f32 %v1732_v47, %v3661_v50 }
 0x265   : > { %vm1680_vm8 = vcmp.eq.f32.partialorder %v1679_v21, 8.507059e+37  ;;  %v1551_v55 = vadd.f32 %v1504_v62, %v1322_v20 }
 0x266   : > { %v2726_v18 = vpop.eup %2725  ;;  %v2507_v29 = vmul.f32 -1.442695, %v1575_v25  ;;  %v1659_v17 = vadd.f32 %v2724_v39, %v1658_v35  ;;  %v1748_v50 = vmul.f32 0.70710677, %v1740_v2 }
 0x267   : > { %v2728_v52 = vpop.eup %2727  ;;  %v4009_v46 = vadd.f32 1.0, %v2726_v18  ;;  %v1572_v35 = vadd.f32 %v3969_v38, %v1551_v55 }
 0x268   : > { %v1671_v13 = vmul.f32 %v2728_v52, %v3998_v49  ;;  %2729 = vpow2.f32 %v2507_v29  ;;  %v1663_v42 = vsel %vm1662_vm3, %v2724_v39, %v1659_v17  ;;  %vm1676_vm0 = vweird.f32 %v2728_v52  ;;  %v1507_v33 = vpop.f32.mrf.mxu2 }
 0x269   : > { %2731 = vrcp.f32 %v4009_v46  ;;  %v1538_v4 = vpop.f32.mrf.mxu3  ;;  %v1668_v16 = vsel %vm1665_vm7, %v1667_v27, %v1663_v42  ;;  %vm1677_vm5 = vmor %vm1675_vm4, %vm1676_vm0  ;;  %v1696_v34 = vand.u32 2147483648, %v4009_v46  ;;  %v1694_v48 = vand.u32 2147483647, %v4009_v46 }
 0x26a   : > { %v1672_v3 = vsub.f32 1.0, %v1671_v13  ;;  %v1556_v53 = vadd.f32 %v1538_v4, %v1356_v23  ;;  %v1733_v31 = vmul.f32 %v1668_v16, %v1568_v19  ;;  %vm1690_vm10 = vweird.f32 %v4009_v46  ;;  %v1326_v2 = vpop.f32.mrf.mxu0 }
 0x26b   : > { %v1697_v36 = vor.u32 1.1754944e-38, %v1696_v34  ;;  %vm1695_vm14 = vcmp.eq.f32.partialorder %v1694_v48, 8.507059e+37  ;;  %v1553_v23 = vadd.f32 %v1507_v33, %v1325_v59 }
 0x26c   : > { %v1577_v37 = vadd.f32 %v3936_v28, %v1556_v53  ;;  %v1741_v60 = vadd.f32 %v1733_v31, %v3667_v51  ;;  %v1673_v12 = vmul.f32 %v2728_v52, %v1672_v3  ;;  %v1682_v28 = vor.u32 1.1754944e-38, %v1681_v41 }
 0x26d   : > { %v1574_v7 = vadd.f32 %v3969_v38, %v1553_v23 }
 0x26e   : > { %v2730_v45 = vpop.eup %2729  ;;  %v2508_v9 = vmul.f32 -1.442695, %v1577_v37  ;;  %v1749_v61 = vmul.f32 0.70710677, %v1741_v60  ;;  %v1674_v26 = vadd.f32 %v2728_v52, %v1673_v12  ;;  %v1327_v37 = vadd.f32 %v1326_v2, %v3938_v5 }
 0x26f   : > { %v2732_v15 = vpop.eup %2731  ;;  %v1608_v44 = vadd.f32 1.0, %v2730_v45 }
 0x270   : > { %v1686_v51 = vmul.f32 %v2732_v15, %v4009_v46  ;;  %2733 = vpow2.f32 %v2508_v9  ;;  %v1755_v22 = vpack.c.bf16 %v1749_v61, %v1748_v50  ;;  %v1678_v39 = vsel %vm1677_vm5, %v2728_v52, %v1674_v26 }
 0x271   : > { %2735 = vrcp.f32 %v1608_v44  ;;  %v1683_v49 = vsel %vm1680_vm8, %v1682_v28, %v1678_v39  ;;  %vm1691_vm9 = vweird.f32 %v2732_v15  ;;  %v1711_v29 = vand.u32 2147483648, %v1608_v44 }
 0x272   : > { %v1687_v54 = vsub.f32 1.0, %v1686_v51  ;;  %1839 = vmatmul.bf16.gmra.mxu0 %v1755_v22  ;;  %v1734_v40 = vmul.f32 %v1683_v49, %v1570_v43  ;;  %vm1692_vm12 = vmor %vm1690_vm10, %vm1691_vm9  ;;  %v1709_v46 = vand.u32 2147483647, %v1608_v44  ;;  %vm1705_vm6 = vweird.f32 %v1608_v44  ;;  %v2674_v22 = vld [vmem:[%s4050_s4] ss:$0 sm:$0xff] }
 0x273   : > { %v1712_v4 = vor.u32 1.1754944e-38, %v1711_v29 }
 0x274   : > { %v1688_v1 = vmul.f32 %v2732_v15, %v1687_v54  ;;  %v1742_v52 = vadd.f32 %v1734_v40, %v3716_v0  ;;  %vm1710_vm13 = vcmp.eq.f32.partialorder %v1709_v46, 8.507059e+37  ;;  %v1509_v0 = vpop.f32.mrf.mxu2 }
 0x275   : > { %v1555_v8 = vadd.f32 %v1509_v0, %v1327_v37 }
 0x276   : > { %v2734_v63 = vpop.eup %2733  ;;  %v1689_v10 = vadd.f32 %v2732_v15, %v1688_v1  ;;  %v1750_v16 = vmul.f32 0.70710677, %v1742_v52 }
 0x277   : > { %v2736_v47 = vpop.eup %2735  ;;  %v1609_v6 = vadd.f32 1.0, %v2734_v63  ;;  %v1576_v9 = vadd.f32 %v3969_v38, %v1555_v8 }
 0x278   : > { %v1701_v57 = vmul.f32 %v2736_v47, %v1608_v44  ;;  %v1693_v25 = vsel %vm1692_vm12, %v2732_v15, %v1689_v10  ;;  %vm1706_vm1 = vweird.f32 %v2736_v47 }
 0x279   : > { %2737 = vrcp.f32 %v1609_v6  ;;  %v1698_v30 = vsel %vm1695_vm14, %v1697_v36, %v1693_v25  ;;  %vm1707_vm11 = vmor %vm1705_vm6, %vm1706_vm1  ;;  %v1726_v12 = vand.u32 2147483648, %v1609_v6  ;;  %v1724_v62 = vand.u32 2147483647, %v1609_v6 }
 0x27a   : > { %v1702_v18 = vsub.f32 1.0, %v1701_v57  ;;  %v1735_v17 = vmul.f32 %v1698_v30, %v1572_v35  ;;  %vm1720_vm2 = vweird.f32 %v1609_v6 }
 0x27b   : > { %v1727_v45 = vor.u32 1.1754944e-38, %v1726_v12  ;;  %vm1725_vm7 = vcmp.eq.f32.partialorder %v1724_v62, 8.507059e+37 }
 0x27c   : > { %v1703_v19 = vmul.f32 %v2736_v47, %v1702_v18  ;;  %v1743_v27 = vadd.f32 %v1735_v17, %v3718_v58 }
 0x27e   : > { %v1704_v13 = vadd.f32 %v2736_v47, %v1703_v19  ;;  %v1751_v3 = vmul.f32 0.70710677, %v1743_v27 }
 0x27f   : > { %v2738_v42 = vpop.eup %2737 }
 0x280   : > { %v1716_v53 = vmul.f32 %v2738_v42, %v1609_v6  ;;  %v1708_v31 = vsel %vm1707_vm11, %v2736_v47, %v1704_v13  ;;  %v1756_v14 = vpack.c.bf16 %v1751_v3, %v1750_v16  ;;  %vm1721_vm15 = vweird.f32 %v2738_v42 }
 0x281   : > { %v1713_v41 = vsel %vm1710_vm13, %v1712_v4, %v1708_v31  ;;  %vm1722_vm3 = vmor %vm1720_vm2, %vm1721_vm15 }
 0x282   : > { %v1717_v60 = vsub.f32 1.0, %v1716_v53  ;;  %v1736_v58 = vmul.f32 %v1713_v41, %v1574_v7  ;;  %1844 = vmatmul.bf16.gmra.mxu0 %v1756_v14 }
 0x284   : > { %v1718_v24 = vmul.f32 %v2738_v42, %v1717_v60  ;;  %v1744_v5 = vadd.f32 %v1736_v58, %v3749_v56 }
 0x286   : > { %v1719_v21 = vadd.f32 %v2738_v42, %v1718_v24  ;;  %v1752_v44 = vmul.f32 0.70710677, %v1744_v5 }
 0x288   : > { %v1723_v50 = vsel %vm1722_vm3, %v2738_v42, %v1719_v21 }
 0x289   : > { %v1728_v61 = vsel %vm1725_vm7, %v1727_v45, %v1723_v50 }
 0x28a   : > { %v1737_v26 = vmul.f32 %v1728_v61, %v1576_v9 }
 0x28c   : > { %v1745_v15 = vadd.f32 %v1737_v26, %v3751_v11 }
 0x28e   : > { %v1753_v28 = vmul.f32 0.70710677, %v1745_v15 }
 0x290   : > { %v1757_v51 = vpack.c.bf16 %v1753_v28, %v1752_v44 }
 0x292   : > { %1849 = vmatmul.bf16.vlgmr.msrb.gmra.mxu2 %v1757_v51 }
 0x2df   : > { %v1835_v38 = vpop.f32.mrf.mxu0 }
 0x2e0   : > { %v1836_v39 = vadd.f32 %v2674_v22, %v1835_v38 }
 0x2e2   : > { %1855 = vst [vmem:[%s231_s17] sm:$0xff] %v1836_v39 }
 0x2e7   : > { %v1837_v43 = vpop.f32.mrf.mxu0 }
 0x2e8   : > { %v1838_v56 = vadd.f32 %v2674_v22, %v1837_v43 }
 0x2ea   : > { %1856 = vst [vmem:[%s231_s17 + $0x8] sm:$0xff] %v1838_v56 }
 0x2ef   : > { %v1840_v11 = vpop.f32.mrf.mxu0 }
 0x2f0   : > { %v1841_v54 = vadd.f32 %v2674_v22, %v1840_v11 }
 0x2f2   : > { %1857 = vst [vmem:[%s231_s17 + $0x10] sm:$0xff] %v1841_v54 }
 0x2f7   : > { %v1842_v49 = vpop.f32.mrf.mxu0 }
 0x2f8   : > { %v1843_v20 = vadd.f32 %v2674_v22, %v1842_v49 }
 0x2fa   : > { %1858 = vst [vmem:[%s231_s17 + $0x18] sm:$0xff] %v1843_v20 }
 0x2ff   : > { %v1845_v40 = vpop.f32.mrf.mxu0 }
 0x300   : > { %v1846_v1 = vadd.f32 %v2674_v22, %v1845_v40 }
 0x302   : > { %1859 = vst [vmem:[%s231_s17 + $0x20] sm:$0xff] %v1846_v1 }
 0x307   : > { %v1847_v34 = vpop.f32.mrf.mxu0 }
 0x308   : > { %v1848_v55 = vadd.f32 %v2674_v22, %v1847_v34 }
 0x30a   : > { %1860 = vst [vmem:[%s231_s17 + $0x28] sm:$0xff] %v1848_v55 }
 0x315   : > { %v1850_v48 = vpop.f32.mrf.mxu2 }
 0x316   : > { %v1851_v63 = vadd.f32 %v2674_v22, %v1850_v48 }
 0x318   : > { %1861 = vst [vmem:[%s231_s17 + $0x30] sm:$0xff] %v1851_v63 }
 0x31d   : > { %v1852_v10 = vpop.f32.mrf.mxu2 }
 0x31e   : > { %v1853_v47 = vadd.f32 %v2674_v22, %v1852_v10 }
 0x320   : > { %1862 = vst [vmem:[%s231_s17 + $0x38] sm:$0xff] %v1853_v47 }
 0x321 PF: > { %s15_s18 = sadd.s32 1, %s2750_s18  }
 0x322   : > { %p12_p4 = scmp.ge.s32.totalorder %s15_s18, 4  }
 0x324   :  { %14 = sbr.rel (!%p12_p4) target bundleno = 1 (0x1), region = 76 }

// kernel: _lambda_.2
= control target key start
LH: loop header
LB: loop body
LE: loop exit
PB: predicated region body
PF: predicated region fallthrough
CT: control target
= control target key end

     0   :  { %s4836_s0 = inlined_call_operand.vmem [shape: f32[2,8,128], index: 0, kind: input, shape index: {}]   ;;  %s4837_s1 = inlined_call_operand.vmem [shape: f32[2,8,128], index: 1, kind: input, shape index: {}]   ;;  %s4838_s2 = inlined_call_operand.hbm [shape: bf16[128,128], index: 2, kind: input, shape index: {}]   ;;  %s4839_s3 = inlined_call_operand.vmem [shape: f32[1,128], index: 3, kind: input, shape index: {}, may-alias: {3,5,11,13,15}]   ;;  %s4840_s4 = inlined_call_operand.vmem [shape: bf16[256,128], index: 4, kind: input, shape index: {}]   ;;  %s4841_s5 = inlined_call_operand.vmem [shape: f32[1,128], index: 5, kind: input, shape index: {}, may-alias: {3,5,11,13,15}]   ;;  %s4842_s6 = inlined_call_operand.vmem [shape: bf16[3,256,256], index: 6, kind: input, shape index: {}]   ;;  %s4843_s7 = inlined_call_operand.vmem [shape: f32[1,256], index: 7, kind: input, shape index: {}]   ;;  %s4844_s8 = inlined_call_operand.hbm [shape: bf16[1,3,128,256], index: 8, kind: input, shape index: {}]   ;;  %s4845_s9 = inlined_call_operand.vmem [shape: f32[1,1,256], index: 9, kind: input, shape index: {}]   ;;  %s4846_s10 = inlined_call_operand.hbm [shape: bf16[128,128], index: 10, kind: input, shape index: {}]   ;;  %s4847_s11 = inlined_call_operand.vmem [shape: f32[1,128], index: 11, kind: input, shape index: {}, may-alias: {3,5,11,13,15}]   ;;  %s4848_s12 = inlined_call_operand.vmem [shape: bf16[128,128], index: 12, kind: input, shape index: {}]   ;;  %s4849_s13 = inlined_call_operand.vmem [shape: f32[1,128], index: 13, kind: input, shape index: {}, may-alias: {3,5,11,13,15}]   ;;  %s4850_s14 = inlined_call_operand.vmem [shape: bf16[128,128], index: 14, kind: input, shape index: {}]   ;;  %s4851_s15 = inlined_call_operand.vmem [shape: f32[1,128], index: 15, kind: input, shape index: {}, may-alias: {3,5,11,13,15}]   ;;  %s4852_s16 = inlined_call_operand.vmem [shape: f32[2,8,128], index: 16, kind: output, shape index: {0}]   ;;  %s4853_s17 = inlined_call_operand.vmem [shape: f32[2,8,128], index: 17, kind: output, shape index: {1}]  }
   0x1   :  { %4855 = sst [smem:[#allocation10_spill]] %s4836_s0 }
   0x2   :  { %4856 = sst [smem:[#allocation11_spill]] %s4837_s1 }
   0x3   :  { %4857 = sst [smem:[#allocation12_spill]] %s4838_s2 }
   0x4   :  { %4858 = sst [smem:[#allocation13_spill]] %s4844_s8 }
   0x5   :  { %23 = vsyncpa [#allocation3], 0 }
   0x6   :  { %24 = vsyncpa [#allocation5], 0  ;;  %s3960_s24 = smov 0  }
   0x7 LB: > { %4859 = sst [smem:[#allocation9_spill]] %s3861_s24  ;;  %s3969_s28 = sadd.s32 4294967295, %s3861_s24   ;;  %s3861_s24 = sphi %s3960_s24, %s30_s24  }
   0x8   : > { %s4860_s8 = sld [smem:[#allocation13_spill]]  ;;  %p2610_p0 = scmp.ge.s32.totalorder %s3861_s24, 1 }
   0x9   : > { %p433_p1 = scmp.lt.s32.totalorder %s3861_s24, 3  ;;  %p3711_p2 = scmp.eq.s32.totalorder %s3969_s28, 0 }
   0xa   : > { %s3863_s0 = smov [#allocation4]   ;;  %s4862_s2 = sld [smem:[#allocation12_spill]] }
   0xb   : > { %p3974_p3 = pnand %p2610_p0, %p433_p1  ;;  %s475_s30 = sshll.u32 %s3863_s0, 4  ;;  %s476_s30 = int_to_ptr.vmem [resolvable:$true] %s475_s30 }
   0xc   : > { %s3864_s21 = smov [#allocation2]   ;;  %s3865_s23 = smov 128  }
   0xd   : > { %p3701_p4 = pneg %p3974_p3  ;;  %s446_s22 = sshll.u32 %s3864_s21, 4  ;;  %s447_s22 = int_to_ptr.vmem [resolvable:$true] %s446_s22 }
   0xe   : > { %s473_s27 = sshll.u32 %s4860_s8, 4  ;;  %s3866_s25 = smov 8   ;;  %s474_s27 = int_to_ptr.hbm [resolvable:$true] %s473_s27 }
   0xf   : > { %p3985_p5 = pnand %p3711_p2, %p3701_p4  ;;  %s490_s18 = sshll.u32 %s4846_s10, 4  ;;  %s491_s18 = int_to_ptr.hbm [resolvable:$true] %s490_s18 }
  0x10   : > { %s444_s1 = sshll.u32 %s4862_s2, 4  ;;  %s3867_s19 = smov 64   ;;  %s445_s1 = int_to_ptr.hbm [resolvable:$true] %s444_s1 }
  0x11   : > { %3707 = dma.hbm_to_vmem [thread:$0]  (!%p3985_p5), %s474_s27, 6144, %s476_s30, [#allocation5], %s3865_s23, %s3865_s23, %s3866_s25  }
  0x12   : > { %s3868_s2 = smov 4   ;;  %s3869_s8 = smov [#allocation6]  }
  0x13   : > { %3704 = dma.hbm_to_vmem [thread:$0]  (!%p3985_p5), %s445_s1, 1024, %s447_s22, [#allocation3], %s3867_s19, %s3867_s19, %s3868_s2  }
  0x14   : > { %s492_s24 = sshll.u32 %s3869_s8, 4  ;;  %537 = sbr.rel (%p3974_p3) target bundleno = 2634 (0xa4a), region = 84  ;;  %s493_s24 = int_to_ptr.vmem [resolvable:$true] %s492_s24 }
  0x15   : > { %3710 = dma.hbm_to_vmem [thread:$0]  (!%p3985_p5), %s491_s18, 1024, %s493_s24, [#allocation5], %s3867_s19, %s3867_s19, %s3868_s2  }
  0x19   : > { %3852 = dma.done.wait (%p3711_p2), [#allocation3], 1024  }
  0x1a   : > { %3854 = vsyncadd (%p3711_p2), [#allocation3], 4294966272 }
  0x1b   : > { %3856 = dma.done.wait (%p3711_p2), [#allocation5], 7168  }
  0x1c   : > { %3858 = vsyncadd (%p3711_p2), [#allocation5], 4294960128  ;;  %v3504_v0 = vld [vmem:[#allocation2 + $0x38] sm:$0xff]  ;;  %v3503_v2 = vld [vmem:[#allocation2 + $0x30] sm:$0xff]  ;;  %p606_p6 = scmp.lt.s32.totalorder %s3969_s28, 1  ;;  %s4864_s19 = sld [smem:[#allocation10_spill]]  ;;  %v876_v47 = vlaneseq }
  0x1d   : > { %v3520_v1 = vld [vmem:[%s4840_s4 + $0x78] sm:$0xff]  ;;  %693 = vmatpush.bf16.msra.mxu0 %v3504_v0  ;;  %v3519_v3 = vld [vmem:[%s4840_s4 + $0x70] sm:$0xff]  ;;  %v3502_v4 = vld [vmem:[#allocation2 + $0x28] sm:$0xff]  ;;  %s4865_s21 = sld [smem:[#allocation11_spill]]  ;;  %vm1724_vm4 = vcmask 1043456   ;;  %vm1695_vm13 = vcmask 64512  }
  0x1e   : > { %863 = vmatpush.bf16.msra.mxu2 %v3520_v1  ;;  %v3518_v5 = vld [vmem:[%s4840_s4 + $0x68] sm:$0xff]  ;;  %v3501_v6 = vld [vmem:[#allocation2 + $0x20] sm:$0xff]  ;;  %v3500_v8 = vld [vmem:[#allocation2 + $0x18] sm:$0xff]  ;;  %s4872_s28 = smov (!%p606_p6, %s3969_s28), 1  ;;  %v4113_v51 = vshrl.u32 %v876_v47, 7 }
  0x1f   : > { %v3517_v7 = vld [vmem:[%s4840_s4 + $0x60] sm:$0xff]  ;;  %v3516_v9 = vld [vmem:[%s4840_s4 + $0x58] sm:$0xff]  ;;  %v3499_v10 = vld [vmem:[#allocation2 + $0x10] sm:$0xff]  ;;  %s4028_s26 = sshll.u32 %s4872_s28, 3 }
  0x20   : > { %v3515_v11 = vld [vmem:[%s4840_s4 + $0x50] sm:$0xff]  ;;  %v3498_v12 = vld [vmem:[#allocation2 + $0x8] sm:$0xff]  ;;  %v2907_v15 = vld [vmem:[%s4842_s6 + $0x1f8] sm:$0xf0]  ;;  %vm914_vm0 = vcmp.ge.s32.totalorder %v4113_v51, 1  ;;  %vm1378_vm2 = vcmp.ge.s32.totalorder %v4113_v51, 2  ;;  %s617_s1 = scalar_lea.vmem %s4852_s16, %s4028_s26  ;;  %s621_s25 = scalar_lea.vmem %s4853_s17, %s4028_s26 }
  0x21   : > { %694 = vmatpush.bf16.msra.mxu0 %v3503_v2  ;;  %v3514_v13 = vld [vmem:[%s4840_s4 + $0x48] sm:$0xff]  ;;  %v3583_v14 = vld [vmem:[%s4842_s6 + $0x1f4] sm:$0xf]  ;;  %v3497_v16 = vld [vmem:[#allocation2] sm:$0xff] }
  0x22   : > { %864 = vmatpush.bf16.msra.mxu2 %v3519_v3  ;;  %s609_s8 = scalar_lea.vmem %s4864_s19, %s4028_s26  ;;  %v3513_v18 = vld [vmem:[%s4840_s4 + $0x40] sm:$0xff]  ;;  %v2910_v19 = vor.u32 %v3583_v14, %v2907_v15  ;;  %v2899_v23 = vld [vmem:[%s4842_s6 + $0x1e8] sm:$0xf0]  ;;  %v3579_v26 = vld [vmem:[%s4842_s6 + $0x1d4] sm:$0xf] }
  0x23   : > { %s613_s22 = scalar_lea.vmem %s4865_s21, %s4028_s26  ;;  %v623_v17 = vld [vmem:[%s609_s8] sm:$0xff]  ;;  %v2891_v27 = vld [vmem:[%s4842_s6 + $0x1d8] sm:$0xf0]  ;;  %v2883_v30 = vld [vmem:[%s4842_s6 + $0x1c8] sm:$0xf0] }
  0x24   : > { %v4050_v20 = vld [vmem:[%s613_s22] sm:$0xff]  ;;  %v624_v21 = vpack.c.bf16 %v623_v17, %v623_v17  ;;  %v2894_v28 = vor.u32 %v3579_v26, %v2891_v27  ;;  %v3575_v32 = vld [vmem:[%s4842_s6 + $0x1b4] sm:$0xf]  ;;  %v2875_v33 = vld [vmem:[%s4842_s6 + $0x1b8] sm:$0xf0] }
  0x25   : > { %695 = vmatpush.bf16.msra.mxu0 %v3502_v4  ;;  %v3581_v22 = vld [vmem:[%s4842_s6 + $0x1e4] sm:$0xf]  ;;  %v4060_v24 = vpack.c.bf16 %v4050_v20, %v4050_v20  ;;  %v2878_v34 = vor.u32 %v3575_v32, %v2875_v33  ;;  %v2867_v36 = vld [vmem:[%s4842_s6 + $0x1a8] sm:$0xf0]  ;;  %v3571_v38 = vld [vmem:[%s4842_s6 + $0x194] sm:$0xf] }
  0x26   : > { %865 = vmatpush.bf16.msra.mxu2 %v3518_v5  ;;  %v2902_v25 = vor.u32 %v3581_v22, %v2899_v23  ;;  %v3577_v29 = vld [vmem:[%s4842_s6 + $0x1c4] sm:$0xf]  ;;  %v2859_v39 = vld [vmem:[%s4842_s6 + $0x198] sm:$0xf0]  ;;  %v2851_v42 = vld [vmem:[%s4842_s6 + $0x188] sm:$0xf0] }
  0x27   : > { %v2886_v31 = vor.u32 %v3577_v29, %v2883_v30  ;;  %v3573_v35 = vld [vmem:[%s4842_s6 + $0x1a4] sm:$0xf]  ;;  %v2862_v40 = vor.u32 %v3571_v38, %v2859_v39  ;;  %v3551_v43 = vld [vmem:[%s4842_s6 + $0x2f4] sm:$0xf]  ;;  %v3047_v44 = vld [vmem:[%s4842_s6 + $0x2f8] sm:$0xf0] }
  0x28   : > { %v2870_v37 = vor.u32 %v3573_v35, %v2867_v36  ;;  %v3569_v41 = vld [vmem:[%s4842_s6 + $0x184] sm:$0xf]  ;;  %v3050_v46 = vor.u32 %v3551_v43, %v3047_v44  ;;  %v916_v48 = vrot.slane %v4050_v20, 7  ;;  %v3039_v50 = vld [vmem:[%s4842_s6 + $0x2e8] sm:$0xf0]  ;;  %vm4124_vm1 = vmpackc.low %vm914_vm0, %vm914_vm0 }
  0x29   : > { %696 = vmatpush.bf16.msra.mxu0 %v3501_v6  ;;  %v2854_v45 = vor.u32 %v3569_v41, %v2851_v42  ;;  %v3549_v49 = vld [vmem:[%s4842_s6 + $0x2e4] sm:$0xf]  ;;  %v3547_v54 = vld [vmem:[%s4842_s6 + $0x2d4] sm:$0xf]  ;;  %v3031_v55 = vld [vmem:[%s4842_s6 + $0x2d8] sm:$0xf0] }
  0x2a   : > { %866 = vmatpush.bf16.msra.mxu2 %v3517_v7  ;;  %v4115_v52 = vpack.c.bf16 %v916_v48, %v916_v48  ;;  %v3042_v53 = vor.u32 %v3549_v49, %v3039_v50  ;;  %v3034_v57 = vor.u32 %v3547_v54, %v3031_v55  ;;  %v3545_v58 = vld [vmem:[%s4842_s6 + $0x2c4] sm:$0xf]  ;;  %v3023_v59 = vld [vmem:[%s4842_s6 + $0x2c8] sm:$0xf0]  ;;  %v3543_v61 = vld [vmem:[%s4842_s6 + $0x2b4] sm:$0xf] }
  0x2b   : > { %v3026_v60 = vor.u32 %v3545_v58, %v3023_v59  ;;  %v3015_v62 = vld [vmem:[%s4842_s6 + $0x2b8] sm:$0xf0]  ;;  %v2841_v0 = vld [vmem:[%s4842_s6 + $0x170] sm:$0xf]  ;;  %v3568_v1 = vld [vmem:[%s4842_s6 + $0x174] sm:$0xf0] }
  0x2c   : > { %v3512_v63 = vld [vmem:[%s4840_s4 + $0x38] sm:$0xff]  ;;  %v2842_v2 = vor.u32 %v3568_v1, %v2841_v0  ;;  %v3018_v3 = vor.u32 %v3543_v61, %v3015_v62  ;;  %v3541_v4 = vld [vmem:[%s4842_s6 + $0x2a4] sm:$0xf]  ;;  %v3007_v5 = vld [vmem:[%s4842_s6 + $0x2a8] sm:$0xf0] }
  0x2d   : > { %697 = vmatpush.bf16.msra.mxu0 %v3500_v8  ;;  %850 = vmatpush.bf16.msra.mxu1 %v3512_v63  ;;  %v3511_v6 = vld [vmem:[%s4840_s4 + $0x30] sm:$0xff]  ;;  %v2833_v7 = vld [vmem:[%s4842_s6 + $0x160] sm:$0xf]  ;;  %v3566_v8 = vld [vmem:[%s4842_s6 + $0x164] sm:$0xf0] }
  0x2e   : > { %867 = vmatpush.bf16.msra.mxu2 %v3516_v9  ;;  %1114 = vmatpush.bf16.msra.mxu3 %v2842_v2  ;;  %v2834_v9 = vor.u32 %v3566_v8, %v2833_v7  ;;  %v2905_v14 = vld [vmem:[%s4842_s6 + $0x1f0] sm:$0xf]  ;;  %v3584_v15 = vld [vmem:[%s4842_s6 + $0x1f4] sm:$0xf0]  ;;  %v3537_v22 = vld [vmem:[%s4842_s6 + $0x284] sm:$0xf] }
  0x2f   : > { %v2825_v17 = vld [vmem:[%s4842_s6 + $0x150] sm:$0xf]  ;;  %v2991_v23 = vld [vmem:[%s4842_s6 + $0x288] sm:$0xf0]  ;;  %v3509_v26 = vld [vmem:[%s4840_s4 + $0x20] sm:$0xff] }
  0x30   : > { %v2897_v27 = vld [vmem:[%s4842_s6 + $0x1e0] sm:$0xf]  ;;  %v3175_v29 = vld [vmem:[%s4842_s6 + $0xf8] sm:$0xf0]  ;;  %v3562_v32 = vld [vmem:[%s4842_s6 + $0x144] sm:$0xf0] }
  0x31   : > { %698 = vmatpush.bf16.msra.mxu0 %v3499_v10  ;;  %851 = vmatpush.bf16.msra.mxu1 %v3511_v6  ;;  %v3010_v10 = vor.u32 %v3541_v4, %v3007_v5  ;;  %v3613_v36 = vld [vmem:[%s4842_s6 + $0xe4] sm:$0xf]  ;;  %v3508_v38 = vld [vmem:[%s4840_s4 + $0x18] sm:$0xff]  ;;  %v2889_v39 = vld [vmem:[%s4842_s6 + $0x1d0] sm:$0xf] }
  0x32   : > { %868 = vmatpush.bf16.msra.mxu2 %v3515_v11  ;;  %v3539_v11 = vld [vmem:[%s4842_s6 + $0x294] sm:$0xf]  ;;  %1115 = vmatpush.bf16.msra.mxu3 %v2834_v9  ;;  %v2809_v42 = vld [vmem:[%s4842_s6 + $0x130] sm:$0xf]  ;;  %v3560_v43 = vld [vmem:[%s4842_s6 + $0x134] sm:$0xf0] }
  0x33   : > { %v2810_v44 = vor.u32 %v3560_v43, %v2809_v42  ;;  %v3159_v48 = vld [vmem:[%s4842_s6 + $0xd8] sm:$0xf0]  ;;  %v3507_v49 = vld [vmem:[%s4840_s4 + $0x10] sm:$0xff]  ;;  %v2881_v50 = vld [vmem:[%s4842_s6 + $0x1c0] sm:$0xf] }
  0x34   : > { %v2801_v55 = vld [vmem:[%s4842_s6 + $0x120] sm:$0xf]  ;;  %v3151_v61 = vld [vmem:[%s4842_s6 + $0xc8] sm:$0xf0]  ;;  %v2873_v63 = vld [vmem:[%s4842_s6 + $0x1b0] sm:$0xf] }
  0x35   : > { %699 = vmatpush.bf16.msra.mxu0 %v3498_v12  ;;  %v2999_v12 = vld [vmem:[%s4842_s6 + $0x298] sm:$0xf0]  ;;  %v3506_v62 = vld [vmem:[%s4840_s4 + $0x8] sm:$0xff]  ;;  %v3576_v0 = vld [vmem:[%s4842_s6 + $0x1b4] sm:$0xf0] }
  0x36   : > { %869 = vmatpush.bf16.msra.mxu2 %v3514_v13  ;;  %v3510_v13 = vld [vmem:[%s4840_s4 + $0x28] sm:$0xff]  ;;  %v2874_v1 = vor.u32 %v3576_v0, %v2873_v63  ;;  %v2793_v2 = vld [vmem:[%s4842_s6 + $0x110] sm:$0xf]  ;;  %v3607_v6 = vld [vmem:[%s4842_s6 + $0xb4] sm:$0xf]  ;;  %v1380_v0 = vrot.slane %v4050_v20, 6 }
  0x37   : > { %852 = vmatpush.bf16.msra.mxu1 %v3510_v13  ;;  %v3143_v7 = vld [vmem:[%s4842_s6 + $0xb8] sm:$0xf0]  ;;  %v3505_v8 = vld [vmem:[%s4840_s4] sm:$0xff]  ;;  %v3632_v42 = vld [vmem:[#allocation4 + $0x174] sm:$0xf0] }
  0x38   : > { %v2865_v9 = vld [vmem:[%s4842_s6 + $0x1a0] sm:$0xf]  ;;  %v2843_v13 = vld [vmem:[%s4842_s6 + $0x178] sm:$0xf0]  ;;  %v3552_v63 = vld [vmem:[%s4842_s6 + $0x2f4] sm:$0xf0] }
  0x39   : > { %700 = vmatpush.bf16.msra.mxu0 %v3497_v16  ;;  %v2906_v16 = vor.u32 %v3584_v15, %v2905_v14  ;;  %v2785_v14 = vld [vmem:[%s4842_s6 + $0x100] sm:$0xf]  ;;  %v3561_v20 = vld [vmem:[%s4842_s6 + $0x144] sm:$0xf]  ;;  %vm4403_vm3 = vmpackc.low %vm1378_vm2, %vm1378_vm2 }
  0x3a   : > { %870 = vmatpush.bf16.msra.mxu2 %v3513_v18  ;;  %v3564_v18 = vld [vmem:[%s4842_s6 + $0x154] sm:$0xf0]  ;;  %v1745_v56 = vld [vmem:[%s4845_s9] sm:$0x3] }
  0x3b   : > { %853 = vmatpush.bf16.msra.mxu1 %v3509_v26  ;;  %v2857_v26 = vld [vmem:[%s4842_s6 + $0x190] sm:$0xf]  ;;  %v3548_v51 = vld [vmem:[%s4842_s6 + $0x2d4] sm:$0xf0] }
  0x3c   : > { %701 = vmatmul.bf16.vlgmr.msra.gmra.mxu0 %v624_v21  ;;  %v3002_v21 = vor.u32 %v3539_v11, %v2999_v12  ;;  %v3567_v12 = vld [vmem:[%s4842_s6 + $0x174] sm:$0xf] }
  0x3d   : > { %871 = vmatmul.bf16.vlgmr.msra.gmra.mxu2 %v4060_v24  ;;  %1127 = vmatpush.bf16.msrb.mxu0 %v2906_v16  ;;  %v2846_v15 = vor.u32 %v3567_v12, %v2843_v13  ;;  %v3554_v16 = vld [vmem:[%s4842_s6 + $0x104] sm:$0xf0]  ;;  %v4385_v13 = vpack.c.bf16 %v1380_v0, %v1380_v0 }
  0x3e   : > { %1153 = vmatpush.bf16.msrb.mxu2 %v2910_v19  ;;  %v2826_v19 = vor.u32 %v3564_v18, %v2825_v17  ;;  %v2981_v17 = vld [vmem:[%s4842_s6 + $0x270] sm:$0xf]  ;;  %v3536_v18 = vld [vmem:[%s4842_s6 + $0x274] sm:$0xf0]  ;;  %v3550_v12 = vld [vmem:[%s4842_s6 + $0x2e4] sm:$0xf0] }
  0x3f   : > { %854 = vmatpush.bf16.msra.mxu1 %v3508_v38  ;;  %v3542_v0 = vld [vmem:[%s4842_s6 + $0x2a4] sm:$0xf0] }
  0x40   : > { %1116 = vmatpush.bf16.msra.mxu3 %v2826_v19  ;;  %v3146_v19 = vor.u32 %v3607_v6, %v3143_v7  ;;  %v3289_v7 = vld [vmem:[#allocation4 + $0x130] sm:$0xf] }
  0x42   : > { %1154 = vmatpush.bf16.msrb.mxu2 %v2902_v25  ;;  %v3615_v25 = vld [vmem:[%s4842_s6 + $0xf4] sm:$0xf] }
  0x43   : > { %v3178_v35 = vor.u32 %v3615_v25, %v3175_v29  ;;  %855 = vmatpush.bf16.msra.mxu1 %v3507_v49  ;;  %v2982_v25 = vor.u32 %v3536_v18, %v2981_v17  ;;  %v3305_v49 = vld [vmem:[#allocation4 + $0x150] sm:$0xf]  ;;  %v3281_v17 = vld [vmem:[#allocation4 + $0x120] sm:$0xf]  ;;  %v3622_v18 = vld [vmem:[#allocation4 + $0x124] sm:$0xf0] }
  0x46   : > { %1155 = vmatpush.bf16.msrb.mxu2 %v2894_v28  ;;  %v3582_v28 = vld [vmem:[%s4842_s6 + $0x1e4] sm:$0xf0] }
  0x47   : > { %v2898_v30 = vor.u32 %v3582_v28, %v2897_v27  ;;  %856 = vmatpush.bf16.msra.mxu1 %v3506_v62  ;;  %v3572_v27 = vld [vmem:[%s4842_s6 + $0x194] sm:$0xf0]  ;;  %v3565_v28 = vld [vmem:[%s4842_s6 + $0x164] sm:$0xf]  ;;  %v3045_v62 = vld [vmem:[%s4842_s6 + $0x2f0] sm:$0xf] }
  0x48   : > { %v2858_v29 = vor.u32 %v3572_v27, %v2857_v26  ;;  %v3029_v26 = vld [vmem:[%s4842_s6 + $0x2d0] sm:$0xf] }
  0x49   : > { %1128 = vmatpush.bf16.msrb.mxu0 %v2898_v30  ;;  %v2835_v30 = vld [vmem:[%s4842_s6 + $0x168] sm:$0xf0]  ;;  %v3030_v27 = vor.u32 %v3548_v51, %v3029_v26 }
  0x4a   : > { %1156 = vmatpush.bf16.msrb.mxu2 %v2886_v31  ;;  %v2817_v31 = vld [vmem:[%s4842_s6 + $0x140] sm:$0xf] }
  0x4b   : > { %v2818_v33 = vor.u32 %v3562_v32, %v2817_v31  ;;  %857 = vmatpush.bf16.msra.mxu1 %v3505_v8  ;;  %v2973_v31 = vld [vmem:[%s4842_s6 + $0x260] sm:$0xf]  ;;  %v3534_v32 = vld [vmem:[%s4842_s6 + $0x264] sm:$0xf0]  ;;  %v2819_v8 = vld [vmem:[%s4842_s6 + $0x148] sm:$0xf0] }
  0x4d   : > { %1117 = vmatpush.bf16.msra.mxu3 %v2818_v33  ;;  %v2838_v33 = vor.u32 %v3565_v28, %v2835_v30  ;;  %v2949_v28 = vld [vmem:[%s4842_s6 + $0x230] sm:$0xf] }
  0x4e   : > { %1157 = vmatpush.bf16.msrb.mxu2 %v2878_v34  ;;  %v2994_v34 = vor.u32 %v3537_v22, %v2991_v23  ;;  %v3135_v22 = vld [vmem:[%s4842_s6 + $0xa8] sm:$0xf0]  ;;  %v2786_v23 = vor.u32 %v3554_v16, %v2785_v14  ;;  %v3530_v16 = vld [vmem:[%s4842_s6 + $0x244] sm:$0xf0] }
  0x4f   : > { %1140 = vmatpush.bf16.msrb.mxu1 %v2846_v15  ;;  %v2957_v15 = vld [vmem:[%s4842_s6 + $0x240] sm:$0xf] }
  0x51   : > { %1118 = vmatpush.bf16.msra.mxu3 %v2810_v44 }
  0x52   : > { %1158 = vmatpush.bf16.msrb.mxu2 %v2870_v37  ;;  %v3167_v37 = vld [vmem:[%s4842_s6 + $0xe8] sm:$0xf0] }
  0x53   : > { %1141 = vmatpush.bf16.msrb.mxu1 %v2838_v33  ;;  %v3557_v33 = vld [vmem:[%s4842_s6 + $0x124] sm:$0xf] }
  0x56   : > { %1159 = vmatpush.bf16.msrb.mxu2 %v2862_v40  ;;  %v3580_v40 = vld [vmem:[%s4842_s6 + $0x1d4] sm:$0xf0] }
  0x57   : > { %v2890_v41 = vor.u32 %v3580_v40, %v2889_v39  ;;  %v3601_v39 = vld [vmem:[%s4842_s6 + $0x84] sm:$0xf]  ;;  %v3119_v40 = vld [vmem:[%s4842_s6 + $0x88] sm:$0xf0] }
  0x58   : > { %v3122_v43 = vor.u32 %v3601_v39, %v3119_v40  ;;  %v2941_v40 = vld [vmem:[%s4842_s6 + $0x220] sm:$0xf] }
  0x59   : > { %1129 = vmatpush.bf16.msrb.mxu0 %v2890_v41  ;;  %v3321_v41 = vld [vmem:[#allocation4 + $0x170] sm:$0xf] }
  0x5a   : > { %1160 = vmatpush.bf16.msrb.mxu2 %v2854_v45  ;;  %v3170_v45 = vor.u32 %v3613_v36, %v3167_v37  ;;  %v3603_v36 = vld [vmem:[%s4842_s6 + $0x94] sm:$0xf]  ;;  %v3127_v37 = vld [vmem:[%s4842_s6 + $0x98] sm:$0xf0]  ;;  %v3322_v44 = vor.u32 %v3632_v42, %v3321_v41  ;;  %v3526_v41 = vld [vmem:[%s4842_s6 + $0x224] sm:$0xf0] }
  0x5b   : > { %v3130_v38 = vor.u32 %v3603_v36, %v3127_v37  ;;  %v3021_v37 = vld [vmem:[%s4842_s6 + $0x2c0] sm:$0xf] }
  0x5c   : > { %v3265_v42 = vld [vmem:[#allocation4 + $0x100] sm:$0xf] }
  0x5d   : > { %2922 = vmatmul.msk.bf16.vlgmr.msrb.gmra.mxu2 %vm4124_vm1, %v4115_v52 }
  0x5e   : > { %1365 = vmatpush.bf16.msra.mxu2 %v3050_v46  ;;  %v3611_v46 = vld [vmem:[%s4842_s6 + $0xd4] sm:$0xf] }
  0x5f   : > { %v3162_v59 = vor.u32 %v3611_v46, %v3159_v48  ;;  %v3630_v46 = vld [vmem:[#allocation4 + $0x164] sm:$0xf0] }
  0x62   : > { %1366 = vmatpush.bf16.msra.mxu2 %v3042_v53  ;;  %v3578_v53 = vld [vmem:[%s4842_s6 + $0x1c4] sm:$0xf0] }
  0x63   : > { %v2882_v54 = vor.u32 %v3578_v53, %v2881_v50  ;;  %v3628_v50 = vld [vmem:[#allocation4 + $0x154] sm:$0xf0]  ;;  %v3297_v53 = vld [vmem:[#allocation4 + $0x140] sm:$0xf] }
  0x65   : > { %1130 = vmatpush.bf16.msrb.mxu0 %v2882_v54  ;;  %v3626_v54 = vld [vmem:[#allocation4 + $0x144] sm:$0xf0] }
  0x66   : > { %1367 = vmatpush.bf16.msra.mxu2 %v3034_v57  ;;  %v3558_v57 = vld [vmem:[%s4842_s6 + $0x124] sm:$0xf0]  ;;  %v3298_v6 = vor.u32 %v3626_v54, %v3297_v53  ;;  %v3544_v53 = vld [vmem:[%s4842_s6 + $0x2b4] sm:$0xf0]  ;;  %v2933_v54 = vld [vmem:[%s4842_s6 + $0x210] sm:$0xf] }
  0x67   : > { %v2802_v58 = vor.u32 %v3558_v57, %v2801_v55  ;;  %v3306_v55 = vor.u32 %v3628_v50, %v3305_v49  ;;  %v2849_v57 = vld [vmem:[%s4842_s6 + $0x180] sm:$0xf]  ;;  %v3013_v49 = vld [vmem:[%s4842_s6 + $0x2b0] sm:$0xf] }
  0x69   : > { %1119 = vmatpush.bf16.msra.mxu3 %v2802_v58  ;;  %1131 = vmatpush.bf16.msrb.mxu0 %v2874_v1  ;;  %v3570_v58 = vld [vmem:[%s4842_s6 + $0x184] sm:$0xf0] }
  0x6a   : > { %1368 = vmatpush.bf16.msra.mxu2 %v3026_v60  ;;  %v3609_v60 = vld [vmem:[%s4842_s6 + $0xc4] sm:$0xf] }
  0x6b   : > { %v3154_v5 = vor.u32 %v3609_v60, %v3151_v61  ;;  %v2850_v60 = vor.u32 %v3570_v58, %v2849_v57  ;;  %v2827_v61 = vld [vmem:[%s4842_s6 + $0x158] sm:$0xf0]  ;;  %v3014_v57 = vor.u32 %v3544_v53, %v3013_v49  ;;  %v2975_v53 = vld [vmem:[%s4842_s6 + $0x268] sm:$0xf0] }
  0x6e   : > { %1369 = vmatpush.bf16.msra.mxu2 %v3018_v3  ;;  %v3556_v3 = vld [vmem:[%s4842_s6 + $0x114] sm:$0xf0] }
  0x6f   : > { %v2794_v4 = vor.u32 %v3556_v3, %v2793_v2  ;;  %v3046_v2 = vor.u32 %v3552_v63, %v3045_v62  ;;  %v2965_v3 = vld [vmem:[%s4842_s6 + $0x250] sm:$0xf]  ;;  %v3005_v63 = vld [vmem:[%s4842_s6 + $0x2a0] sm:$0xf] }
  0x71   : > { %1120 = vmatpush.bf16.msra.mxu3 %v2794_v4  ;;  %v3532_v4 = vld [vmem:[%s4842_s6 + $0x254] sm:$0xf0] }
  0x72   : > { %1370 = vmatpush.bf16.msra.mxu2 %v3010_v10  ;;  %v3574_v10 = vld [vmem:[%s4842_s6 + $0x1a4] sm:$0xf0] }
  0x73   : > { %v2866_v11 = vor.u32 %v3574_v10, %v2865_v9  ;;  %v3624_v9 = vld [vmem:[#allocation4 + $0x134] sm:$0xf0]  ;;  %v2822_v10 = vor.u32 %v3561_v20, %v2819_v8  ;;  %v2989_v20 = vld [vmem:[%s4842_s6 + $0x280] sm:$0xf]  ;;  %v3538_v8 = vld [vmem:[%s4842_s6 + $0x284] sm:$0xf0] }
  0x75   : > { %1132 = vmatpush.bf16.msrb.mxu0 %v2866_v11  ;;  %1121 = vmatpush.bf16.msra.mxu3 %v2786_v23  ;;  %v3037_v11 = vld [vmem:[%s4842_s6 + $0x2e0] sm:$0xf]  ;;  %v2811_v23 = vld [vmem:[%s4842_s6 + $0x138] sm:$0xf0] }
  0x76   : > { %1371 = vmatpush.bf16.msra.mxu2 %v3002_v21  ;;  %v3605_v21 = vld [vmem:[%s4842_s6 + $0xa4] sm:$0xf]  ;;  %v3038_v14 = vor.u32 %v3550_v12, %v3037_v11  ;;  %v3616_v11 = vld [vmem:[%s4842_s6 + $0xf4] sm:$0xf0]  ;;  %v3732_v12 = vld [vmem:[%s4839_s3] ss:$0 sm:$0xff] }
  0x79   : > { %1326 = vmatpush.bf16.msrb.mxu3 %v2982_v25  ;;  %1133 = vmatpush.bf16.msrb.mxu0 %v2858_v29  ;;  %v3528_v29 = vld [vmem:[%s4842_s6 + $0x234] sm:$0xf0] }
  0x7a   : > { %1372 = vmatpush.bf16.msra.mxu2 %v2994_v34  ;;  %v2974_v34 = vor.u32 %v3534_v32, %v2973_v31  ;;  %v2950_v30 = vor.u32 %v3528_v29, %v2949_v28  ;;  %v3282_v31 = vor.u32 %v3622_v18, %v3281_v17  ;;  %v3273_v32 = vld [vmem:[#allocation4 + $0x110] sm:$0xf]  ;;  %v3614_v17 = vld [vmem:[%s4842_s6 + $0xe4] sm:$0xf0] }
  0x7b   : > { %v3610_v29 = vld [vmem:[%s4842_s6 + $0xc4] sm:$0xf0] }
  0x7d   : > { %1373 = vmatmul.bf16.vlgmr.msra.gmra.mxu2 %v4060_v24  ;;  %1327 = vmatpush.bf16.msrb.mxu3 %v2974_v34  ;;  %v2803_v34 = vld [vmem:[%s4842_s6 + $0x128] sm:$0xf0] }
  0x7e   : > { %1616 = vmatpush.bf16.msrb.mxu2 %v3178_v35  ;;  %v3138_v35 = vor.u32 %v3605_v21, %v3135_v22  ;;  %1134 = vmatpush.bf16.msrb.mxu0 %v2850_v60  ;;  %v3290_v21 = vor.u32 %v3624_v9, %v3289_v7  ;;  %v3559_v22 = vld [vmem:[%s4842_s6 + $0x134] sm:$0xf]  ;;  %v2806_v36 = vor.u32 %v3557_v33, %v2803_v34  ;;  %v2787_v60 = vld [vmem:[%s4842_s6 + $0x108] sm:$0xf0]  ;;  %v3141_v33 = vld [vmem:[%s4842_s6 + $0xb0] sm:$0xf] }
  0x7f   : > { %v2814_v25 = vor.u32 %v3559_v22, %v2811_v23  ;;  %v2990_v9 = vor.u32 %v3538_v8, %v2989_v20  ;;  %v3157_v22 = vld [vmem:[%s4842_s6 + $0xd0] sm:$0xf]  ;;  %v3612_v23 = vld [vmem:[%s4842_s6 + $0xd4] sm:$0xf0]  ;;  %v3529_v20 = vld [vmem:[%s4842_s6 + $0x244] sm:$0xf] }
  0x80   : > { %v3158_v51 = vor.u32 %v3612_v23, %v3157_v22  ;;  %v3608_v34 = vld [vmem:[%s4842_s6 + $0xb4] sm:$0xf0]  ;;  %v2959_v8 = vld [vmem:[%s4842_s6 + $0x248] sm:$0xf0]  ;;  %v3069_v23 = vld [vmem:[%s4842_s6 + $0x20] sm:$0xf] }
  0x81   : > { %2916 = vmatmul.msk.bf16.vlgmr.msrb.gmra.mxu0 %vm4124_vm1, %v4115_v52 }
  0x82   : > { %1617 = vmatpush.bf16.msrb.mxu2 %v3170_v45  ;;  %v3313_v45 = vld [vmem:[#allocation4 + $0x160] sm:$0xf]  ;;  %1339 = vmatpush.bf16.msra.mxu0 %v3046_v2 }
  0x83   : > { %v3314_v48 = vor.u32 %v3630_v46, %v3313_v45  ;;  %v3555_v46 = vld [vmem:[%s4842_s6 + $0x114] sm:$0xf]  ;;  %v2925_v2 = vld [vmem:[%s4842_s6 + $0x200] sm:$0xf] }
  0x86   : > { %1618 = vmatpush.bf16.msrb.mxu2 %v3162_v59  ;;  %v3563_v59 = vld [vmem:[%s4842_s6 + $0x154] sm:$0xf]  ;;  %1340 = vmatpush.bf16.msra.mxu0 %v3038_v14 }
  0x87   : > { %v2830_v1 = vor.u32 %v3563_v59, %v2827_v61  ;;  %v3553_v59 = vld [vmem:[%s4842_s6 + $0x104] sm:$0xf] }
  0x88   : > { %v2790_v62 = vor.u32 %v3553_v59, %v2787_v60  ;;  %v3101_v59 = vld [vmem:[%s4842_s6 + $0x60] sm:$0xf]  ;;  %v3598_v60 = vld [vmem:[%s4842_s6 + $0x64] sm:$0xf0] }
  0x89   : > { %1142 = vmatpush.bf16.msrb.mxu1 %v2830_v1  ;;  %v3006_v1 = vor.u32 %v3542_v0, %v3005_v63  ;;  %v3531_v63 = vld [vmem:[%s4842_s6 + $0x254] sm:$0xf]  ;;  %v2967_v0 = vld [vmem:[%s4842_s6 + $0x258] sm:$0xf0] }
  0x8a   : > { %1619 = vmatpush.bf16.msrb.mxu2 %v3154_v5  ;;  %v2966_v5 = vor.u32 %v3532_v4, %v2965_v3  ;;  %1341 = vmatpush.bf16.msra.mxu0 %v3030_v27  ;;  %v3522_v3 = vld [vmem:[%s4842_s6 + $0x204] sm:$0xf0] }
  0x8b   : > { %v2926_v4 = vor.u32 %v3522_v3, %v2925_v2  ;;  %v3117_v2 = vld [vmem:[%s4842_s6 + $0x80] sm:$0xf]  ;;  %v3602_v3 = vld [vmem:[%s4842_s6 + $0x84] sm:$0xf0] }
  0x8c   : > { %1328 = vmatpush.bf16.msrb.mxu3 %v2966_v5  ;;  %v2997_v5 = vld [vmem:[%s4842_s6 + $0x290] sm:$0xf] }
  0x8d   : > { %1143 = vmatpush.bf16.msrb.mxu1 %v2822_v10  ;;  %v3173_v10 = vld [vmem:[%s4842_s6 + $0xf0] sm:$0xf] }
  0x8e   : > { %1620 = vmatpush.bf16.msrb.mxu2 %v3146_v19  ;;  %v2958_v19 = vor.u32 %v3530_v16, %v2957_v15  ;;  %v3174_v14 = vor.u32 %v3616_v11, %v3173_v10  ;;  %v3165_v16 = vld [vmem:[%s4842_s6 + $0xe0] sm:$0xf]  ;;  %v3594_v11 = vld [vmem:[%s4842_s6 + $0x44] sm:$0xf0] }
  0x8f   : > { %v3085_v10 = vld [vmem:[%s4842_s6 + $0x40] sm:$0xf] }
  0x90   : > { %1329 = vmatpush.bf16.msrb.mxu3 %v2958_v19  ;;  %v3166_v19 = vor.u32 %v3614_v17, %v3165_v16  ;;  %v3086_v16 = vor.u32 %v3594_v11, %v3085_v10  ;;  %v3077_v17 = vld [vmem:[%s4842_s6 + $0x30] sm:$0xf] }
  0x91   : > { %1144 = vmatpush.bf16.msrb.mxu1 %v2814_v25 }
  0x92   : > { %1621 = vmatpush.bf16.msrb.mxu2 %v3138_v35  ;;  %v3620_v35 = vld [vmem:[#allocation4 + $0x114] sm:$0xf0] }
  0x93   : > { %v3274_v45 = vor.u32 %v3620_v35, %v3273_v32 }
  0x94   : > { %1330 = vmatpush.bf16.msrb.mxu3 %v2950_v30 }
  0x95   : > { %1145 = vmatpush.bf16.msrb.mxu1 %v2806_v36  ;;  %v3142_v36 = vor.u32 %v3608_v34, %v3141_v33  ;;  %v2927_v33 = vld [vmem:[%s4842_s6 + $0x208] sm:$0xf0] }
  0x96   : > { %1622 = vmatpush.bf16.msrb.mxu2 %v3130_v38  ;;  %v3546_v38 = vld [vmem:[%s4842_s6 + $0x2c4] sm:$0xf0] }
  0x97   : > { %v3022_v39 = vor.u32 %v3546_v38, %v3021_v37  ;;  %v3535_v38 = vld [vmem:[%s4842_s6 + $0x274] sm:$0xf] }
  0x99   : > { %1342 = vmatpush.bf16.msra.mxu0 %v3022_v39  ;;  %v2983_v39 = vld [vmem:[%s4842_s6 + $0x278] sm:$0xf0] }
  0x9a   : > { %1623 = vmatpush.bf16.msrb.mxu2 %v3122_v43  ;;  %v3618_v43 = vld [vmem:[#allocation4 + $0x104] sm:$0xf0] }
  0x9b   : > { %v3266_v61 = vor.u32 %v3618_v43, %v3265_v42  ;;  %v3109_v43 = vld [vmem:[%s4842_s6 + $0x70] sm:$0xf] }
  0x9d   : > { %3190 = vmatmul.msk.bf16.vlgmr.msrb.gmra.mxu2 %vm4403_vm3, %v4385_v13  ;;  %1343 = vmatpush.bf16.msra.mxu0 %v3014_v57  ;;  %v3604_v57 = vld [vmem:[%s4842_s6 + $0x94] sm:$0xf0] }
  0x9e   : > { %1970 = vmatpush.bf16.msra.mxu2 %v3322_v44  ;;  %v2942_v44 = vor.u32 %v3526_v41, %v2941_v40  ;;  %v3133_v40 = vld [vmem:[%s4842_s6 + $0xa0] sm:$0xf]  ;;  %v3606_v41 = vld [vmem:[%s4842_s6 + $0xa4] sm:$0xf0] }
  0xa0   : > { %1331 = vmatpush.bf16.msrb.mxu3 %v2942_v44  ;;  %v3600_v44 = vld [vmem:[%s4842_s6 + $0x74] sm:$0xf0] }
  0xa1   : > { %1344 = vmatpush.bf16.msra.mxu0 %v3006_v1  ;;  %v3102_v1 = vor.u32 %v3598_v60, %v3101_v59  ;;  %v3591_v60 = vld [vmem:[%s4842_s6 + $0x34] sm:$0xf] }
  0xa2   : > { %1971 = vmatpush.bf16.msra.mxu2 %v3314_v48  ;;  %v2795_v48 = vld [vmem:[%s4842_s6 + $0x118] sm:$0xf0] }
  0xa3   : > { %v2798_v50 = vor.u32 %v3555_v46, %v2795_v48  ;;  %v2986_v46 = vor.u32 %v3535_v38, %v2983_v39  ;;  %v3586_v38 = vld [vmem:[%s4842_s6 + $0x4] sm:$0xf0] }
  0xa5   : > { %1146 = vmatpush.bf16.msrb.mxu1 %v2798_v50  ;;  %v3533_v50 = vld [vmem:[%s4842_s6 + $0x264] sm:$0xf] }
  0xa6   : > { %1972 = vmatpush.bf16.msra.mxu2 %v3306_v55  ;;  %v3524_v55 = vld [vmem:[%s4842_s6 + $0x214] sm:$0xf0] }
  0xa7   : > { %v2934_v58 = vor.u32 %v3524_v55, %v2933_v54  ;;  %v3110_v54 = vor.u32 %v3600_v44, %v3109_v43  ;;  %v3125_v55 = vld [vmem:[%s4842_s6 + $0x90] sm:$0xf]  ;;  %v3597_v43 = vld [vmem:[%s4842_s6 + $0x64] sm:$0xf]  ;;  %v3103_v44 = vld [vmem:[%s4842_s6 + $0x68] sm:$0xf0] }
  0xa9   : > { %1332 = vmatpush.bf16.msrb.mxu3 %v2934_v58  ;;  %1147 = vmatpush.bf16.msrb.mxu1 %v2790_v62  ;;  %v2978_v62 = vor.u32 %v3533_v50, %v2975_v53  ;;  %v3595_v50 = vld [vmem:[%s4842_s6 + $0x54] sm:$0xf]  ;;  %v3095_v53 = vld [vmem:[%s4842_s6 + $0x58] sm:$0xf0] }
  0xaa   : > { %1973 = vmatpush.bf16.msra.mxu2 %v3298_v6  ;;  %v3540_v6 = vld [vmem:[%s4842_s6 + $0x294] sm:$0xf0] }
  0xab   : > { %v2998_v7 = vor.u32 %v3540_v6, %v2997_v5  ;;  %v3596_v5 = vld [vmem:[%s4842_s6 + $0x54] sm:$0xf0]  ;;  %v3118_v6 = vor.u32 %v3602_v3, %v3117_v2  ;;  %v3063_v2 = vld [vmem:[%s4842_s6 + $0x18] sm:$0xf0] }
  0xad   : > { %1333 = vmatpush.bf16.msrb.mxu3 %v2926_v4  ;;  %1345 = vmatpush.bf16.msra.mxu0 %v2998_v7  ;;  %v3093_v4 = vld [vmem:[%s4842_s6 + $0x50] sm:$0xf]  ;;  %v2970_v7 = vor.u32 %v3531_v63, %v2967_v0  ;;  %v3071_v63 = vld [vmem:[%s4842_s6 + $0x28] sm:$0xf0] }
  0xae   : > { %1974 = vmatpush.bf16.msra.mxu2 %v3290_v21 }
  0xb1   : > { %1346 = vmatpush.bf16.msra.mxu0 %v2990_v9  ;;  %v3094_v9 = vor.u32 %v3596_v5, %v3093_v4  ;;  %v3585_v4 = vld [vmem:[%s4842_s6 + $0x4] sm:$0xf]  ;;  %v3055_v5 = vld [vmem:[%s4842_s6 + $0x8] sm:$0xf0] }
  0xb2   : > { %1975 = vmatpush.bf16.msra.mxu2 %v3282_v31 }
  0xb4   : > { %1347 = vmatmul.bf16.vlgmr.msra.gmra.mxu0 %v4060_v24  ;;  %v3149_v24 = vld [vmem:[%s4842_s6 + $0xc0] sm:$0xf] }
  0xb5   : > { %1590 = vmatpush.bf16.msrb.mxu0 %v3174_v14  ;;  %v3150_v31 = vor.u32 %v3610_v29, %v3149_v24  ;;  %v3527_v14 = vld [vmem:[%s4842_s6 + $0x234] sm:$0xf]  ;;  %v3061_v29 = vld [vmem:[%s4842_s6 + $0x10] sm:$0xf] }
  0xb6   : > { %1976 = vmatpush.bf16.msra.mxu2 %v3274_v45  ;;  %v3134_v45 = vor.u32 %v3606_v41, %v3133_v40 }
  0xb9   : > { %v702_v15 = vpop.f32.mrf.mxu0  ;;  %1591 = vmatpush.bf16.msrb.mxu0 %v3166_v19  ;;  %v3525_v19 = vld [vmem:[%s4842_s6 + $0x224] sm:$0xf] }
  0xba   : > { %1977 = vmatpush.bf16.msra.mxu2 %v3266_v61  ;;  %v703_v18 = vadd.f32 %v3732_v12, %v702_v15  ;;  %v3126_v61 = vor.u32 %v3604_v57, %v3125_v55  ;;  %v2962_v12 = vor.u32 %v3529_v20, %v2959_v8  ;;  %v2951_v15 = vld [vmem:[%s4842_s6 + $0x238] sm:$0xf0]  ;;  %v3098_v55 = vor.u32 %v3595_v50, %v3095_v53  ;;  %v3593_v57 = vld [vmem:[%s4842_s6 + $0x44] sm:$0xf] }
  0xbc   : > { %v706_v21 = vmax.f32 %v703_v18, 0.0  ;;  %v3592_v18 = vld [vmem:[%s4842_s6 + $0x34] sm:$0xf0] }
  0xbd   : > { %1592 = vmatpush.bf16.msrb.mxu0 %v3158_v51  ;;  %v3078_v22 = vor.u32 %v3592_v18, %v3077_v17 }
  0xbe   : > { %v707_v25 = vrot.slane %v706_v21, 4  ;;  %v4510_v26 = vpack.c.bf16 %v706_v21, %v706_v21 }
  0xc0   : > { %v708_v27 = vmax.f32 %v706_v21, %v707_v25  ;;  %2179 = vmatpush.bf16.xpose.msrb.mxu2 %v4510_v26  ;;  %v2943_v21 = vld [vmem:[%s4842_s6 + $0x228] sm:$0xf0]  ;;  %v3590_v25 = vld [vmem:[%s4842_s6 + $0x24] sm:$0xf0] }
  0xc1   : > { %v704_v28 = vpop.f32.mrf.mxu0  ;;  %1593 = vmatpush.bf16.msrb.mxu0 %v3150_v31  ;;  %v2946_v51 = vor.u32 %v3525_v19, %v2943_v21  ;;  %v3070_v24 = vor.u32 %v3590_v25, %v3069_v23 }
  0xc2   : > { %v709_v30 = vrot.slane %v708_v27, 2  ;;  %v2935_v28 = vld [vmem:[%s4842_s6 + $0x218] sm:$0xf0] }
  0xc4   : > { %v710_v32 = vmax.f32 %v708_v27, %v709_v30  ;;  %v3523_v27 = vld [vmem:[%s4842_s6 + $0x214] sm:$0xf]  ;;  %v3588_v30 = vld [vmem:[%s4842_s6 + $0x14] sm:$0xf0] }
  0xc5   : > { %1594 = vmatpush.bf16.msrb.mxu0 %v3142_v36  ;;  %v2938_v31 = vor.u32 %v3523_v27, %v2935_v28  ;;  %v3062_v34 = vor.u32 %v3588_v30, %v3061_v29  ;;  %v3111_v36 = vld [vmem:[%s4842_s6 + $0x78] sm:$0xf0] }
  0xc6   : > { %v711_v35 = vrot.slane %v710_v32, 1 }
  0xc8   : > { %v712_v37 = vmax.f32 %v710_v32, %v711_v35  ;;  %v3521_v32 = vld [vmem:[%s4842_s6 + $0x204] sm:$0xf]  ;;  %v3599_v35 = vld [vmem:[%s4842_s6 + $0x74] sm:$0xf] }
  0xc9   : > { %1595 = vmatpush.bf16.msrb.mxu0 %v3134_v45  ;;  %v2930_v39 = vor.u32 %v3521_v32, %v2927_v33  ;;  %v3114_v40 = vor.u32 %v3599_v35, %v3111_v36 }
  0xca   : > { %v4537_v42 = vmul.f32 0.70710677, %v712_v37  ;;  %v3053_v37 = vld [vmem:[%s4842_s6] sm:$0xf] }
  0xcb   : > { %v3054_v41 = vor.u32 %v3586_v38, %v3053_v37  ;;  %v878_v38 = vld [vmem:[%s4843_s7] sm:$0x3] }
  0xcc   : > { %v4547_v48 = vpack.c.bf16 %v4537_v42, %v4537_v42  ;;  %v915_v49 = vrot.slane %v4537_v42, 7  ;;  %v1379_v45 = vrot.slane %v4537_v42, 6 }
  0xcd   : > { %1596 = vmatpush.bf16.msrb.mxu0 %v3126_v61 }
  0xce   : > { %858 = vmatmul.bf16.vlgmr.msra.gmra.mxu1 %v4547_v48  ;;  %v2912_v58 = vpack.c.bf16 %v915_v49, %v915_v49  ;;  %v3106_v49 = vor.u32 %v3597_v43, %v3103_v44  ;;  %v3180_v42 = vpack.c.bf16 %v1379_v45, %v1379_v45  ;;  %v1633_v43 = vperm.slane %v878_v38, 1 }
  0xcf   : > { %1352 = vmatpush.bf16.msra.mxu1 %v2986_v46  ;;  %v4668_v46 = vpop.f32.mrf.mxu2 }
  0xd0   : > { %2913 = vmatmul.msk.bf16.vlgmr.msra.gmra.mxu3 %vm4124_vm1, %v2912_v58 }
  0xd1   : > { %1577 = vmatpush.bf16.msra.mxu3 %v3110_v54  ;;  %1597 = vmatpush.bf16.msrb.mxu0 %v3118_v6  ;;  %v4681_v54 = vsel %vm1724_vm4, %v4510_v26, 0  ;;  %v3058_v6 = vor.u32 %v3585_v4, %v3055_v5 }
  0xd3   : > { %1353 = vmatpush.bf16.msra.mxu1 %v2978_v62  ;;  %v3589_v62 = vld [vmem:[%s4842_s6 + $0x24] sm:$0xf] }
  0xd4   : > { %3184 = vmatmul.msk.bf16.vlgmr.msrb.gmra.mxu0 %vm4403_vm3, %v4385_v13  ;;  %v2954_v13 = vor.u32 %v3527_v14, %v2951_v15  ;;  %v3074_v0 = vor.u32 %v3589_v62, %v3071_v63 }
  0xd5   : > { %1578 = vmatpush.bf16.msra.mxu3 %v3102_v1  ;;  %v3587_v1 = vld [vmem:[%s4842_s6 + $0x14] sm:$0xf] }
  0xd6   : > { %v3066_v3 = vor.u32 %v3587_v1, %v3063_v2 }
  0xd7   : > { %1354 = vmatpush.bf16.msra.mxu1 %v2970_v7 }
  0xd9   : > { %1579 = vmatpush.bf16.msra.mxu3 %v3094_v9 }
  0xdb   : > { %1355 = vmatpush.bf16.msra.mxu1 %v2962_v12 }
  0xdd   : > { %1580 = vmatpush.bf16.msra.mxu3 %v3086_v16 }
  0xde   : > { %2919 = vmatmul.msk.bf16.vlgmr.msrb.gmra.mxu1 %vm4124_vm1, %v2912_v58  ;;  %v3087_v58 = vld [vmem:[%s4842_s6 + $0x48] sm:$0xf0] }
  0xdf   : > { %1356 = vmatpush.bf16.msra.mxu1 %v2954_v13  ;;  %v3090_v59 = vor.u32 %v3593_v57, %v3087_v58 }
  0xe0   : > { %1334 = vmatmul.bf16.vlgmr.msrb.gmra.mxu3 %v4547_v48 }
  0xe1   : > { %1581 = vmatpush.bf16.msra.mxu3 %v3078_v22 }
  0xe3   : > { %1357 = vmatpush.bf16.msra.mxu1 %v2946_v51 }
  0xe5   : > { %1582 = vmatpush.bf16.msra.mxu3 %v3070_v24 }
  0xe7   : > { %1358 = vmatpush.bf16.msra.mxu1 %v2938_v31 }
  0xe9   : > { %1583 = vmatpush.bf16.msra.mxu3 %v3062_v34 }
  0xeb   : > { %1359 = vmatpush.bf16.msra.mxu1 %v2930_v39 }
  0xed   : > { %1584 = vmatpush.bf16.msra.mxu3 %v3054_v41 }
  0xee   : > { %1360 = vmatmul.bf16.vlgmr.msra.gmra.mxu1 %v4547_v48  ;;  %v874_v48 = vpop.f32.mrf.mxu2 }
  0xef   : > { %1603 = vmatpush.bf16.msrb.mxu1 %v3114_v40 }
  0xf0   : > { %3181 = vmatmul.msk.bf16.vlgmr.msra.gmra.mxu3 %vm4403_vm3, %v3180_v42 }
  0xf1   : > { %1688 = vmatpush.bf16.xpose.msrb.mxu3 %v4510_v26  ;;  %v3079_v26 = vld [vmem:[%s4842_s6 + $0x38] sm:$0xf0] }
  0xf2   : > { %v3082_v61 = vor.u32 %v3591_v60, %v3079_v26 }
  0xf3   : > { %1604 = vmatpush.bf16.msrb.mxu1 %v3106_v49 }
  0xf6   : > { %v1162_v8 = vpop.f32.mrf.mxu2 }
  0xf7   : > { %1605 = vmatpush.bf16.msrb.mxu1 %v3098_v55 }
  0xf9   : > { %1735 = vmatpush.bf16.msra.mxu3 %v4681_v54 }
  0xfb   : > { %1606 = vmatpush.bf16.msrb.mxu1 %v3090_v59  ;;  %v1632_v59 = vperm.slane %v878_v38, 0 }
  0xfe   : > { %v1136_v7 = vpop.f32.mrf.mxu0  ;;  %v1164_v9 = vpop.f32.mrf.mxu2 }
  0xff   : > { %1607 = vmatpush.bf16.msrb.mxu1 %v3082_v61 }
 0x103   : > { %1608 = vmatpush.bf16.msrb.mxu1 %v3074_v0 }
 0x106   : > { %v1138_v20 = vpop.f32.mrf.mxu0  ;;  %v1374_v14 = vpop.f32.mrf.mxu2 }
 0x107   : > { %1609 = vmatpush.bf16.msrb.mxu1 %v3066_v3  ;;  %v4722_v3 = vand.u32 127, %v876_v47 }
 0x109   : > { %vm1661_vm9 = vcmp.lt.s32.totalorder %v4722_v3, 32 }
 0x10b   : > { %1610 = vmatpush.bf16.msrb.mxu1 %v3058_v6 }
 0x10e   : > { %3187 = vmatmul.msk.bf16.vlgmr.msrb.gmra.mxu1 %vm4403_vm3, %v3180_v42  ;;  %v1376_v13 = vpop.f32.mrf.mxu2 }
 0x120   : > { %v1625_v22 = vpop.f32.mrf.mxu2 }
 0x128   : > { %v1627_v28 = vpop.f32.mrf.mxu2 }
 0x129   : > { %v3629_v28 = vld [vmem:[#allocation4 + $0x164] sm:$0xf] }
 0x131   : > { %v1348_v10 = vpop.f32.mrf.mxu0 }
 0x139   : > { %v1350_v12 = vpop.f32.mrf.mxu0 }
 0x14b   : > { %v4716_v11 = vpop.f32.mrf.mxu1 }
 0x151   : > { %v1599_v18 = vpop.f32.mrf.mxu0 }
 0x153   : > { %v861_v15 = vpop.f32.mrf.mxu1  ;;  %v1123_v16 = vpop.f32.mrf.mxu3 }
 0x154   : > { %v1137_v17 = vadd.f32 %v1136_v7, %v1123_v16 }
 0x159   : > { %v1601_v23 = vpop.f32.mrf.mxu0 }
 0x15b   : > { %v1125_v19 = vpop.f32.mrf.mxu3  ;;  %v1149_v21 = vpop.f32.mrf.mxu1 }
 0x15c   : > { %v1163_v36 = vadd.f32 %v1162_v8, %v1149_v21 }
 0x163   : > { %v1151_v25 = vpop.f32.mrf.mxu1  ;;  %v1335_v51 = vpop.f32.mrf.mxu3 }
 0x164   : > { %v1336_v27 = vadd.f32 %v1335_v51, %v1137_v17  ;;  %v3631_v51 = vld [vmem:[#allocation4 + $0x174] sm:$0xf] }
 0x166   : > { %v1349_v24 = vadd.f32 %v1348_v10, %v1336_v27  ;;  %v3323_v27 = vld [vmem:[#allocation4 + $0x178] sm:$0xf0] }
 0x16b   : > { %v1337_v29 = vpop.f32.mrf.mxu3  ;;  %v1361_v30 = vpop.f32.mrf.mxu1 }
 0x16c   : > { %v1362_v37 = vadd.f32 %v1361_v30, %v1163_v36  ;;  %v3315_v29 = vld [vmem:[#allocation4 + $0x168] sm:$0xf0]  ;;  %v3627_v36 = vld [vmem:[#allocation4 + $0x154] sm:$0xf] }
 0x16d   : > { %v3318_v30 = vor.u32 %v3629_v28, %v3315_v29  ;;  %v3211_v29 = vld [vmem:[#allocation4 + $0xa0] sm:$0xf] }
 0x16e   : > { %v1375_v40 = vadd.f32 %v1374_v14, %v1362_v37  ;;  %v3307_v37 = vld [vmem:[#allocation4 + $0x158] sm:$0xf0] }
 0x16f   : > { %v3310_v38 = vor.u32 %v3627_v36, %v3307_v37 }
 0x173   : > { %v1363_v31 = vpop.f32.mrf.mxu1  ;;  %v1586_v32 = vpop.f32.mrf.mxu3 }
 0x174   : > { %v1600_v33 = vadd.f32 %v1599_v18, %v1586_v32 }
 0x176   : > { %v1629_v34 = vadd.f32 %v1600_v33, %v1349_v24  ;;  %v3326_v24 = vor.u32 %v3631_v51, %v3323_v27  ;;  %v3221_v51 = vld [vmem:[#allocation4 + $0xb8] sm:$0xf0] }
 0x178   : > { %v1636_v63 = vadd.f32 %v1632_v59, %v1629_v34 }
 0x17b   : > { %v1588_v35 = vpop.f32.mrf.mxu3 }
 0x18b   : > { %v1612_v39 = vpop.f32.mrf.mxu1 }
 0x18c   : > { %v1626_v41 = vadd.f32 %v1625_v22, %v1612_v39  ;;  %v3625_v39 = vld [vmem:[#allocation4 + $0x144] sm:$0xf] }
 0x18e   : > { %v1630_v44 = vadd.f32 %v1626_v41, %v1375_v40  ;;  %v3299_v40 = vld [vmem:[#allocation4 + $0x148] sm:$0xf0] }
 0x18f   : > { %v3302_v41 = vor.u32 %v3625_v39, %v3299_v40  ;;  %v3203_v39 = vld [vmem:[#allocation4 + $0x90] sm:$0xf]  ;;  %v3636_v40 = vld [vmem:[#allocation4 + $0x94] sm:$0xf0] }
 0x190   : > { %v1637_v45 = vadd.f32 %v1633_v43, %v1630_v44  ;;  %v3623_v43 = vld [vmem:[#allocation4 + $0x134] sm:$0xf]  ;;  %v3291_v44 = vld [vmem:[#allocation4 + $0x138] sm:$0xf0] }
 0x192   : > { %v3191_v49 = vmul.f32 -1.442695, %v1637_v45  ;;  %v3294_v45 = vor.u32 %v3623_v43, %v3291_v44  ;;  %v3635_v44 = vld [vmem:[#allocation4 + $0x94] sm:$0xf] }
 0x193   : > { %v1614_v50 = vpop.f32.mrf.mxu1 }
 0x194   : > { %3737 = vpow2.f32 %v3191_v49  ;;  %v3621_v49 = vld [vmem:[#allocation4 + $0x124] sm:$0xf]  ;;  %v3283_v50 = vld [vmem:[#allocation4 + $0x128] sm:$0xf0] }
 0x19a   : > { %v3738_v53 = vpop.eup %3737 }
 0x19b   : > { %v1641_v42 = vadd.f32 1.0, %v3738_v53  ;;  %v3286_v53 = vor.u32 %v3621_v49, %v3283_v50  ;;  %v3204_v50 = vor.u32 %v3636_v40, %v3203_v39  ;;  %v3651_v39 = vld [vmem:[#allocation4 + $0x14] sm:$0xf]  ;;  %v3339_v40 = vld [vmem:[#allocation4 + $0x18] sm:$0xf0] }
 0x19d   : > { %3739 = vrcp.f32 %v1641_v42  ;;  %v1653_v48 = vand.u32 2147483648, %v1641_v42  ;;  %v1651_v26 = vand.u32 2147483647, %v1641_v42  ;;  %vm1647_vm6 = vweird.f32 %v1641_v42 }
 0x19f   : > { %v1654_v62 = vor.u32 1.1754944e-38, %v1653_v48  ;;  %vm1652_vm8 = vcmp.eq.f32.partialorder %v1651_v26, 8.507059e+37  ;;  %v3267_v48 = vld [vmem:[#allocation4 + $0x108] sm:$0xf0]  ;;  %v3648_v26 = vld [vmem:[#allocation4 + $0xf4] sm:$0xf0] }
 0x1a3   : > { %v3740_v55 = vpop.eup %3739 }
 0x1a4   : > { %v1643_v57 = vmul.f32 %v3740_v55, %v1641_v42  ;;  %vm1648_vm5 = vweird.f32 %v3740_v55  ;;  %v3619_v42 = vld [vmem:[#allocation4 + $0x114] sm:$0xf] }
 0x1a5   : > { %vm1649_vm7 = vmor %vm1647_vm6, %vm1648_vm5 }
 0x1a6   : > { %v1644_v58 = vsub.f32 1.0, %v1643_v57 }
 0x1a8   : > { %v1645_v60 = vmul.f32 %v3740_v55, %v1644_v58  ;;  %v3617_v58 = vld [vmem:[#allocation4 + $0x104] sm:$0xf] }
 0x1a9   : > { %v3270_v59 = vor.u32 %v3617_v58, %v3267_v48  ;;  %v3633_v58 = vld [vmem:[#allocation4 + $0x84] sm:$0xf] }
 0x1aa   : > { %v1646_v61 = vadd.f32 %v3740_v55, %v1645_v60  ;;  %v3251_v60 = vld [vmem:[#allocation4 + $0xf0] sm:$0xf] }
 0x1ac   : > { %v1650_v0 = vsel %vm1649_vm7, %v3740_v55, %v1646_v61  ;;  %v3275_v55 = vld [vmem:[#allocation4 + $0x118] sm:$0xf0]  ;;  %v3647_v61 = vld [vmem:[#allocation4 + $0xf4] sm:$0xf] }
 0x1ad   : > { %v1655_v1 = vsel %vm1652_vm8, %v1654_v62, %v1650_v0  ;;  %v3278_v57 = vor.u32 %v3619_v42, %v3275_v55  ;;  %v3252_v62 = vor.u32 %v3648_v26, %v3251_v60  ;;  %v3243_v0 = vld [vmem:[#allocation4 + $0xe0] sm:$0xf]  ;;  %v3385_v60 = vld [vmem:[#allocation4 + $0x70] sm:$0xf] }
 0x1ae   : > { %v1657_v2 = vmul.f32 %v1655_v1, %v1636_v63  ;;  %v3253_v63 = vld [vmem:[#allocation4 + $0xf8] sm:$0xf0]  ;;  %v3646_v1 = vld [vmem:[#allocation4 + $0xe4] sm:$0xf0] }
 0x1af   : > { %1864 = vmatpush.bf16.msra.mxu0 %v3252_v62  ;;  %v3663_v62 = vld [vmem:[#allocation4 + $0x74] sm:$0xf] }
 0x1b0   : > { %1658 = vadd.xlane.f32.xlu0 %v1657_v2 }
 0x223   : > { %v1659_v4 = vpop.xlane.xlu0 %1658 }
 0x224   : > { %v1660_v5 = vmul.f32 0.03125, %v1659_v4  ;;  %v3645_v4 = vld [vmem:[#allocation4 + $0xe4] sm:$0xf] }
 0x226   : > { %v1662_v6 = vsub.f32 %v1657_v2, %v1660_v5  ;;  %v3256_v2 = vor.u32 %v3647_v61, %v3253_v63  ;;  %v3245_v5 = vld [vmem:[#allocation4 + $0xe8] sm:$0xf0]  ;;  %v3664_v61 = vld [vmem:[#allocation4 + $0x74] sm:$0xf0]  ;;  %v3387_v63 = vld [vmem:[#allocation4 + $0x78] sm:$0xf0] }
 0x228   : > { %v1663_v7 = vsel %vm1661_vm9, %v1662_v6, 0.0  ;;  %v3244_v6 = vor.u32 %v3646_v1, %v3243_v0  ;;  %1877 = vmatpush.bf16.msra.mxu1 %v3256_v2 }
 0x229   : > { %v1664_v20 = vmul.f32 %v1663_v7, %v1663_v7 }
 0x22a   : > { %1865 = vmatpush.bf16.msra.mxu0 %v3244_v6  ;;  %v3390_v6 = vor.u32 %v3663_v62, %v3387_v63 }
 0x22b   : > { %1665 = vadd.xlane.f32.xlu0 %v1664_v20  ;;  %v3235_v20 = vld [vmem:[#allocation4 + $0xd0] sm:$0xf] }
 0x29e   : > { %v1666_v8 = vpop.xlane.xlu0 %1665 }
 0x29f   : > { %v1667_v9 = vmul.f32 0.03125, %v1666_v8  ;;  %v3644_v8 = vld [vmem:[#allocation4 + $0xd4] sm:$0xf0] }
 0x2a1   : > { %v1668_v10 = vadd.f32 1e-05, %v1667_v9  ;;  %v3643_v9 = vld [vmem:[#allocation4 + $0xd4] sm:$0xf] }
 0x2a3   : > { %3741 = vrsqrt.f32 %v1668_v10  ;;  %vm1675_vm11 = vweird.f32 %v1668_v10 }
 0x2a9   : > { %v3742_v12 = vpop.eup %3741 }
 0x2aa   : > { %v1670_v14 = vmul.f32 %v3742_v12, %v1668_v10  ;;  %vm1676_vm10 = vweird.f32 %v3742_v12  ;;  %v3237_v10 = vld [vmem:[#allocation4 + $0xd8] sm:$0xf0] }
 0x2ab   : > { %vm1677_vm12 = vmor %vm1675_vm11, %vm1676_vm10 }
 0x2ac   : > { %v1671_v15 = vmul.f32 %v3742_v12, %v1670_v14  ;;  %v3240_v14 = vor.u32 %v3643_v9, %v3237_v10 }
 0x2ae   : > { %v1672_v16 = vmul.f32 0.5, %v1671_v15  ;;  %v3227_v15 = vld [vmem:[#allocation4 + $0xc0] sm:$0xf] }
 0x2b0   : > { %v1673_v47 = vsub.f32 1.5, %v1672_v16  ;;  %v3642_v16 = vld [vmem:[#allocation4 + $0xc4] sm:$0xf0] }
 0x2b2   : > { %v1674_v17 = vmul.f32 %v3742_v12, %v1673_v47 }
 0x2b4   : > { %v1678_v18 = vsel %vm1677_vm12, %v3742_v12, %v1674_v17  ;;  %v3236_v12 = vor.u32 %v3644_v8, %v3235_v20  ;;  %v3641_v17 = vld [vmem:[#allocation4 + $0xc4] sm:$0xf]  ;;  %v3662_v20 = vld [vmem:[#allocation4 + $0x64] sm:$0xf0] }
 0x2b5   : > { %v4727_v13 = vmul.f32 %v1678_v18, %v1663_v7  ;;  %v3248_v7 = vor.u32 %v3645_v4, %v3245_v5  ;;  %v3229_v18 = vld [vmem:[#allocation4 + $0xc8] sm:$0xf0]  ;;  %v3386_v5 = vor.u32 %v3664_v61, %v3385_v60  ;;  %v3661_v8 = vld [vmem:[#allocation4 + $0x64] sm:$0xf] }
 0x2b6   : > { %1866 = vmatpush.bf16.msra.mxu0 %v3236_v12  ;;  %v3369_v12 = vld [vmem:[#allocation4 + $0x50] sm:$0xf] }
 0x2b7   : > { %v1680_v19 = vpack.c.bf16 %v4727_v13, %v4727_v13  ;;  %1878 = vmatpush.bf16.msra.mxu1 %v3248_v7  ;;  %v3377_v7 = vld [vmem:[#allocation4 + $0x60] sm:$0xf] }
 0x2b8   : > { %v3378_v9 = vor.u32 %v3662_v20, %v3377_v7 }
 0x2b9   : > { %1689 = vmatmul.bf16.vlgmr.msrb.gmra.mxu3 %v1680_v19  ;;  %v3228_v19 = vor.u32 %v3642_v16, %v3227_v15  ;;  %v3659_v15 = vld [vmem:[#allocation4 + $0x54] sm:$0xf] }
 0x2ba   : > { %1983 = vmatpush.bf16.msrb.mxu3 %v3326_v24 }
 0x2bb   : > { %1879 = vmatpush.bf16.msra.mxu1 %v3240_v14  ;;  %1867 = vmatpush.bf16.msra.mxu0 %v3228_v19  ;;  %v3660_v14 = vld [vmem:[#allocation4 + $0x54] sm:$0xf0]  ;;  %v3657_v19 = vld [vmem:[#allocation4 + $0x44] sm:$0xf] }
 0x2bc   : > { %v3370_v16 = vor.u32 %v3660_v14, %v3369_v12 }
 0x2be   : > { %1984 = vmatpush.bf16.msrb.mxu3 %v3318_v30  ;;  %v3638_v30 = vld [vmem:[#allocation4 + $0xa4] sm:$0xf0] }
 0x2bf   : > { %v3212_v36 = vor.u32 %v3638_v30, %v3211_v29  ;;  %v3345_v29 = vld [vmem:[#allocation4 + $0x20] sm:$0xf]  ;;  %v3654_v30 = vld [vmem:[#allocation4 + $0x24] sm:$0xf0] }
 0x2c2   : > { %1985 = vmatpush.bf16.msrb.mxu3 %v3310_v38 }
 0x2c6   : > { %1986 = vmatpush.bf16.msrb.mxu3 %v3302_v41 }
 0x2ca   : > { %1987 = vmatpush.bf16.msrb.mxu3 %v3294_v45  ;;  %v3205_v45 = vld [vmem:[#allocation4 + $0x98] sm:$0xf0] }
 0x2cb   : > { %v3208_v55 = vor.u32 %v3635_v44, %v3205_v45  ;;  %v3329_v44 = vld [vmem:[#allocation4] sm:$0xf]  ;;  %v3650_v45 = vld [vmem:[#allocation4 + $0x4] sm:$0xf0] }
 0x2ce   : > { %1988 = vmatpush.bf16.msrb.mxu3 %v3286_v53  ;;  %v3195_v53 = vld [vmem:[#allocation4 + $0x80] sm:$0xf] }
 0x2d2   : > { %1989 = vmatpush.bf16.msrb.mxu3 %v3278_v57  ;;  %v3634_v57 = vld [vmem:[#allocation4 + $0x84] sm:$0xf0] }
 0x2d3   : > { %v3196_v1 = vor.u32 %v3634_v57, %v3195_v53  ;;  %v3330_v53 = vor.u32 %v3650_v45, %v3329_v44 }
 0x2d6   : > { %1990 = vmatpush.bf16.msrb.mxu3 %v3270_v59  ;;  %v3197_v59 = vld [vmem:[#allocation4 + $0x88] sm:$0xf0] }
 0x2d7   : > { %v3200_v2 = vor.u32 %v3633_v58, %v3197_v59 }
 0x33c   : > { %v1690_v21 = vpop.f32.mrf.mxu3 }
 0x33d   : > { %v1694_v22 = vmul.f32 0.17677669, %v1690_v21  ;;  %v3232_v21 = vor.u32 %v3641_v17, %v3229_v18  ;;  %v3658_v18 = vld [vmem:[#allocation4 + $0x44] sm:$0xf0] }
 0x33f   : > { %v1696_v23 = vsel %vm1695_vm13, %v1694_v22, -inf  ;;  %1880 = vmatpush.bf16.msra.mxu1 %v3232_v21 }
 0x340   : > { %1697 = vmax.xlane.f32.xlu1 %v1696_v23  ;;  %v3640_v23 = vld [vmem:[#allocation4 + $0xb4] sm:$0xf0] }
 0x344   : > { %v1692_v25 = vpop.f32.mrf.mxu3 }
 0x345   : > { %v3639_v25 = vld [vmem:[#allocation4 + $0xb4] sm:$0xf] }
 0x346   : > { %v3224_v24 = vor.u32 %v3639_v25, %v3221_v51  ;;  %v3353_v25 = vld [vmem:[#allocation4 + $0x30] sm:$0xf]  ;;  %v3656_v51 = vld [vmem:[#allocation4 + $0x34] sm:$0xf0] }
 0x348   : > { %1881 = vmatpush.bf16.msra.mxu1 %v3224_v24  ;;  %v3355_v24 = vld [vmem:[#allocation4 + $0x38] sm:$0xf0] }
 0x3b3   : > { %v1698_v31 = vpop.xlane.xlu1 %1697 }
 0x3b4   : > { %v1699_v32 = vsub.f32 %v1694_v22, %v1698_v31  ;;  %v3219_v22 = vld [vmem:[#allocation4 + $0xb0] sm:$0xf] }
 0x3b5   : > { %v3220_v27 = vor.u32 %v3640_v23, %v3219_v22  ;;  %v3363_v22 = vld [vmem:[#allocation4 + $0x48] sm:$0xf0] }
 0x3b6   : > { %v1700_v33 = vmul.f32 1.442695, %v1699_v32  ;;  %v3637_v32 = vld [vmem:[#allocation4 + $0xa4] sm:$0xf]  ;;  %v3366_v23 = vor.u32 %v3657_v19, %v3363_v22 }
 0x3b7   : > { %1868 = vmatpush.bf16.msra.mxu0 %v3220_v27  ;;  %v3655_v27 = vld [vmem:[#allocation4 + $0x34] sm:$0xf] }
 0x3b8   : > { %3743 = vpow2.f32 %v1700_v33  ;;  %v3213_v33 = vld [vmem:[#allocation4 + $0xa8] sm:$0xf0] }
 0x3b9   : > { %v3216_v38 = vor.u32 %v3637_v32, %v3213_v33  ;;  %v3653_v32 = vld [vmem:[#allocation4 + $0x24] sm:$0xf]  ;;  %v3347_v33 = vld [vmem:[#allocation4 + $0x28] sm:$0xf0] }
 0x3bb   : > { %1869 = vmatpush.bf16.msra.mxu0 %v3212_v36  ;;  %1882 = vmatpush.bf16.msra.mxu1 %v3216_v38  ;;  %v3350_v36 = vor.u32 %v3653_v32, %v3347_v33  ;;  %v3652_v38 = vld [vmem:[#allocation4 + $0x14] sm:$0xf0] }
 0x3be   : > { %v4732_v34 = vpop.eup %3743 }
 0x3bf   : > { %v1702_v35 = vsel %vm1695_vm13, %v4732_v34, 0.0  ;;  %1870 = vmatpush.bf16.msra.mxu0 %v3204_v50  ;;  %1883 = vmatpush.bf16.msra.mxu1 %v3208_v55  ;;  %v3331_v50 = vld [vmem:[#allocation4 + $0x8] sm:$0xf0]  ;;  %v3733_v55 = vld [vmem:[%s4841_s5] ss:$0 sm:$0xff] }
 0x3c0   : > { %1703 = vadd.xlane.f32.xlu1 %v1702_v35  ;;  %v860_v57 = vadd.f32 %v3733_v55, %v4716_v11 }
 0x3c2   : > { %v873_v59 = vadd.f32 %v4668_v46, %v860_v57 }
 0x3c3   : > { %1871 = vmatpush.bf16.msra.mxu0 %v3196_v1  ;;  %1884 = vmatpush.bf16.msra.mxu1 %v3200_v2 }
 0x3c7   : > { %2095 = vmatpush.bf16.msrb.mxu0 %v3386_v5  ;;  %2108 = vmatpush.bf16.msrb.mxu1 %v3390_v6 }
 0x3cb   : > { %2096 = vmatpush.bf16.msrb.mxu0 %v3378_v9 }
 0x3cf   : > { %2097 = vmatpush.bf16.msrb.mxu0 %v3370_v16 }
 0x433   : > { %v1704_v47 = vpop.xlane.xlu1 %1703 }
 0x434   : > { %3745 = vrcp.f32 %v1704_v47  ;;  %v1716_v37 = vand.u32 2147483648, %v1704_v47  ;;  %v1714_v43 = vand.u32 2147483647, %v1704_v47  ;;  %vm1710_vm15 = vweird.f32 %v1704_v47 }
 0x436   : > { %v1717_v42 = vor.u32 1.1754944e-38, %v1716_v37  ;;  %vm1715_vm2 = vcmp.eq.f32.partialorder %v1714_v43, 8.507059e+37  ;;  %v3337_v37 = vld [vmem:[#allocation4 + $0x10] sm:$0xf]  ;;  %v3342_v43 = vor.u32 %v3651_v39, %v3339_v40 }
 0x43a   : > { %v3746_v28 = vpop.eup %3745 }
 0x43b   : > { %v1706_v31 = vmul.f32 %v3746_v28, %v1704_v47  ;;  %vm1711_vm14 = vweird.f32 %v3746_v28  ;;  %v3371_v47 = vld [vmem:[#allocation4 + $0x58] sm:$0xf0] }
 0x43c   : > { %vm1712_vm0 = vmor %vm1710_vm15, %vm1711_vm14  ;;  %v3374_v17 = vor.u32 %v3659_v15, %v3371_v47 }
 0x43d   : > { %v1707_v35 = vsub.f32 1.0, %v1706_v31  ;;  %v3358_v31 = vor.u32 %v3655_v27, %v3355_v24 }
 0x43f   : > { %v1708_v41 = vmul.f32 %v3746_v28, %v1707_v35  ;;  %v3346_v35 = vor.u32 %v3654_v30, %v3345_v29 }
 0x441   : > { %v1709_v49 = vadd.f32 %v3746_v28, %v1708_v41  ;;  %v3338_v41 = vor.u32 %v3652_v38, %v3337_v37 }
 0x443   : > { %v1713_v48 = vsel %vm1712_vm0, %v3746_v28, %v1709_v49  ;;  %v3354_v28 = vor.u32 %v3656_v51, %v3353_v25  ;;  %v3649_v49 = vld [vmem:[#allocation4 + $0x4] sm:$0xf] }
 0x444   : > { %v1718_v26 = vsel %vm1715_vm2, %v1717_v42, %v1713_v48  ;;  %v3334_v42 = vor.u32 %v3649_v49, %v3331_v50 }
 0x445   : > { %v1719_v0 = vmul.f32 %v4732_v34, %v1718_v26  ;;  %v3379_v34 = vld [vmem:[#allocation4 + $0x68] sm:$0xf0] }
 0x446   : > { %v3382_v10 = vor.u32 %v3661_v8, %v3379_v34  ;;  %v2125_v34 = vperm.slane %v1745_v56, 1 }
 0x447   : > { %v1720_v4 = vpack.c.bf16 %v1719_v0, %v1719_v0 }
 0x448   : > { %2109 = vmatpush.bf16.msrb.mxu1 %v3382_v10 }
 0x449   : > { %3192 = vmatmul.msk.bf16.vlgmr.msra.gmra.mxu3 %vm1695_vm13, %v1720_v4 }
 0x44a   : > { %2221 = vmatpush.bf16.msra.mxu3 %v4681_v54  ;;  %v3361_v54 = vld [vmem:[#allocation4 + $0x40] sm:$0xf] }
 0x44b   : > { %v3362_v21 = vor.u32 %v3658_v18, %v3361_v54 }
 0x44c   : > { %2110 = vmatpush.bf16.msrb.mxu1 %v3374_v17 }
 0x44d   : > { %2098 = vmatpush.bf16.msrb.mxu0 %v3362_v21 }
 0x450   : > { %2111 = vmatpush.bf16.msrb.mxu1 %v3366_v23  ;;  %v2124_v23 = vperm.slane %v1745_v56, 0 }
 0x451   : > { %2099 = vmatpush.bf16.msrb.mxu0 %v3354_v28 }
 0x454   : > { %2112 = vmatpush.bf16.msrb.mxu1 %v3358_v31 }
 0x455   : > { %2100 = vmatpush.bf16.msrb.mxu0 %v3346_v35 }
 0x458   : > { %2113 = vmatpush.bf16.msrb.mxu1 %v3350_v36 }
 0x459   : > { %2101 = vmatpush.bf16.msrb.mxu0 %v3338_v41 }
 0x45c   : > { %2114 = vmatpush.bf16.msrb.mxu1 %v3342_v43 }
 0x45d   : > { %2102 = vmatpush.bf16.msrb.mxu0 %v3330_v53 }
 0x460   : > { %2115 = vmatpush.bf16.msrb.mxu1 %v3334_v42 }
 0x4cc   : > { %v1737_v58 = vpop.f32.mrf.mxu3 }
 0x4cd   : > { %v1741_v48 = vadd.f32 %v1737_v58, %v4727_v13 }
 0x4cf   : > { %v1742_v60 = vmul.f32 0.70710677, %v1741_v48 }
 0x4d1   : > { %v1743_v26 = vadd.f32 %v1742_v60, %v873_v59 }
 0x4d3   : > { %v4745_v61 = vmul.f32 0.70710677, %v1743_v26 }
 0x4d4   : > { %v1739_v62 = vpop.f32.mrf.mxu3 }
 0x4d5   : > { %v1764_v63 = vrot.slane %v4745_v61, 7  ;;  %v1746_v0 = vpack.c.bf16 %v4745_v61, %v4745_v61  ;;  %v1996_v46 = vrot.slane %v4745_v61, 6 }
 0x4d7   : > { %1978 = vmatmul.bf16.vlgmr.msra.gmra.mxu2 %v1746_v0  ;;  %1991 = vmatmul.bf16.vlgmr.msrb.gmra.mxu3 %v1746_v0  ;;  %v3258_v1 = vpack.c.bf16 %v1764_v63, %v1764_v63  ;;  %v3392_v11 = vpack.c.bf16 %v1996_v46, %v1996_v46  ;;  %v3672_v46 = vld [vmem:[#allocation6 + $0x38] sm:$0xff] }
 0x4d8   : > { %2300 = vmatpush.bf16.msra.mxu2 %v3672_v46 }
 0x4d9   : > { %3259 = vmatmul.msk.bf16.vlgmr.msra.gmra.mxu0 %vm4124_vm1, %v3258_v1  ;;  %3262 = vmatmul.msk.bf16.vlgmr.msra.gmra.mxu1 %vm4124_vm1, %v3258_v1 }
 0x4e9   : > { %3393 = vmatmul.msk.bf16.vlgmr.msrb.gmra.mxu0 %vm4403_vm3, %v3392_v11  ;;  %3396 = vmatmul.msk.bf16.vlgmr.msrb.gmra.mxu1 %vm4403_vm3, %v3392_v11  ;;  %v3671_v11 = vld [vmem:[#allocation6 + $0x30] sm:$0xff] }
 0x4ea   : > { %2301 = vmatpush.bf16.msra.mxu2 %v3671_v11 }
 0x556   : > { %v1873_v13 = vpop.f32.mrf.mxu0  ;;  %v1886_v2 = vpop.f32.mrf.mxu1 }
 0x55a   : > { %v1979_v4 = vpop.f32.mrf.mxu2  ;;  %v1992_v5 = vpop.f32.mrf.mxu3 }
 0x55b   : > { %v1993_v9 = vadd.f32 %v1992_v5, %v1886_v2  ;;  %v1980_v21 = vadd.f32 %v1979_v4, %v1873_v13  ;;  %v3670_v13 = vld [vmem:[#allocation6 + $0x28] sm:$0xff]  ;;  %v3669_v4 = vld [vmem:[#allocation6 + $0x20] sm:$0xff]  ;;  %v3668_v5 = vld [vmem:[#allocation6 + $0x18] sm:$0xff] }
 0x55c   : > { %2302 = vmatpush.bf16.msra.mxu2 %v3670_v13 }
 0x55e   : > { %v1875_v6 = vpop.f32.mrf.mxu0  ;;  %v1888_v7 = vpop.f32.mrf.mxu1 }
 0x560   : > { %2303 = vmatpush.bf16.msra.mxu2 %v3669_v4 }
 0x562   : > { %v1981_v20 = vpop.f32.mrf.mxu2  ;;  %v1994_v8 = vpop.f32.mrf.mxu3 }
 0x564   : > { %2304 = vmatpush.bf16.msra.mxu2 %v3668_v5 }
 0x566   : > { %v2104_v10 = vpop.f32.mrf.mxu0  ;;  %v2117_v12 = vpop.f32.mrf.mxu1 }
 0x567   : > { %v2122_v14 = vadd.f32 %v2117_v12, %v1993_v9  ;;  %v2121_v51 = vadd.f32 %v2104_v10, %v1980_v21  ;;  %v3677_v21 = vld [vmem:[%s4848_s12 + $0x20] sm:$0xff] }
 0x569   : > { %v2129_v15 = vadd.f32 %v2125_v34, %v2122_v14  ;;  %v2128_v30 = vadd.f32 %v2124_v23, %v2121_v51  ;;  %v3675_v23 = vld [vmem:[%s4848_s12 + $0x10] sm:$0xff] }
 0x56b   : > { %v3397_v52 = vmul.f32 -1.442695, %v2129_v15 }
 0x56d   : > { %3747 = vpow2.f32 %v3397_v52 }
 0x56e   : > { %v2106_v16 = vpop.f32.mrf.mxu0  ;;  %v2119_v47 = vpop.f32.mrf.mxu1 }
 0x56f   : > { %v3667_v16 = vld [vmem:[#allocation6 + $0x10] sm:$0xff]  ;;  %v3666_v47 = vld [vmem:[#allocation6 + $0x8] sm:$0xff] }
 0x570   : > { %2305 = vmatpush.bf16.msra.mxu2 %v3667_v16 }
 0x573   : > { %v3748_v17 = vpop.eup %3747 }
 0x574   : > { %v2133_v54 = vadd.f32 1.0, %v3748_v17  ;;  %2306 = vmatpush.bf16.msra.mxu2 %v3666_v47  ;;  %v3665_v17 = vld [vmem:[#allocation6] sm:$0xff] }
 0x576   : > { %3749 = vrcp.f32 %v2133_v54  ;;  %v2145_v25 = vand.u32 2147483648, %v2133_v54  ;;  %v2143_v28 = vand.u32 2147483647, %v2133_v54  ;;  %vm2139_vm3 = vweird.f32 %v2133_v54 }
 0x578   : > { %v2146_v29 = vor.u32 1.1754944e-38, %v2145_v25  ;;  %vm2144_vm5 = vcmp.eq.f32.partialorder %v2143_v28, 8.507059e+37  ;;  %2307 = vmatpush.bf16.msra.mxu2 %v3665_v17 }
 0x57c   : > { %v3750_v18 = vpop.eup %3749 }
 0x57d   : > { %v2135_v19 = vmul.f32 %v3750_v18, %v2133_v54  ;;  %vm2140_vm1 = vweird.f32 %v3750_v18  ;;  %v3680_v54 = vld [vmem:[%s4848_s12 + $0x38] sm:$0xff] }
 0x57e   : > { %vm2141_vm4 = vmor %vm2139_vm3, %vm2140_vm1  ;;  %2383 = vmatpush.bf16.msrb.mxu3 %v3680_v54 }
 0x57f   : > { %v2136_v22 = vsub.f32 1.0, %v2135_v19  ;;  %v3678_v19 = vld [vmem:[%s4848_s12 + $0x28] sm:$0xff] }
 0x581   : > { %v2137_v27 = vmul.f32 %v3750_v18, %v2136_v22  ;;  %v3676_v22 = vld [vmem:[%s4848_s12 + $0x18] sm:$0xff] }
 0x583   : > { %v2138_v24 = vadd.f32 %v3750_v18, %v2137_v27 }
 0x585   : > { %v2142_v31 = vsel %vm2141_vm4, %v3750_v18, %v2138_v24  ;;  %v3679_v18 = vld [vmem:[%s4848_s12 + $0x30] sm:$0xff] }
 0x586   : > { %v2147_v32 = vsel %vm2144_vm5, %v2146_v29, %v2142_v31  ;;  %2384 = vmatpush.bf16.msrb.mxu3 %v3679_v18  ;;  %v3674_v31 = vld [vmem:[%s4848_s12 + $0x8] sm:$0xff] }
 0x587   : > { %v2149_v33 = vmul.f32 %v2147_v32, %v2128_v30  ;;  %v3673_v32 = vld [vmem:[%s4848_s12] sm:$0xff] }
 0x589   : > { %2150 = vadd.xlane.f32.xlu2 %v2149_v33 }
 0x58a   : > { %2385 = vmatpush.bf16.msrb.mxu3 %v3678_v19 }
 0x58e   : > { %2386 = vmatpush.bf16.msrb.mxu3 %v3677_v21 }
 0x592   : > { %2387 = vmatpush.bf16.msrb.mxu3 %v3676_v22 }
 0x596   : > { %2388 = vmatpush.bf16.msrb.mxu3 %v3675_v23 }
 0x59a   : > { %2389 = vmatpush.bf16.msrb.mxu3 %v3674_v31 }
 0x59e   : > { %2390 = vmatpush.bf16.msrb.mxu3 %v3673_v32 }
 0x5fc   : > { %v2151_v35 = vpop.xlane.xlu2 %2150 }
 0x5fd   : > { %v2152_v36 = vmul.f32 0.03125, %v2151_v35  ;;  %v3686_v35 = vld [vmem:[%s4850_s14 + $0x28] sm:$0xff] }
 0x5ff   : > { %v2153_v37 = vsub.f32 %v2149_v33, %v2152_v36  ;;  %v3688_v33 = vld [vmem:[%s4850_s14 + $0x38] sm:$0xff]  ;;  %v3685_v36 = vld [vmem:[%s4850_s14 + $0x20] sm:$0xff] }
 0x600   : > { %2466 = vmatpush.bf16.msra.mxu0 %v3688_v33 }
 0x601   : > { %v2154_v38 = vsel %vm1661_vm9, %v2153_v37, 0.0  ;;  %v3684_v37 = vld [vmem:[%s4850_s14 + $0x18] sm:$0xff] }
 0x602   : > { %v2155_v39 = vmul.f32 %v2154_v38, %v2154_v38 }
 0x604   : > { %2156 = vadd.xlane.f32.xlu2 %v2155_v39  ;;  %v3734_v39 = vld [vmem:[%s4847_s11] ss:$0 sm:$0xff] }
 0x677   : > { %v2157_v40 = vpop.xlane.xlu2 %2156 }
 0x678   : > { %v2158_v41 = vmul.f32 0.03125, %v2157_v40 }
 0x67a   : > { %v2159_v43 = vadd.f32 1e-05, %v2158_v41 }
 0x67c   : > { %3751 = vrsqrt.f32 %v2159_v43  ;;  %vm2166_vm7 = vweird.f32 %v2159_v43 }
 0x682   : > { %v3752_v44 = vpop.eup %3751 }
 0x683   : > { %v2161_v45 = vmul.f32 %v3752_v44, %v2159_v43  ;;  %vm2167_vm6 = vweird.f32 %v3752_v44 }
 0x684   : > { %vm2168_vm8 = vmor %vm2166_vm7, %vm2167_vm6 }
 0x685   : > { %v2162_v49 = vmul.f32 %v3752_v44, %v2161_v45 }
 0x687   : > { %v2163_v50 = vmul.f32 0.5, %v2162_v49  ;;  %v3682_v49 = vld [vmem:[%s4850_s14 + $0x8] sm:$0xff] }
 0x689   : > { %v2164_v53 = vsub.f32 1.5, %v2163_v50  ;;  %v3681_v50 = vld [vmem:[%s4850_s14] sm:$0xff] }
 0x68b   : > { %v2165_v42 = vmul.f32 %v3752_v44, %v2164_v53  ;;  %v3735_v53 = vld [vmem:[%s4849_s13] ss:$0 sm:$0xff] }
 0x68d   : > { %v2169_v55 = vsel %vm2168_vm8, %v3752_v44, %v2165_v42 }
 0x68e   : > { %v2170_v57 = vmul.f32 %v2169_v55, %v2154_v38  ;;  %v3683_v38 = vld [vmem:[%s4850_s14 + $0x10] sm:$0xff] }
 0x690   : > { %v2171_v58 = vpack.c.bf16 %v2170_v57, %v2170_v57 }
 0x692   : > { %2180 = vmatmul.bf16.vlgmr.msrb.gmra.mxu2 %v2171_v58 }
 0x715   : > { %v2181_v3 = vpop.f32.mrf.mxu2 }
 0x716   : > { %v2185_v48 = vmul.f32 0.17677669, %v2181_v3 }
 0x718   : > { %v2186_v59 = vsel %vm1695_vm13, %v2185_v48, -inf }
 0x719   : > { %2187 = vmax.xlane.f32.xlu0 %v2186_v59 }
 0x71d   : > { %v2183_v60 = vpop.f32.mrf.mxu2 }
 0x78c   : > { %v2188_v26 = vpop.xlane.xlu0 %2187 }
 0x78d   : > { %v2189_v62 = vsub.f32 %v2185_v48, %v2188_v26  ;;  %v3736_v48 = vld [vmem:[%s4851_s15] ss:$0 sm:$0xff] }
 0x78f   : > { %v2190_v63 = vmul.f32 1.442695, %v2189_v62 }
 0x791   : > { %3753 = vpow2.f32 %v2190_v63 }
 0x797   : > { %v3754_v0 = vpop.eup %3753 }
 0x798   : > { %v2192_v1 = vsel %vm1695_vm13, %v3754_v0, 0.0 }
 0x799   : > { %2193 = vadd.xlane.f32.xlu1 %v2192_v1 }
 0x80c   : > { %v2194_v2 = vpop.xlane.xlu1 %2193 }
 0x80d   : > { %3755 = vrcp.f32 %v2194_v2  ;;  %v2206_v8 = vand.u32 2147483648, %v2194_v2  ;;  %v2204_v9 = vand.u32 2147483647, %v2194_v2  ;;  %vm2200_vm10 = vweird.f32 %v2194_v2 }
 0x80f   : > { %v2207_v10 = vor.u32 1.1754944e-38, %v2206_v8  ;;  %vm2205_vm12 = vcmp.eq.f32.partialorder %v2204_v9, 8.507059e+37 }
 0x813   : > { %v3756_v6 = vpop.eup %3755 }
 0x814   : > { %v2196_v7 = vmul.f32 %v3756_v6, %v2194_v2  ;;  %vm2201_vm9 = vweird.f32 %v3756_v6 }
 0x815   : > { %vm2202_vm11 = vmor %vm2200_vm10, %vm2201_vm9 }
 0x816   : > { %v2197_v20 = vsub.f32 1.0, %v2196_v7 }
 0x818   : > { %v2198_v56 = vmul.f32 %v3756_v6, %v2197_v20 }
 0x81a   : > { %v2199_v34 = vadd.f32 %v3756_v6, %v2198_v56 }
 0x81c   : > { %v2203_v12 = vsel %vm2202_vm11, %v3756_v6, %v2199_v34 }
 0x81d   : > { %v2208_v14 = vsel %vm2205_vm12, %v2207_v10, %v2203_v12 }
 0x81e   : > { %v2209_v15 = vmul.f32 %v3754_v0, %v2208_v14 }
 0x820   : > { %v2210_v52 = vpack.c.bf16 %v2209_v15, %v2209_v15 }
 0x822   : > { %3398 = vmatmul.msk.bf16.vlgmr.msra.gmra.mxu3 %vm1695_vm13, %v2210_v52 }
 0x8a5   : > { %v2223_v25 = vpop.f32.mrf.mxu3 }
 0x8a6   : > { %v2227_v51 = vadd.f32 %v2223_v25, %v2170_v57 }
 0x8a8   : > { %v2228_v27 = vmul.f32 0.70710677, %v2227_v51 }
 0x8aa   : > { %v2229_v28 = vadd.f32 %v2228_v27, %v4745_v61  ;;  %v3687_v61 = vld [vmem:[%s4850_s14 + $0x30] sm:$0xff] }
 0x8ab   : > { %2467 = vmatpush.bf16.msra.mxu0 %v3687_v61 }
 0x8ac   : > { %v2230_v24 = vmul.f32 0.70710677, %v2229_v28 }
 0x8ad   : > { %v2225_v29 = vpop.f32.mrf.mxu3 }
 0x8ae   : > { %v2231_v30 = vpack.c.bf16 %v2230_v24, %v2230_v24 }
 0x8af   : > { %2468 = vmatpush.bf16.msra.mxu0 %v3686_v35 }
 0x8b0   : > { %2308 = vmatmul.bf16.vlgmr.msra.gmra.mxu2 %v2231_v30 }
 0x8b3   : > { %2469 = vmatpush.bf16.msra.mxu0 %v3685_v36 }
 0x8b7   : > { %2470 = vmatpush.bf16.msra.mxu0 %v3684_v37 }
 0x8bb   : > { %2471 = vmatpush.bf16.msra.mxu0 %v3683_v38 }
 0x8bf   : > { %2472 = vmatpush.bf16.msra.mxu0 %v3682_v49 }
 0x8c3   : > { %2473 = vmatpush.bf16.msra.mxu0 %v3681_v50 }
 0x933   : > { %v2309_v40 = vpop.f32.mrf.mxu2 }
 0x934   : > { %v2310_v41 = vadd.f32 %v3734_v39, %v2309_v40 }
 0x936   : > { %v2313_v43 = vmax.f32 %v2310_v41, 0.0 }
 0x938   : > { %v2314_v44 = vpack.c.bf16 %v2313_v43, %v2313_v43 }
 0x93a   : > { %2391 = vmatmul.bf16.vlgmr.msrb.gmra.mxu3 %v2314_v44 }
 0x93b   : > { %v2311_v45 = vpop.f32.mrf.mxu2 }
 0x9bd   : > { %v2392_v42 = vpop.f32.mrf.mxu3 }
 0x9be   : > { %v2393_v55 = vadd.f32 %v3735_v53, %v2392_v42 }
 0x9c0   : > { %v2396_v57 = vmax.f32 %v2393_v55, 0.0 }
 0x9c2   : > { %v2397_v58 = vpack.c.bf16 %v2396_v57, %v2396_v57  ;;  %2479 = vst [vmem:[%s617_s1] sm:$0xff] %v2396_v57 }
 0x9c4   : > { %2474 = vmatmul.bf16.vlgmr.msra.gmra.mxu0 %v2397_v58 }
 0x9c5   : > { %v2394_v3 = vpop.f32.mrf.mxu3 }
 0xa41   : > { %v2475_v59 = vpop.f32.mrf.mxu0 }
 0xa42   : > { %v2476_v60 = vadd.f32 %v3736_v48, %v2475_v59 }
 0xa44   : > { %2480 = vst [vmem:[%s621_s25] sm:$0xff] %v2476_v60 }
 0xa49   : > { %v2477_v26 = vpop.f32.mrf.mxu0 }
 0xa4a PF: > { %s4870_s0 = sld [smem:[#allocation9_spill]] }
 0xa50   : > { %s30_s24 = sadd.s32 1, %s4870_s0  }
 0xa51   : > { %p27_p7 = scmp.ge.s32.totalorder %s30_s24, 4  }
 0xa53   :  { %29 = sbr.rel (!%p27_p7) target bundleno = 7 (0x7), region = 146 }
 0xa58   :  { %2514 = vsyncpa [#allocation3], 1 }
 0xa59   :  { %2516 = vsyncpa [#allocation3 + $0x1], 1 }
 0xa5a   :  { %2517 = vsyncpa [#allocation5], 1 }

</bundles_post_ra>
